<compile_context>
chip_gen: v7x
topology: tpu7x:2x2x1
jax: 0.10.0
libtpu: 0.0.40
codegen_flags: <defaults>
</compile_context>

<pallas_src>
import math
import functools

import jax
import jax.numpy as jnp
from jax import lax
from jax.experimental import pallas as pl
from jax.experimental.pallas import tpu as pltpu

NEG_INF = float("-inf")
LN_EPS = 1e-5

# rows of the packed per-layer small-parameter block `pvec` (Ln, 16, E)
R_B_SA_Q, R_B_SA_K, R_B_SA_V, R_B_SA_O = 0, 1, 2, 3
R_LN1_W, R_LN1_B = 4, 5
R_B_CA_Q, R_B_CA_K, R_B_CA_V, R_B_CA_O = 6, 7, 8, 9
R_LN2_W, R_LN2_B = 10, 11
R_B_FF2, R_LN3_W, R_LN3_B = 12, 13, 14
N_PVEC_ROWS = 16


# ----------------------------------------------------------------------------
# Fused decoder kernel (one grid step == one TransformerDecoderLayer;
# the last step also runs the logits head + cross-entropy).
# ----------------------------------------------------------------------------
def _build_decoder_kernel(num_layers, num_heads, model_dim, head_dim):
    scale = 1.0 / math.sqrt(head_dim)
    E = model_dim

    def kernel(e_ref, mem_ref, mself_ref, mcross_ref, hself_ref, hcross_ref,
               head_w, head_b, tgt_ref,
               w_sa_qkv, w_sa_o, w_ca_q, w_ca_kv, w_ca_o, w_ff1, w_ff2,
               pvec_ref, bff1_ref,
               loss_ref, x_scr):
        layer = pl.program_id(0)

        @pl.when(layer == 0)
        def _():
            x_scr[...] = e_ref[...]

        x = x_scr[...]                       # (M, E)  f32 activations (VMEM carry)
        mem = mem_ref[...]                   # (Mk, E) f32 conditioning memory
        pv = pvec_ref[0]                     # (16, E) f32 packed biases / LN params

        def row(i):                          # (1, E) broadcastable param row
            return pv[i:i + 1, :]

        def mm(a, w_ref):
            # weights pre-transposed to (in,out); bf16 operands, f32 MXU accumulate
            return jnp.dot(a.astype(w_ref.dtype), w_ref[0],
                           preferred_element_type=jnp.float32)

        def layernorm(h, wi, bi):
            mu = jnp.mean(h, axis=-1, keepdims=True)
            var = jnp.mean(jnp.square(h - mu), axis=-1, keepdims=True)
            return (h - mu) * lax.rsqrt(var + LN_EPS) * row(wi) + row(bi)

        def mha(q, k, v, amask, hsel):
            # Head-stacked attention: all heads in three wide MXU matmuls.
            #   q:(M,E) k,v:(Mk,E) f32
            #   amask:(M, H*Mk)  additive causal/batch mask, tiled over heads
            #   hsel :(H*Mk, E)  0/1 head selector (row h*Mk+n -> head-h columns)
            kstk = (jnp.concatenate([k] * num_heads, axis=0) * hsel
                    ).astype(jnp.bfloat16)                         # (H*Mk, E)
            vstk = (jnp.concatenate([v] * num_heads, axis=0) * hsel
                    ).astype(jnp.bfloat16)                         # (H*Mk, E)
            # all (head, key) scores in ONE matmul: (M,E) x (E,H*Mk)
            s = lax.dot_general(q.astype(jnp.bfloat16), kstk,
                                (((1,), (1,)), ((), ())),
                                preferred_element_type=jnp.float32)  # (M, H*Mk)
            s = s * scale + amask
            s = s - jnp.max(s, axis=-1, keepdims=True)   # one global row max
            p = jnp.exp(s).astype(jnp.bfloat16)          # (M, H*Mk)
            # concatenated head outputs in one matmul
            ctx = jnp.dot(p, vstk, preferred_element_type=jnp.float32)   # (M, E)
            # per-head softmax denominators, broadcast to (M, E) lanes
            den = jnp.dot(p, hsel.astype(jnp.bfloat16),
                          preferred_element_type=jnp.float32)            # (M, E)
            return ctx * pl.reciprocal(den, approx=True)

        # ---- self-attention (fused QKV) + add & norm ------------------------
        qkv = mm(x, w_sa_qkv)                               # (M, 3E)
        q = qkv[:, 0:E] + row(R_B_SA_Q)
        k = qkv[:, E:2 * E] + row(R_B_SA_K)
        v = qkv[:, 2 * E:3 * E] + row(R_B_SA_V)
        sa = mm(mha(q, k, v, mself_ref[...], hself_ref[...]), w_sa_o) \
            + row(R_B_SA_O)
        x = layernorm(x + sa, R_LN1_W, R_LN1_B)

        # ---- cross-attention (fused KV) + add & norm ------------------------
        q = mm(x, w_ca_q) + row(R_B_CA_Q)
        kv = mm(mem, w_ca_kv)                               # (Mk, 2E)
        k = kv[:, 0:E] + row(R_B_CA_K)
        v = kv[:, E:2 * E] + row(R_B_CA_V)
        ca = mm(mha(q, k, v, mcross_ref[...], hcross_ref[...]), w_ca_o) \
            + row(R_B_CA_O)
        x = layernorm(x + ca, R_LN2_W, R_LN2_B)

        # ---- FFN (ReLU) + add & norm; hidden kept bf16, never leaves VMEM ---
        h1 = jnp.maximum(mm(x, w_ff1) + bff1_ref[0], 0.0).astype(jnp.bfloat16)
        h2 = mm(h1, w_ff2) + row(R_B_FF2)
        x = layernorm(x + h2, R_LN3_W, R_LN3_B)

        x_scr[...] = x                                      # carry to next layer

        # ---- last layer: logits head + cross-entropy loss --------------------
        @pl.when(layer == num_layers - 1)
        def _():
            logits = jnp.dot(x, head_w[...],
                             preferred_element_type=jnp.float32) + head_b[...]
            m = jnp.max(logits, axis=-1, keepdims=True)
            lse = jnp.log(jnp.sum(jnp.exp(logits - m), axis=-1,
                                  keepdims=True)) + m
            col = lax.broadcasted_iota(jnp.int32, logits.shape, 1)
            onehot = (col == tgt_ref[...]).astype(jnp.float32)
            picked = jnp.sum(onehot * logits, axis=-1, keepdims=True)
            loss_ref[...] = jnp.sum(lse - picked, keepdims=True) / logits.shape[0]

    return kernel


# ----------------------------------------------------------------------------
# Forward: embedding / mask glue in JAX, one pallas_call for the whole decoder.
# ----------------------------------------------------------------------------
def causal_decoder_forward(params, x_tokens, cond_h, bos_value, head_num):
    L, B = x_tokens.shape
    S = cond_h.shape[0]
    E = params["pos_emb"].shape[1]
    num_layers = params["w_sa_qkv"].shape[0]
    dh = E // head_num
    M = B * L                       # query rows (batch-major flat)
    Mk = B * S                      # memory rows

    # right-shift with BOS (add_bos=True):  cat(bos, x)[:-1]
    bos = jnp.full((1, B), bos_value, dtype=x_tokens.dtype)
    x_in = jnp.concatenate([bos, x_tokens], axis=0)[:-1]               # (L, B)

    # embedding gather + positional embedding (glue; gather is not a hot path)
    e = jnp.take(params["emb_weight"], x_in, axis=0) \
        + params["pos_emb"][:L][:, None, :]                            # (L,B,E)
    e = jnp.transpose(e, (1, 0, 2)).reshape(M, E).astype(jnp.float32)  # batch-major
    mem = jnp.transpose(cond_h, (1, 0, 2)).reshape(Mk, E).astype(jnp.float32)

    # additive (same-batch & causal) masks, tiled over the head-stacked key axis
    row_b = jnp.arange(M, dtype=jnp.int32) // L
    row_l = jnp.arange(M, dtype=jnp.int32) % L
    same_b = row_b[:, None] == row_b[None, :]
    causal = row_l[None, :] <= row_l[:, None]
    mask_self = jnp.where(same_b & causal, 0.0, NEG_INF).astype(jnp.float32)
    mem_b = jnp.arange(Mk, dtype=jnp.int32) // S
    mask_cross = jnp.where(row_b[:, None] == mem_b[None, :], 0.0,
                           NEG_INF).astype(jnp.float32)
    mask_self_stk = jnp.tile(mask_self, (1, head_num))      # (M, H*M)
    mask_cross_stk = jnp.tile(mask_cross, (1, head_num))    # (M, H*Mk)

    # 0/1 head selector for stacked K/V rows: row h*rows+n selects head-h columns
    def head_sel(rows):
        r = (jnp.arange(head_num * rows, dtype=jnp.int32) // rows)[:, None]
        c = (jnp.arange(E, dtype=jnp.int32) // dh)[None, :]
        return (r == c).astype(jnp.float32)
    hsel_self = head_sel(M)                                  # (H*M, E)
    hsel_cross = head_sel(Mk)                                # (H*Mk, E)

    targets = jnp.transpose(x_tokens, (1, 0)).reshape(M, 1).astype(jnp.int32)

    kernel = _build_decoder_kernel(num_layers, head_num, E, dh)

    # resident constants (block index never changes -> DMA'd once)
    consts = [e, mem, mask_self_stk, mask_cross_stk, hsel_self, hsel_cross,
              params["head_w"], params["head_b"], targets]
    # per-layer streamed weights (double-buffered by the BlockSpec pipeline)
    streams = [params["w_sa_qkv"], params["w_sa_o"], params["w_ca_q"],
               params["w_ca_kv"], params["w_ca_o"], params["w_ff1"],
               params["w_ff2"], params["pvec"], params["b_ff1"]]

    def const_spec(a):
        return pl.BlockSpec(a.shape, lambda l: (0, 0))

    def layer_spec(a):
        # On v5e, `pipeline_mode=pl.Buffered(3)` on w_ff1/w_ff2 would deepen the
        # weight pipeline; on v6e/v7x the grid could be collapsed with all
        # stacked weights resident (~3.4 MiB).  Kept portable/default here.
        return pl.BlockSpec((1,) + a.shape[1:], lambda l: (l, 0, 0))

    loss = pl.pallas_call(
        kernel,
        grid=(num_layers,),
        out_shape=jax.ShapeDtypeStruct((1, 1), jnp.float32),
        in_specs=[const_spec(a) for a in consts] + [layer_spec(a) for a in streams],
        out_specs=pl.BlockSpec((1, 1), lambda l: (0, 0)),
        scratch_shapes=[pltpu.VMEM((M, E), jnp.float32)],    # activation carry
        compiler_params=pltpu.CompilerParams(
            dimension_semantics=("arbitrary",),              # sequential layer loop
            vmem_limit_bytes=32 * 1024 * 1024),
    )(*consts, *streams)
    return loss[0, 0]


# ----------------------------------------------------------------------------
# Deterministic parameter init.  Weights pre-transposed to (in,out), stacked
# over layers; big matmul weights in bf16; small params packed into `pvec`.
# ----------------------------------------------------------------------------
def init_params(key, token_dim, seq_length, model_dim, head_num, layer_num,
                dim_ff, scale=0.05):
    ks = iter(jax.random.split(key, 32))

    def nrm(shape, dtype=jnp.float32):
        return (scale * jax.random.normal(next(ks), shape, jnp.float32)
                ).astype(dtype)

    E, FF, Ln = model_dim, dim_ff, layer_num

    w_sa_qkv = nrm((Ln, E, 3 * E), jnp.bfloat16)
    w_sa_o = nrm((Ln, E, E), jnp.bfloat16)
    w_ca_q = nrm((Ln, E, E), jnp.bfloat16)
    w_ca_kv = nrm((Ln, E, 2 * E), jnp.bfloat16)
    w_ca_o = nrm((Ln, E, E), jnp.bfloat16)
    w_ff1 = nrm((Ln, E, FF), jnp.bfloat16)
    w_ff2 = nrm((Ln, FF, E), jnp.bfloat16)

    # pack the 13 small per-layer params into one (Ln, 16, E) block
    b_sa_qkv = nrm((Ln, 3 * E))
    b_sa_o = nrm((Ln, E))
    b_ca_q = nrm((Ln, E))
    b_ca_kv = nrm((Ln, 2 * E))
    b_ca_o = nrm((Ln, E))
    b_ff2 = nrm((Ln, E))
    ones = jnp.ones((Ln, E), jnp.float32)
    zeros = jnp.zeros((Ln, E), jnp.float32)
    pvec = jnp.stack([
        b_sa_qkv[:, 0:E], b_sa_qkv[:, E:2 * E], b_sa_qkv[:, 2 * E:3 * E], b_sa_o,
        ones, zeros,                                   # ln1_w, ln1_b
        b_ca_q, b_ca_kv[:, 0:E], b_ca_kv[:, E:2 * E], b_ca_o,
        ones, zeros,                                   # ln2_w, ln2_b
        b_ff2, ones, zeros,                            # b_ff2, ln3_w, ln3_b
        zeros,                                         # pad to 16 rows
    ], axis=1)                                         # (Ln, 16, E)
    assert pvec.shape == (Ln, N_PVEC_ROWS, E)

    return {
        "pos_emb": jax.random.normal(next(ks), (seq_length, E), jnp.float32),
        "emb_weight": jax.random.normal(next(ks), (token_dim, E), jnp.float32),
        "head_w": nrm((E, token_dim)),                 # (in, out)
        "head_b": nrm((1, token_dim)),
        "w_sa_qkv": w_sa_qkv, "w_sa_o": w_sa_o,
        "w_ca_q": w_ca_q, "w_ca_kv": w_ca_kv, "w_ca_o": w_ca_o,
        "w_ff1": w_ff1, "w_ff2": w_ff2,
        "pvec": pvec,                                  # packed biases + LN params
        "b_ff1": nrm((Ln, 1, FF)),
    }


# ----------------------------------------------------------------------------
if __name__ == "__main__":
    token_dim = 16
    seq_length = 8
    model_dim = 64        # CausalDecoder default
    head_num = 8          # CausalDecoder default
    layer_num = 6         # CausalDecoder default
    dim_ff = 2048         # nn.TransformerDecoderLayer default dim_feedforward
    bos_value = 0
    bsz = 2
    mem_len = 4

    key = jax.random.PRNGKey(0)
    kp, kx, kc = jax.random.split(key, 3)
    params = init_params(kp, token_dim, seq_length, model_dim, head_num,
                         layer_num, dim_ff)
    x = jax.random.randint(kx, (seq_length, bsz), 0, token_dim,
                           dtype=jnp.int32)                 # (L, B) tokens
    cond_h = jax.random.normal(kc, (mem_len, bsz, model_dim), jnp.float32)

    fwd = jax.jit(functools.partial(causal_decoder_forward,
                                    bos_value=bos_value, head_num=head_num))
    loss = fwd(params, x, cond_h)
    loss = jax.block_until_ready(loss)
    assert loss.shape == () and bool(jnp.isfinite(loss))
    print("KERNEL_OK")
</pallas_src>

<mosaic_0001>
module attributes {stable_mosaic.version = 11 : i64} {
  func.func @kernel(%arg0: i32, %arg1: memref<16x64xf32, #tpu.memory_space<vmem>>, %arg2: memref<8x64xf32, #tpu.memory_space<vmem>>, %arg3: memref<16x128xf32, #tpu.memory_space<vmem>>, %arg4: memref<16x64xf32, #tpu.memory_space<vmem>>, %arg5: memref<128x64xf32, #tpu.memory_space<vmem>>, %arg6: memref<64x64xf32, #tpu.memory_space<vmem>>, %arg7: memref<64x16xf32, #tpu.memory_space<vmem>>, %arg8: memref<1x16xf32, #tpu.memory_space<vmem>>, %arg9: memref<16x1xi32, #tpu.memory_space<vmem>>, %arg10: memref<1x64x192xbf16, #tpu.memory_space<vmem>>, %arg11: memref<1x64x64xbf16, #tpu.memory_space<vmem>>, %arg12: memref<1x64x64xbf16, #tpu.memory_space<vmem>>, %arg13: memref<1x64x128xbf16, #tpu.memory_space<vmem>>, %arg14: memref<1x64x64xbf16, #tpu.memory_space<vmem>>, %arg15: memref<1x64x2048xbf16, #tpu.memory_space<vmem>>, %arg16: memref<1x2048x64xbf16, #tpu.memory_space<vmem>>, %arg17: memref<1x16x64xf32, #tpu.memory_space<vmem>>, %arg18: memref<1x1x2048xf32, #tpu.memory_space<vmem>>, %arg19: memref<1x1xf32, #tpu.memory_space<vmem>>, %arg20: memref<16x64xf32, #tpu.memory_space<vmem>>) attributes {dimension_semantics = [#tpu.dimension_semantics<arbitrary>], iteration_bounds = array<i64: 6>, scalar_prefetch = 0 : i64, scratch_operands = 1 : i64, tpu.core_type = #tpu.core_type<tc>, window_params = [{pipeline_mode = #tpu.pipeline_mode<synchronous>, transform_indices = @transform_0, window_bounds = array<i64: 16, 64>}, {pipeline_mode = #tpu.pipeline_mode<synchronous>, transform_indices = @transform_1, window_bounds = array<i64: 8, 64>}, {pipeline_mode = #tpu.pipeline_mode<synchronous>, transform_indices = @transform_2, window_bounds = array<i64: 16, 128>}, {pipeline_mode = #tpu.pipeline_mode<synchronous>, transform_indices = @transform_3, window_bounds = array<i64: 16, 64>}, {pipeline_mode = #tpu.pipeline_mode<synchronous>, transform_indices = @transform_4, window_bounds = array<i64: 128, 64>}, {pipeline_mode = #tpu.pipeline_mode<synchronous>, transform_indices = @transform_5, window_bounds = array<i64: 64, 64>}, {pipeline_mode = #tpu.pipeline_mode<synchronous>, transform_indices = @transform_6, window_bounds = array<i64: 64, 16>}, {pipeline_mode = #tpu.pipeline_mode<synchronous>, transform_indices = @transform_7, window_bounds = array<i64: 1, 16>}, {pipeline_mode = #tpu.pipeline_mode<synchronous>, transform_indices = @transform_8, window_bounds = array<i64: 16, 1>}, {transform_indices = @transform_9, window_bounds = array<i64: 1, 64, 192>}, {transform_indices = @transform_10, window_bounds = array<i64: 1, 64, 64>}, {transform_indices = @transform_11, window_bounds = array<i64: 1, 64, 64>}, {transform_indices = @transform_12, window_bounds = array<i64: 1, 64, 128>}, {transform_indices = @transform_13, window_bounds = array<i64: 1, 64, 64>}, {transform_indices = @transform_14, window_bounds = array<i64: 1, 64, 2048>}, {transform_indices = @transform_15, window_bounds = array<i64: 1, 2048, 64>}, {transform_indices = @transform_16, window_bounds = array<i64: 1, 16, 64>}, {transform_indices = @transform_17, window_bounds = array<i64: 1, 1, 2048>}, {pipeline_mode = #tpu.pipeline_mode<synchronous>, transform_indices = @transform_18, window_bounds = array<i64: 1, 1>}]} {
    %c0_i32 = arith.constant 0 : i32
    %0 = arith.cmpi eq, %arg0, %c0_i32 : i32
    %1 = arith.extui %0 : i1 to i32
    %c0_i32_0 = arith.constant 0 : i32
    %2 = arith.cmpi ne, %1, %c0_i32_0 : i32
    scf.if %2 {
      %c0_74 = arith.constant 0 : index
      %c0_75 = arith.constant 0 : index
      %200 = vector.load %arg1[%c0_74, %c0_75] : memref<16x64xf32, #tpu.memory_space<vmem>>, vector<16x64xf32>
      %c0_76 = arith.constant 0 : index
      %c0_77 = arith.constant 0 : index
      %201 = vector.load %arg20[%c0_76, %c0_77] : memref<16x64xf32, #tpu.memory_space<vmem>>, vector<16x64xf32>
      tpu.vector_store %arg20[%c0_76, %c0_77], %200 {strides = array<i32>} : memref<16x64xf32, #tpu.memory_space<vmem>>, vector<16x64xf32>,
    } else {
    }
    %c0 = arith.constant 0 : index
    %c0_1 = arith.constant 0 : index
    %3 = vector.load %arg20[%c0, %c0_1] : memref<16x64xf32, #tpu.memory_space<vmem>>, vector<16x64xf32>
    %c0_2 = arith.constant 0 : index
    %c0_3 = arith.constant 0 : index
    %4 = vector.load %arg2[%c0_2, %c0_3] : memref<8x64xf32, #tpu.memory_space<vmem>>, vector<8x64xf32>
    %c0_4 = arith.constant 0 : index
    %c0_5 = arith.constant 0 : index
    %c0_6 = arith.constant 0 : index
    %5 = vector.load %arg17[%c0_4, %c0_5, %c0_6] : memref<1x16x64xf32, #tpu.memory_space<vmem>>, vector<1x16x64xf32>
    %6 = vector.shape_cast %5 : vector<1x16x64xf32> to vector<16x64xf32>
    %7 = arith.truncf %3 : vector<16x64xf32> to vector<16x64xbf16>
    %c0_7 = arith.constant 0 : index
    %c0_8 = arith.constant 0 : index
    %c0_9 = arith.constant 0 : index
    %8 = vector.load %arg10[%c0_7, %c0_8, %c0_9] : memref<1x64x192xbf16, #tpu.memory_space<vmem>>, vector<1x64x192xbf16>
    %9 = vector.shape_cast %8 : vector<1x64x192xbf16> to vector<64x192xbf16>
    %cst = arith.constant dense<0.000000e+00> : vector<16x192xf32>
    %10 = tpu.matmul %7, %9, %cst {dimension_numbers = #tpu.dot_dimension_numbers<[1], [0], [0], [1], [0, 0, 1, 1], [], []>} : vector<16x64xbf16>, vector<64x192xbf16>, vector<16x192xf32> -> vector<16x192xf32>
    %11 = vector.extract_strided_slice %10 {offsets = [0, 0], sizes = [16, 64], strides = [1, 1]} : vector<16x192xf32> to vector<16x64xf32>
    %12 = vector.extract_strided_slice %6 {offsets = [0, 0], sizes = [1, 64], strides = [1, 1]} : vector<16x64xf32> to vector<1x64xf32>
    %13 = vector.broadcast %12 : vector<1x64xf32> to vector<16x64xf32>
    %14 = arith.addf %11, %13 : vector<16x64xf32>
    %15 = vector.extract_strided_slice %10 {offsets = [0, 64], sizes = [16, 64], strides = [1, 1]} : vector<16x192xf32> to vector<16x64xf32>
    %16 = vector.extract_strided_slice %6 {offsets = [1, 0], sizes = [1, 64], strides = [1, 1]} : vector<16x64xf32> to vector<1x64xf32>
    %17 = vector.broadcast %16 : vector<1x64xf32> to vector<16x64xf32>
    %18 = arith.addf %15, %17 : vector<16x64xf32>
    %19 = vector.extract_strided_slice %10 {offsets = [0, 128], sizes = [16, 64], strides = [1, 1]} : vector<16x192xf32> to vector<16x64xf32>
    %20 = vector.extract_strided_slice %6 {offsets = [2, 0], sizes = [1, 64], strides = [1, 1]} : vector<16x64xf32> to vector<1x64xf32>
    %21 = vector.broadcast %20 : vector<1x64xf32> to vector<16x64xf32>
    %22 = arith.addf %19, %21 : vector<16x64xf32>
    %c0_10 = arith.constant 0 : index
    %c0_11 = arith.constant 0 : index
    %23 = vector.load %arg3[%c0_10, %c0_11] : memref<16x128xf32, #tpu.memory_space<vmem>>, vector<16x128xf32>
    %c0_12 = arith.constant 0 : index
    %c0_13 = arith.constant 0 : index
    %24 = vector.load %arg5[%c0_12, %c0_13] : memref<128x64xf32, #tpu.memory_space<vmem>>, vector<128x64xf32>
    %25 = tpu.concatenate %18, %18, %18, %18, %18, %18, %18, %18 in 0 : vector<16x64xf32>, vector<16x64xf32>, vector<16x64xf32>, vector<16x64xf32>, vector<16x64xf32>, vector<16x64xf32>, vector<16x64xf32>, vector<16x64xf32> -> vector<128x64xf32>
    %26 = arith.mulf %25, %24 : vector<128x64xf32>
    %27 = arith.truncf %26 : vector<128x64xf32> to vector<128x64xbf16>
    %28 = tpu.concatenate %22, %22, %22, %22, %22, %22, %22, %22 in 0 : vector<16x64xf32>, vector<16x64xf32>, vector<16x64xf32>, vector<16x64xf32>, vector<16x64xf32>, vector<16x64xf32>, vector<16x64xf32>, vector<16x64xf32> -> vector<128x64xf32>
    %29 = arith.mulf %28, %24 : vector<128x64xf32>
    %30 = arith.truncf %29 : vector<128x64xf32> to vector<128x64xbf16>
    %31 = arith.truncf %14 : vector<16x64xf32> to vector<16x64xbf16>
    %cst_14 = arith.constant dense<0.000000e+00> : vector<16x128xf32>
    %32 = tpu.matmul %31, %27, %cst_14 {dimension_numbers = #tpu.dot_dimension_numbers<[1], [1], [0], [0], [0, 0, 1, 0], [], []>} : vector<16x64xbf16>, vector<128x64xbf16>, vector<16x128xf32> -> vector<16x128xf32>
    %cst_15 = arith.constant 0.353553385 : f32
    %33 = vector.broadcast %cst_15 : f32 to vector<16x128xf32>
    %34 = arith.mulf %32, %33 : vector<16x128xf32>
    %35 = arith.addf %34, %23 : vector<16x128xf32>
    %cst_16 = arith.constant dense<0xFF800000> : vector<16xf32>
    %36 = vector.multi_reduction <maximumf>, %35, %cst_16 [1] : vector<16x128xf32> to vector<16xf32>
    %37 = vector.shape_cast %36 : vector<16xf32> to vector<16x1xf32>
    %38 = vector.broadcast %37 : vector<16x1xf32> to vector<16x128xf32>
    %39 = arith.subf %35, %38 : vector<16x128xf32>
    %40 = math.exp %39 : vector<16x128xf32>
    %41 = arith.truncf %40 : vector<16x128xf32> to vector<16x128xbf16>
    %cst_17 = arith.constant dense<0.000000e+00> : vector<16x64xf32>
    %42 = tpu.matmul %41, %30, %cst_17 {dimension_numbers = #tpu.dot_dimension_numbers<[1], [0], [0], [1], [0, 0, 1, 1], [], []>} : vector<16x128xbf16>, vector<128x64xbf16>, vector<16x64xf32> -> vector<16x64xf32>
    %43 = arith.truncf %24 : vector<128x64xf32> to vector<128x64xbf16>
    %cst_18 = arith.constant dense<0.000000e+00> : vector<16x64xf32>
    %44 = tpu.matmul %41, %43, %cst_18 {dimension_numbers = #tpu.dot_dimension_numbers<[1], [0], [0], [1], [0, 0, 1, 1], [], []>} : vector<16x128xbf16>, vector<128x64xbf16>, vector<16x64xf32> -> vector<16x64xf32>
    %45 = tpu.reciprocal %44 {approx = true} : vector<16x64xf32> -> vector<16x64xf32>
    %46 = arith.mulf %42, %45 : vector<16x64xf32>
    %47 = arith.truncf %46 : vector<16x64xf32> to vector<16x64xbf16>
    %c0_19 = arith.constant 0 : index
    %c0_20 = arith.constant 0 : index
    %c0_21 = arith.constant 0 : index
    %48 = vector.load %arg11[%c0_19, %c0_20, %c0_21] : memref<1x64x64xbf16, #tpu.memory_space<vmem>>, vector<1x64x64xbf16>
    %49 = vector.shape_cast %48 : vector<1x64x64xbf16> to vector<64x64xbf16>
    %cst_22 = arith.constant dense<0.000000e+00> : vector<16x64xf32>
    %50 = tpu.matmul %47, %49, %cst_22 {dimension_numbers = #tpu.dot_dimension_numbers<[1], [0], [0], [1], [0, 0, 1, 1], [], []>} : vector<16x64xbf16>, vector<64x64xbf16>, vector<16x64xf32> -> vector<16x64xf32>
    %51 = vector.extract_strided_slice %6 {offsets = [3, 0], sizes = [1, 64], strides = [1, 1]} : vector<16x64xf32> to vector<1x64xf32>
    %52 = vector.broadcast %51 : vector<1x64xf32> to vector<16x64xf32>
    %53 = arith.addf %50, %52 : vector<16x64xf32>
    %54 = arith.addf %3, %53 : vector<16x64xf32>
    %cst_23 = arith.constant dense<0.000000e+00> : vector<16xf32>
    %55 = vector.multi_reduction <add>, %54, %cst_23 [1] : vector<16x64xf32> to vector<16xf32>
    %56 = vector.shape_cast %55 : vector<16xf32> to vector<16x1xf32>
    %cst_24 = arith.constant 6.400000e+01 : f32
    %57 = vector.broadcast %cst_24 : f32 to vector<16x1xf32>
    %58 = arith.divf %56, %57 : vector<16x1xf32>
    %59 = vector.broadcast %58 : vector<16x1xf32> to vector<16x64xf32>
    %60 = arith.subf %54, %59 : vector<16x64xf32>
    %61 = arith.mulf %60, %60 : vector<16x64xf32>
    %cst_25 = arith.constant dense<0.000000e+00> : vector<16xf32>
    %62 = vector.multi_reduction <add>, %61, %cst_25 [1] : vector<16x64xf32> to vector<16xf32>
    %63 = vector.shape_cast %62 : vector<16xf32> to vector<16x1xf32>
    %cst_26 = arith.constant 6.400000e+01 : f32
    %64 = vector.broadcast %cst_26 : f32 to vector<16x1xf32>
    %65 = arith.divf %63, %64 : vector<16x1xf32>
    %66 = vector.broadcast %58 : vector<16x1xf32> to vector<16x64xf32>
    %67 = arith.subf %54, %66 : vector<16x64xf32>
    %cst_27 = arith.constant 9.99999974E-6 : f32
    %68 = vector.broadcast %cst_27 : f32 to vector<16x1xf32>
    %69 = arith.addf %65, %68 : vector<16x1xf32>
    %70 = math.rsqrt %69 : vector<16x1xf32>
    %71 = vector.broadcast %70 : vector<16x1xf32> to vector<16x64xf32>
    %72 = arith.mulf %67, %71 : vector<16x64xf32>
    %73 = vector.extract_strided_slice %6 {offsets = [4, 0], sizes = [1, 64], strides = [1, 1]} : vector<16x64xf32> to vector<1x64xf32>
    %74 = vector.broadcast %73 : vector<1x64xf32> to vector<16x64xf32>
    %75 = arith.mulf %72, %74 : vector<16x64xf32>
    %76 = vector.extract_strided_slice %6 {offsets = [5, 0], sizes = [1, 64], strides = [1, 1]} : vector<16x64xf32> to vector<1x64xf32>
    %77 = vector.broadcast %76 : vector<1x64xf32> to vector<16x64xf32>
    %78 = arith.addf %75, %77 : vector<16x64xf32>
    %79 = arith.truncf %78 : vector<16x64xf32> to vector<16x64xbf16>
    %c0_28 = arith.constant 0 : index
    %c0_29 = arith.constant 0 : index
    %c0_30 = arith.constant 0 : index
    %80 = vector.load %arg12[%c0_28, %c0_29, %c0_30] : memref<1x64x64xbf16, #tpu.memory_space<vmem>>, vector<1x64x64xbf16>
    %81 = vector.shape_cast %80 : vector<1x64x64xbf16> to vector<64x64xbf16>
    %cst_31 = arith.constant dense<0.000000e+00> : vector<16x64xf32>
    %82 = tpu.matmul %79, %81, %cst_31 {dimension_numbers = #tpu.dot_dimension_numbers<[1], [0], [0], [1], [0, 0, 1, 1], [], []>} : vector<16x64xbf16>, vector<64x64xbf16>, vector<16x64xf32> -> vector<16x64xf32>
    %83 = vector.extract_strided_slice %6 {offsets = [6, 0], sizes = [1, 64], strides = [1, 1]} : vector<16x64xf32> to vector<1x64xf32>
    %84 = vector.broadcast %83 : vector<1x64xf32> to vector<16x64xf32>
    %85 = arith.addf %82, %84 : vector<16x64xf32>
    %86 = arith.truncf %4 : vector<8x64xf32> to vector<8x64xbf16>
    %c0_32 = arith.constant 0 : index
    %c0_33 = arith.constant 0 : index
    %c0_34 = arith.constant 0 : index
    %87 = vector.load %arg13[%c0_32, %c0_33, %c0_34] : memref<1x64x128xbf16, #tpu.memory_space<vmem>>, vector<1x64x128xbf16>
    %88 = vector.shape_cast %87 : vector<1x64x128xbf16> to vector<64x128xbf16>
    %cst_35 = arith.constant dense<0.000000e+00> : vector<8x128xf32>
    %89 = tpu.matmul %86, %88, %cst_35 {dimension_numbers = #tpu.dot_dimension_numbers<[1], [0], [0], [1], [0, 0, 1, 1], [], []>} : vector<8x64xbf16>, vector<64x128xbf16>, vector<8x128xf32> -> vector<8x128xf32>
    %90 = vector.extract_strided_slice %89 {offsets = [0, 0], sizes = [8, 64], strides = [1, 1]} : vector<8x128xf32> to vector<8x64xf32>
    %91 = vector.extract_strided_slice %6 {offsets = [7, 0], sizes = [1, 64], strides = [1, 1]} : vector<16x64xf32> to vector<1x64xf32>
    %92 = vector.broadcast %91 : vector<1x64xf32> to vector<8x64xf32>
    %93 = arith.addf %90, %92 : vector<8x64xf32>
    %94 = vector.extract_strided_slice %89 {offsets = [0, 64], sizes = [8, 64], strides = [1, 1]} : vector<8x128xf32> to vector<8x64xf32>
    %95 = vector.extract_strided_slice %6 {offsets = [8, 0], sizes = [1, 64], strides = [1, 1]} : vector<16x64xf32> to vector<1x64xf32>
    %96 = vector.broadcast %95 : vector<1x64xf32> to vector<8x64xf32>
    %97 = arith.addf %94, %96 : vector<8x64xf32>
    %c0_36 = arith.constant 0 : index
    %c0_37 = arith.constant 0 : index
    %98 = vector.load %arg4[%c0_36, %c0_37] : memref<16x64xf32, #tpu.memory_space<vmem>>, vector<16x64xf32>
    %c0_38 = arith.constant 0 : index
    %c0_39 = arith.constant 0 : index
    %99 = vector.load %arg6[%c0_38, %c0_39] : memref<64x64xf32, #tpu.memory_space<vmem>>, vector<64x64xf32>
    %100 = tpu.concatenate %93, %93, %93, %93, %93, %93, %93, %93 in 0 : vector<8x64xf32>, vector<8x64xf32>, vector<8x64xf32>, vector<8x64xf32>, vector<8x64xf32>, vector<8x64xf32>, vector<8x64xf32>, vector<8x64xf32> -> vector<64x64xf32>
    %101 = arith.mulf %100, %99 : vector<64x64xf32>
    %102 = arith.truncf %101 : vector<64x64xf32> to vector<64x64xbf16>
    %103 = tpu.concatenate %97, %97, %97, %97, %97, %97, %97, %97 in 0 : vector<8x64xf32>, vector<8x64xf32>, vector<8x64xf32>, vector<8x64xf32>, vector<8x64xf32>, vector<8x64xf32>, vector<8x64xf32>, vector<8x64xf32> -> vector<64x64xf32>
    %104 = arith.mulf %103, %99 : vector<64x64xf32>
    %105 = arith.truncf %104 : vector<64x64xf32> to vector<64x64xbf16>
    %106 = arith.truncf %85 : vector<16x64xf32> to vector<16x64xbf16>
    %cst_40 = arith.constant dense<0.000000e+00> : vector<16x64xf32>
    %107 = tpu.matmul %106, %102, %cst_40 {dimension_numbers = #tpu.dot_dimension_numbers<[1], [1], [0], [0], [0, 0, 1, 0], [], []>} : vector<16x64xbf16>, vector<64x64xbf16>, vector<16x64xf32> -> vector<16x64xf32>
    %cst_41 = arith.constant 0.353553385 : f32
    %108 = vector.broadcast %cst_41 : f32 to vector<16x64xf32>
    %109 = arith.mulf %107, %108 : vector<16x64xf32>
    %110 = arith.addf %109, %98 : vector<16x64xf32>
    %cst_42 = arith.constant dense<0xFF800000> : vector<16xf32>
    %111 = vector.multi_reduction <maximumf>, %110, %cst_42 [1] : vector<16x64xf32> to vector<16xf32>
    %112 = vector.shape_cast %111 : vector<16xf32> to vector<16x1xf32>
    %113 = vector.broadcast %112 : vector<16x1xf32> to vector<16x64xf32>
    %114 = arith.subf %110, %113 : vector<16x64xf32>
    %115 = math.exp %114 : vector<16x64xf32>
    %116 = arith.truncf %115 : vector<16x64xf32> to vector<16x64xbf16>
    %cst_43 = arith.constant dense<0.000000e+00> : vector<16x64xf32>
    %117 = tpu.matmul %116, %105, %cst_43 {dimension_numbers = #tpu.dot_dimension_numbers<[1], [0], [0], [1], [0, 0, 1, 1], [], []>} : vector<16x64xbf16>, vector<64x64xbf16>, vector<16x64xf32> -> vector<16x64xf32>
    %118 = arith.truncf %99 : vector<64x64xf32> to vector<64x64xbf16>
    %cst_44 = arith.constant dense<0.000000e+00> : vector<16x64xf32>
    %119 = tpu.matmul %116, %118, %cst_44 {dimension_numbers = #tpu.dot_dimension_numbers<[1], [0], [0], [1], [0, 0, 1, 1], [], []>} : vector<16x64xbf16>, vector<64x64xbf16>, vector<16x64xf32> -> vector<16x64xf32>
    %120 = tpu.reciprocal %119 {approx = true} : vector<16x64xf32> -> vector<16x64xf32>
    %121 = arith.mulf %117, %120 : vector<16x64xf32>
    %122 = arith.truncf %121 : vector<16x64xf32> to vector<16x64xbf16>
    %c0_45 = arith.constant 0 : index
    %c0_46 = arith.constant 0 : index
    %c0_47 = arith.constant 0 : index
    %123 = vector.load %arg14[%c0_45, %c0_46, %c0_47] : memref<1x64x64xbf16, #tpu.memory_space<vmem>>, vector<1x64x64xbf16>
    %124 = vector.shape_cast %123 : vector<1x64x64xbf16> to vector<64x64xbf16>
    %cst_48 = arith.constant dense<0.000000e+00> : vector<16x64xf32>
    %125 = tpu.matmul %122, %124, %cst_48 {dimension_numbers = #tpu.dot_dimension_numbers<[1], [0], [0], [1], [0, 0, 1, 1], [], []>} : vector<16x64xbf16>, vector<64x64xbf16>, vector<16x64xf32> -> vector<16x64xf32>
    %126 = vector.extract_strided_slice %6 {offsets = [9, 0], sizes = [1, 64], strides = [1, 1]} : vector<16x64xf32> to vector<1x64xf32>
    %127 = vector.broadcast %126 : vector<1x64xf32> to vector<16x64xf32>
    %128 = arith.addf %125, %127 : vector<16x64xf32>
    %129 = arith.addf %78, %128 : vector<16x64xf32>
    %cst_49 = arith.constant dense<0.000000e+00> : vector<16xf32>
    %130 = vector.multi_reduction <add>, %129, %cst_49 [1] : vector<16x64xf32> to vector<16xf32>
    %131 = vector.shape_cast %130 : vector<16xf32> to vector<16x1xf32>
    %cst_50 = arith.constant 6.400000e+01 : f32
    %132 = vector.broadcast %cst_50 : f32 to vector<16x1xf32>
    %133 = arith.divf %131, %132 : vector<16x1xf32>
    %134 = vector.broadcast %133 : vector<16x1xf32> to vector<16x64xf32>
    %135 = arith.subf %129, %134 : vector<16x64xf32>
    %136 = arith.mulf %135, %135 : vector<16x64xf32>
    %cst_51 = arith.constant dense<0.000000e+00> : vector<16xf32>
    %137 = vector.multi_reduction <add>, %136, %cst_51 [1] : vector<16x64xf32> to vector<16xf32>
    %138 = vector.shape_cast %137 : vector<16xf32> to vector<16x1xf32>
    %cst_52 = arith.constant 6.400000e+01 : f32
    %139 = vector.broadcast %cst_52 : f32 to vector<16x1xf32>
    %140 = arith.divf %138, %139 : vector<16x1xf32>
    %141 = vector.broadcast %133 : vector<16x1xf32> to vector<16x64xf32>
    %142 = arith.subf %129, %141 : vector<16x64xf32>
    %cst_53 = arith.constant 9.99999974E-6 : f32
    %143 = vector.broadcast %cst_53 : f32 to vector<16x1xf32>
    %144 = arith.addf %140, %143 : vector<16x1xf32>
    %145 = math.rsqrt %144 : vector<16x1xf32>
    %146 = vector.broadcast %145 : vector<16x1xf32> to vector<16x64xf32>
    %147 = arith.mulf %142, %146 : vector<16x64xf32>
    %148 = vector.extract_strided_slice %6 {offsets = [10, 0], sizes = [1, 64], strides = [1, 1]} : vector<16x64xf32> to vector<1x64xf32>
    %149 = vector.broadcast %148 : vector<1x64xf32> to vector<16x64xf32>
    %150 = arith.mulf %147, %149 : vector<16x64xf32>
    %151 = vector.extract_strided_slice %6 {offsets = [11, 0], sizes = [1, 64], strides = [1, 1]} : vector<16x64xf32> to vector<1x64xf32>
    %152 = vector.broadcast %151 : vector<1x64xf32> to vector<16x64xf32>
    %153 = arith.addf %150, %152 : vector<16x64xf32>
    %154 = arith.truncf %153 : vector<16x64xf32> to vector<16x64xbf16>
    %c0_54 = arith.constant 0 : index
    %c0_55 = arith.constant 0 : index
    %c0_56 = arith.constant 0 : index
    %155 = vector.load %arg15[%c0_54, %c0_55, %c0_56] : memref<1x64x2048xbf16, #tpu.memory_space<vmem>>, vector<1x64x2048xbf16>
    %156 = vector.shape_cast %155 : vector<1x64x2048xbf16> to vector<64x2048xbf16>
    %cst_57 = arith.constant dense<0.000000e+00> : vector<16x2048xf32>
    %157 = tpu.matmul %154, %156, %cst_57 {dimension_numbers = #tpu.dot_dimension_numbers<[1], [0], [0], [1], [0, 0, 1, 1], [], []>} : vector<16x64xbf16>, vector<64x2048xbf16>, vector<16x2048xf32> -> vector<16x2048xf32>
    %c0_58 = arith.constant 0 : index
    %c0_59 = arith.constant 0 : index
    %c0_60 = arith.constant 0 : index
    %158 = vector.load %arg18[%c0_58, %c0_59, %c0_60] : memref<1x1x2048xf32, #tpu.memory_space<vmem>>, vector<1x1x2048xf32>
    %159 = vector.shape_cast %158 : vector<1x1x2048xf32> to vector<1x2048xf32>
    %160 = vector.broadcast %159 : vector<1x2048xf32> to vector<16x2048xf32>
    %161 = arith.addf %157, %160 : vector<16x2048xf32>
    %cst_61 = arith.constant 0.000000e+00 : f32
    %162 = vector.broadcast %cst_61 : f32 to vector<16x2048xf32>
    %163 = arith.maximumf %161, %162 : vector<16x2048xf32>
    %164 = arith.truncf %163 : vector<16x2048xf32> to vector<16x2048xbf16>
    %c0_62 = arith.constant 0 : index
    %c0_63 = arith.constant 0 : index
    %c0_64 = arith.constant 0 : index
    %165 = vector.load %arg16[%c0_62, %c0_63, %c0_64] : memref<1x2048x64xbf16, #tpu.memory_space<vmem>>, vector<1x2048x64xbf16>
    %166 = vector.shape_cast %165 : vector<1x2048x64xbf16> to vector<2048x64xbf16>
    %cst_65 = arith.constant dense<0.000000e+00> : vector<16x64xf32>
    %167 = tpu.matmul %164, %166, %cst_65 {dimension_numbers = #tpu.dot_dimension_numbers<[1], [0], [0], [1], [0, 0, 1, 1], [], []>} : vector<16x2048xbf16>, vector<2048x64xbf16>, vector<16x64xf32> -> vector<16x64xf32>
    %168 = vector.extract_strided_slice %6 {offsets = [12, 0], sizes = [1, 64], strides = [1, 1]} : vector<16x64xf32> to vector<1x64xf32>
    %169 = vector.broadcast %168 : vector<1x64xf32> to vector<16x64xf32>
    %170 = arith.addf %167, %169 : vector<16x64xf32>
    %171 = arith.addf %153, %170 : vector<16x64xf32>
    %cst_66 = arith.constant dense<0.000000e+00> : vector<16xf32>
    %172 = vector.multi_reduction <add>, %171, %cst_66 [1] : vector<16x64xf32> to vector<16xf32>
    %173 = vector.shape_cast %172 : vector<16xf32> to vector<16x1xf32>
    %cst_67 = arith.constant 6.400000e+01 : f32
    %174 = vector.broadcast %cst_67 : f32 to vector<16x1xf32>
    %175 = arith.divf %173, %174 : vector<16x1xf32>
    %176 = vector.broadcast %175 : vector<16x1xf32> to vector<16x64xf32>
    %177 = arith.subf %171, %176 : vector<16x64xf32>
    %178 = arith.mulf %177, %177 : vector<16x64xf32>
    %cst_68 = arith.constant dense<0.000000e+00> : vector<16xf32>
    %179 = vector.multi_reduction <add>, %178, %cst_68 [1] : vector<16x64xf32> to vector<16xf32>
    %180 = vector.shape_cast %179 : vector<16xf32> to vector<16x1xf32>
    %cst_69 = arith.constant 6.400000e+01 : f32
    %181 = vector.broadcast %cst_69 : f32 to vector<16x1xf32>
    %182 = arith.divf %180, %181 : vector<16x1xf32>
    %183 = vector.broadcast %175 : vector<16x1xf32> to vector<16x64xf32>
    %184 = arith.subf %171, %183 : vector<16x64xf32>
    %cst_70 = arith.constant 9.99999974E-6 : f32
    %185 = vector.broadcast %cst_70 : f32 to vector<16x1xf32>
    %186 = arith.addf %182, %185 : vector<16x1xf32>
    %187 = math.rsqrt %186 : vector<16x1xf32>
    %188 = vector.broadcast %187 : vector<16x1xf32> to vector<16x64xf32>
    %189 = arith.mulf %184, %188 : vector<16x64xf32>
    %190 = vector.extract_strided_slice %6 {offsets = [13, 0], sizes = [1, 64], strides = [1, 1]} : vector<16x64xf32> to vector<1x64xf32>
    %191 = vector.broadcast %190 : vector<1x64xf32> to vector<16x64xf32>
    %192 = arith.mulf %189, %191 : vector<16x64xf32>
    %193 = vector.extract_strided_slice %6 {offsets = [14, 0], sizes = [1, 64], strides = [1, 1]} : vector<16x64xf32> to vector<1x64xf32>
    %194 = vector.broadcast %193 : vector<1x64xf32> to vector<16x64xf32>
    %195 = arith.addf %192, %194 : vector<16x64xf32>
    %c0_71 = arith.constant 0 : index
    %c0_72 = arith.constant 0 : index
    %196 = vector.load %arg20[%c0_71, %c0_72] : memref<16x64xf32, #tpu.memory_space<vmem>>, vector<16x64xf32>
    tpu.vector_store %arg20[%c0_71, %c0_72], %195 {strides = array<i32>} : memref<16x64xf32, #tpu.memory_space<vmem>>, vector<16x64xf32>,
    %c5_i32 = arith.constant 5 : i32
    %197 = arith.cmpi eq, %arg0, %c5_i32 : i32
    %198 = arith.extui %197 : i1 to i32
    %c0_i32_73 = arith.constant 0 : i32
    %199 = arith.cmpi ne, %198, %c0_i32_73 : i32
    scf.if %199 {
      %c0_74 = arith.constant 0 : index
      %c0_75 = arith.constant 0 : index
      %200 = vector.load %arg7[%c0_74, %c0_75] : memref<64x16xf32, #tpu.memory_space<vmem>>, vector<64x16xf32>
      %cst_76 = arith.constant dense<0.000000e+00> : vector<16x16xf32>
      %201 = tpu.matmul %195, %200, %cst_76 {dimension_numbers = #tpu.dot_dimension_numbers<[1], [0], [0], [1], [0, 0, 1, 1], [], []>} : vector<16x64xf32>, vector<64x16xf32>, vector<16x16xf32> -> vector<16x16xf32>
      %c0_77 = arith.constant 0 : index
      %c0_78 = arith.constant 0 : index
      %202 = vector.load %arg8[%c0_77, %c0_78] : memref<1x16xf32, #tpu.memory_space<vmem>>, vector<1x16xf32>
      %203 = vector.broadcast %202 : vector<1x16xf32> to vector<16x16xf32>
      %204 = arith.addf %201, %203 : vector<16x16xf32>
      %cst_79 = arith.constant dense<0xFF800000> : vector<16xf32>
      %205 = vector.multi_reduction <maximumf>, %204, %cst_79 [1] : vector<16x16xf32> to vector<16xf32>
      %206 = vector.shape_cast %205 : vector<16xf32> to vector<16x1xf32>
      %207 = vector.broadcast %206 : vector<16x1xf32> to vector<16x16xf32>
      %208 = arith.subf %204, %207 : vector<16x16xf32>
      %209 = math.exp %208 : vector<16x16xf32>
      %cst_80 = arith.constant dense<0.000000e+00> : vector<16xf32>
      %210 = vector.multi_reduction <add>, %209, %cst_80 [1] : vector<16x16xf32> to vector<16xf32>
      %211 = vector.shape_cast %210 : vector<16xf32> to vector<16x1xf32>
      %212 = math.log %211 : vector<16x1xf32>
      %213 = arith.addf %212, %206 : vector<16x1xf32>
      %214 = tpu.iota {dimensions = array<i32: 1>} : vector<16x16xi32>
      %c0_81 = arith.constant 0 : index
      %c0_82 = arith.constant 0 : index
      %215 = vector.load %arg9[%c0_81, %c0_82] : memref<16x1xi32, #tpu.memory_space<vmem>>, vector<16x1xi32>
      %216 = vector.broadcast %215 : vector<16x1xi32> to vector<16x16xi32>
      %217 = arith.cmpi eq, %214, %216 : vector<16x16xi32>
      %218 = arith.extui %217 : vector<16x16xi1> to vector<16x16xi32>
      %219 = arith.sitofp %218 : vector<16x16xi32> to vector<16x16xf32>
      %220 = arith.mulf %219, %204 : vector<16x16xf32>
      %cst_83 = arith.constant dense<0.000000e+00> : vector<16xf32>
      %221 = vector.multi_reduction <add>, %220, %cst_83 [1] : vector<16x16xf32> to vector<16xf32>
      %222 = vector.shape_cast %221 : vector<16xf32> to vector<16x1xf32>
      %223 = arith.subf %213, %222 : vector<16x1xf32>
      %224 = vector.shape_cast %223 : vector<16x1xf32> to vector<1x16x1xf32>
      %cst_84 = arith.constant dense<0.000000e+00> : vector<1xf32>
      %225 = vector.multi_reduction <add>, %224, %cst_84 [1, 2] : vector<1x16x1xf32> to vector<1xf32>
      %226 = vector.shape_cast %225 : vector<1xf32> to vector<1x1x1xf32>
      %227 = vector.extract %226[0, 0, 0] : f32 from vector<1x1x1xf32>
      %228 = vector.broadcast %227 : f32 to vector<1x1xf32>
      %cst_85 = arith.constant 1.600000e+01 : f32
      %229 = vector.broadcast %cst_85 : f32 to vector<1x1xf32>
      %230 = arith.divf %228, %229 : vector<1x1xf32>
      %c0_86 = arith.constant 0 : index
      %c0_87 = arith.constant 0 : index
      %231 = vector.load %arg19[%c0_86, %c0_87] : memref<1x1xf32, #tpu.memory_space<vmem>>, vector<1x1xf32>
      tpu.vector_store %arg19[%c0_86, %c0_87], %230 {strides = array<i32>} : memref<1x1xf32, #tpu.memory_space<vmem>>, vector<1x1xf32>,
    } else {
    }
    return
  }
  func.func @transform_0(%arg0: i32) -> (i32, i32) {
    %c0_i32 = arith.constant 0 : i32
    %c0_i32_0 = arith.constant 0 : i32
    %c0_i32_1 = arith.constant 0 : i32
    return %c0_i32, %c0_i32_0 : i32, i32
  }
  func.func @transform_1(%arg0: i32) -> (i32, i32) {
    %c0_i32 = arith.constant 0 : i32
    %c0_i32_0 = arith.constant 0 : i32
    %c0_i32_1 = arith.constant 0 : i32
    return %c0_i32, %c0_i32_0 : i32, i32
  }
  func.func @transform_2(%arg0: i32) -> (i32, i32) {
    %c0_i32 = arith.constant 0 : i32
    %c0_i32_0 = arith.constant 0 : i32
    %c0_i32_1 = arith.constant 0 : i32
    return %c0_i32, %c0_i32_0 : i32, i32
  }
  func.func @transform_3(%arg0: i32) -> (i32, i32) {
    %c0_i32 = arith.constant 0 : i32
    %c0_i32_0 = arith.constant 0 : i32
    %c0_i32_1 = arith.constant 0 : i32
    return %c0_i32, %c0_i32_0 : i32, i32
  }
  func.func @transform_4(%arg0: i32) -> (i32, i32) {
    %c0_i32 = arith.constant 0 : i32
    %c0_i32_0 = arith.constant 0 : i32
    %c0_i32_1 = arith.constant 0 : i32
    return %c0_i32, %c0_i32_0 : i32, i32
  }
  func.func @transform_5(%arg0: i32) -> (i32, i32) {
    %c0_i32 = arith.constant 0 : i32
    %c0_i32_0 = arith.constant 0 : i32
    %c0_i32_1 = arith.constant 0 : i32
    return %c0_i32, %c0_i32_0 : i32, i32
  }
  func.func @transform_6(%arg0: i32) -> (i32, i32) {
    %c0_i32 = arith.constant 0 : i32
    %c0_i32_0 = arith.constant 0 : i32
    %c0_i32_1 = arith.constant 0 : i32
    return %c0_i32, %c0_i32_0 : i32, i32
  }
  func.func @transform_7(%arg0: i32) -> (i32, i32) {
    %c0_i32 = arith.constant 0 : i32
    %c0_i32_0 = arith.constant 0 : i32
    %c0_i32_1 = arith.constant 0 : i32
    return %c0_i32, %c0_i32_0 : i32, i32
  }
  func.func @transform_8(%arg0: i32) -> (i32, i32) {
    %c0_i32 = arith.constant 0 : i32
    %c0_i32_0 = arith.constant 0 : i32
    %c0_i32_1 = arith.constant 0 : i32
    return %c0_i32, %c0_i32_0 : i32, i32
  }
  func.func @transform_9(%arg0: i32) -> (i32, i32, i32) {
    %c0_i32 = arith.constant 0 : i32
    %c0_i32_0 = arith.constant 0 : i32
    %c0_i32_1 = arith.constant 0 : i32
    return %arg0, %c0_i32, %c0_i32_0 : i32, i32, i32
  }
  func.func @transform_10(%arg0: i32) -> (i32, i32, i32) {
    %c0_i32 = arith.constant 0 : i32
    %c0_i32_0 = arith.constant 0 : i32
    %c0_i32_1 = arith.constant 0 : i32
    return %arg0, %c0_i32, %c0_i32_0 : i32, i32, i32
  }
  func.func @transform_11(%arg0: i32) -> (i32, i32, i32) {
    %c0_i32 = arith.constant 0 : i32
    %c0_i32_0 = arith.constant 0 : i32
    %c0_i32_1 = arith.constant 0 : i32
    return %arg0, %c0_i32, %c0_i32_0 : i32, i32, i32
  }
  func.func @transform_12(%arg0: i32) -> (i32, i32, i32) {
    %c0_i32 = arith.constant 0 : i32
    %c0_i32_0 = arith.constant 0 : i32
    %c0_i32_1 = arith.constant 0 : i32
    return %arg0, %c0_i32, %c0_i32_0 : i32, i32, i32
  }
  func.func @transform_13(%arg0: i32) -> (i32, i32, i32) {
    %c0_i32 = arith.constant 0 : i32
    %c0_i32_0 = arith.constant 0 : i32
    %c0_i32_1 = arith.constant 0 : i32
    return %arg0, %c0_i32, %c0_i32_0 : i32, i32, i32
  }
  func.func @transform_14(%arg0: i32) -> (i32, i32, i32) {
    %c0_i32 = arith.constant 0 : i32
    %c0_i32_0 = arith.constant 0 : i32
    %c0_i32_1 = arith.constant 0 : i32
    return %arg0, %c0_i32, %c0_i32_0 : i32, i32, i32
  }
  func.func @transform_15(%arg0: i32) -> (i32, i32, i32) {
    %c0_i32 = arith.constant 0 : i32
    %c0_i32_0 = arith.constant 0 : i32
    %c0_i32_1 = arith.constant 0 : i32
    return %arg0, %c0_i32, %c0_i32_0 : i32, i32, i32
  }
  func.func @transform_16(%arg0: i32) -> (i32, i32, i32) {
    %c0_i32 = arith.constant 0 : i32
    %c0_i32_0 = arith.constant 0 : i32
    %c0_i32_1 = arith.constant 0 : i32
    return %arg0, %c0_i32, %c0_i32_0 : i32, i32, i32
  }
  func.func @transform_17(%arg0: i32) -> (i32, i32, i32) {
    %c0_i32 = arith.constant 0 : i32
    %c0_i32_0 = arith.constant 0 : i32
    %c0_i32_1 = arith.constant 0 : i32
    return %arg0, %c0_i32, %c0_i32_0 : i32, i32, i32
  }
  func.func @transform_18(%arg0: i32) -> (i32, i32) {
    %c0_i32 = arith.constant 0 : i32
    %c0_i32_0 = arith.constant 0 : i32
    %c0_i32_1 = arith.constant 0 : i32
    return %c0_i32, %c0_i32_0 : i32, i32
  }
}

</mosaic_0001>

<bundles_post_ra>
// kernel: tile.14
= control target key start
LH: loop header
LB: loop body
LE: loop exit
PB: predicated region body
PF: predicated region fallthrough
CT: control target
= control target key end

     0   :  { %vm4_vm0 = vcmask 1047556   ;;  %s209_s14 = smov 96   ;;  %s210_s19 = smov 112   ;;  %vm6_vm1 = vcmask 130048   ;;  %vm25_vm2 = vcmask 1048448   ;;  %vm46_vm3 = vcmask 917248   ;;  %s388_s0 = inlined_call_operand.vmem [shape: f32[16,8,16], index: 0, kind: input, shape index: {}]   ;;  %s389_s1 = inlined_call_operand.vmem [shape: f32[16,128], index: 1, kind: output, shape index: {}]  }
   0x1   :  { %v172_v0 = vld [vmem:[%s388_s0 + $0x6] ss:$8 sm:$0xf]   ;;  %v167_v3 = vld [vmem:[%s388_s0 + $0x7] ss:$8 sm:$0xf]  }
   0x2   :  { %v173_v1 = vld [vmem:[%s388_s0 + $0x6] ss:$8 sm:$0xf0]   ;;  %v168_v4 = vld [vmem:[%s388_s0 + $0x7] ss:$8 sm:$0xf0]  }
   0x3   :  { %v43_v2 = vsel %vm4_vm0, %v173_v1, %v172_v0  ;;  %v22_v5 = vsel %vm4_vm0, %v168_v4, %v167_v3  ;;  %v174_v6 = vld [vmem:[%s388_s0 + $0x46] ss:$8 sm:$0xf]   ;;  %v169_v9 = vld [vmem:[%s388_s0 + $0x47] ss:$8 sm:$0xf]  }
   0x4   :  { %44 = vrot.lane.b32.xlu1 %v43_v2, %s209_s14  ;;  %v175_v7 = vld [vmem:[%s388_s0 + $0x46] ss:$8 sm:$0xf0]   ;;  %23 = vrot.lane.b32.xlu0 %v22_v5, %s210_s19  ;;  %v170_v10 = vld [vmem:[%s388_s0 + $0x47] ss:$8 sm:$0xf0]  }
   0x5   :  { %v53_v8 = vsel %vm4_vm0, %v175_v7, %v174_v6  ;;  %v32_v11 = vsel %vm4_vm0, %v170_v10, %v169_v9  ;;  %v179_v12 = vld [vmem:[%s388_s0 + $0x45] ss:$8 sm:$0xf]   ;;  %v184_v18 = vld [vmem:[%s388_s0 + $0x44] ss:$8 sm:$0xf]  }
   0x6   :  { %v180_v13 = vld [vmem:[%s388_s0 + $0x45] ss:$8 sm:$0xf0]   ;;  %v185_v19 = vld [vmem:[%s388_s0 + $0x44] ss:$8 sm:$0xf0]  }
   0x7   :  { %v177_v14 = vld [vmem:[%s388_s0 + $0x5] ss:$8 sm:$0xf]   ;;  %v74_v16 = vsel %vm4_vm0, %v180_v13, %v179_v12  ;;  %v182_v20 = vld [vmem:[%s388_s0 + $0x4] ss:$8 sm:$0xf]   ;;  %v95_v22 = vsel %vm4_vm0, %v185_v19, %v184_v18 }
   0x8   :  { %54 = vrot.lane.b32.xlu1 %v53_v8, %s209_s14  ;;  %v178_v15 = vld [vmem:[%s388_s0 + $0x5] ss:$8 sm:$0xf0]   ;;  %33 = vrot.lane.b32.xlu0 %v32_v11, %s210_s19  ;;  %v183_v21 = vld [vmem:[%s388_s0 + $0x4] ss:$8 sm:$0xf0]  }
   0x9   :  { %v64_v17 = vsel %vm4_vm0, %v178_v15, %v177_v14  ;;  %s211_s11 = smov 80   ;;  %v85_v23 = vsel %vm4_vm0, %v183_v21, %v182_v20  ;;  %v189_v24 = vld [vmem:[%s388_s0 + $0x43] ss:$8 sm:$0xf]   ;;  %s212_s20 = smov 64   ;;  %vm67_vm4 = vcmask 786048  }
   0xa   :  { %v190_v25 = vld [vmem:[%s388_s0 + $0x43] ss:$8 sm:$0xf0]   ;;  %v194_v28 = vld [vmem:[%s388_s0 + $0x42] ss:$8 sm:$0xf]  }
   0xb   :  { %v187_v26 = vld [vmem:[%s388_s0 + $0x3] ss:$8 sm:$0xf]   ;;  %v195_v29 = vld [vmem:[%s388_s0 + $0x42] ss:$8 sm:$0xf0]   ;;  %v116_v30 = vsel %vm4_vm0, %v190_v25, %v189_v24 }
   0xc   :  { %75 = vrot.lane.b32.xlu1 %v74_v16, %s211_s11  ;;  %65 = vrot.lane.b32.xlu0 %v64_v17, %s211_s11  ;;  %v188_v27 = vld [vmem:[%s388_s0 + $0x3] ss:$8 sm:$0xf0]   ;;  %v192_v31 = vld [vmem:[%s388_s0 + $0x2] ss:$8 sm:$0xf]   ;;  %v137_v40 = vsel %vm4_vm0, %v195_v29, %v194_v28 }
   0xd   :  { %v2_v32 = vld [vmem:[%s388_s0] ss:$8 sm:$0xf]   ;;  %v106_v33 = vsel %vm4_vm0, %v188_v27, %v187_v26  ;;  %v193_v36 = vld [vmem:[%s388_s0 + $0x2] ss:$8 sm:$0xf0]  }
   0xe   :  { %v3_v34 = vld [vmem:[%s388_s0] ss:$8 sm:$0xf0]   ;;  %s213_s8 = smov 48   ;;  %v127_v41 = vsel %vm4_vm0, %v193_v36, %v192_v31  ;;  %s215_s21 = smov 16   ;;  %vm88_vm5 = vcmask 654848  }
   0xf   :  { %v164_v35 = vld [vmem:[%s388_s0 + $0x40] ss:$8 sm:$0xf]   ;;  %v5_v37 = vsel %vm4_vm0, %v3_v34, %v2_v32  ;;  %v199_v42 = vld [vmem:[%s388_s0 + $0x41] ss:$8 sm:$0xf]  }
  0x10   :  { %96 = vrot.lane.b32.xlu1 %v95_v22, %s212_s20  ;;  %86 = vrot.lane.b32.xlu0 %v85_v23, %s212_s20  ;;  %v165_v38 = vld [vmem:[%s388_s0 + $0x40] ss:$8 sm:$0xf0]   ;;  %7 = vst.msk [vmem:[%s389_s1] sm:$0xff] %vm6_vm1, %v5_v37   ;;  %vm109_vm6 = vcmask 523648   ;;  %vm130_vm7 = vcmask 392448  }
  0x11   :  { %v13_v39 = vsel %vm4_vm0, %v165_v38, %v164_v35  ;;  %v200_v43 = vld [vmem:[%s388_s0 + $0x41] ss:$8 sm:$0xf0]   ;;  %vm151_vm8 = vcmask 261248  }
  0x12   :  { %166 = vst.msk [vmem:[%s389_s1 + $0x8] sm:$0xff] %vm6_vm1, %v13_v39   ;;  %v197_v44 = vld [vmem:[%s388_s0 + $0x1] ss:$8 sm:$0xf]   ;;  %v158_v46 = vsel %vm4_vm0, %v200_v43, %v199_v42 }
  0x13   :  { %v198_v45 = vld [vmem:[%s388_s0 + $0x1] ss:$8 sm:$0xf0]   ;;  %s214_s0 = smov 32  }
  0x14   :  { %117 = vrot.lane.b32.xlu1 %v116_v30, %s213_s8  ;;  %107 = vrot.lane.b32.xlu0 %v106_v33, %s213_s8  ;;  %v148_v47 = vsel %vm4_vm0, %v198_v45, %v197_v44 }
  0x18   :  { %138 = vrot.lane.b32.xlu1 %v137_v40, %s214_s0  ;;  %128 = vrot.lane.b32.xlu0 %v127_v41, %s214_s0 }
  0x1c   :  { %159 = vrot.lane.b32.xlu1 %v158_v46, %s215_s21  ;;  %149 = vrot.lane.b32.xlu0 %v148_v47, %s215_s21 }
  0x76   :  { %v45_v48 = vpop.permute.xlu1 %44   ;;  %v24_v49 = vpop.permute.xlu0 %23  }
  0x77   :  { %26 = vst.msk [vmem:[%s389_s1] sm:$0xff] %vm25_vm2, %v24_v49  }
  0x78   :  { %47 = vst.msk [vmem:[%s389_s1] sm:$0xff] %vm46_vm3, %v45_v48  }
  0x7a   :  { %v55_v50 = vpop.permute.xlu1 %54   ;;  %v34_v51 = vpop.permute.xlu0 %33  }
  0x7b   :  { %171 = vst.msk [vmem:[%s389_s1 + $0x8] sm:$0xff] %vm25_vm2, %v34_v51  }
  0x7c   :  { %176 = vst.msk [vmem:[%s389_s1 + $0x8] sm:$0xff] %vm46_vm3, %v55_v50  }
  0x7e   :  { %v76_v52 = vpop.permute.xlu1 %75   ;;  %v66_v53 = vpop.permute.xlu0 %65  }
  0x7f   :  { %181 = vst.msk [vmem:[%s389_s1 + $0x8] sm:$0xff] %vm67_vm4, %v76_v52   ;;  %68 = vst.msk [vmem:[%s389_s1] sm:$0xff] %vm67_vm4, %v66_v53  }
  0x82   :  { %v97_v54 = vpop.permute.xlu1 %96   ;;  %v87_v55 = vpop.permute.xlu0 %86  }
  0x83   :  { %186 = vst.msk [vmem:[%s389_s1 + $0x8] sm:$0xff] %vm88_vm5, %v97_v54   ;;  %89 = vst.msk [vmem:[%s389_s1] sm:$0xff] %vm88_vm5, %v87_v55  }
  0x86   :  { %v118_v56 = vpop.permute.xlu1 %117   ;;  %v108_v57 = vpop.permute.xlu0 %107  }
  0x87   :  { %191 = vst.msk [vmem:[%s389_s1 + $0x8] sm:$0xff] %vm109_vm6, %v118_v56   ;;  %110 = vst.msk [vmem:[%s389_s1] sm:$0xff] %vm109_vm6, %v108_v57  }
  0x8a   :  { %v139_v58 = vpop.permute.xlu1 %138   ;;  %v129_v59 = vpop.permute.xlu0 %128  }
  0x8b   :  { %196 = vst.msk [vmem:[%s389_s1 + $0x8] sm:$0xff] %vm130_vm7, %v139_v58   ;;  %131 = vst.msk [vmem:[%s389_s1] sm:$0xff] %vm130_vm7, %v129_v59  }
  0x8e   :  { %v160_v60 = vpop.permute.xlu1 %159   ;;  %v150_v61 = vpop.permute.xlu0 %149  }
  0x8f   :  { %201 = vst.msk [vmem:[%s389_s1 + $0x8] sm:$0xff] %vm151_vm8, %v160_v60   ;;  %152 = vst.msk [vmem:[%s389_s1] sm:$0xff] %vm151_vm8, %v150_v61  }

// kernel: causal_decoder_forward.1
= control target key start
LH: loop header
LB: loop body
LE: loop exit
PB: predicated region body
PF: predicated region fallthrough
CT: control target
= control target key end

     0   :  { %s6393_s0 = inlined_call_operand.vmem [shape: f32[16,64], index: 0, kind: input, shape index: {}]   ;;  %s6394_s1 = inlined_call_operand.vmem [shape: f32[8,64], index: 1, kind: input, shape index: {}]   ;;  %s6395_s2 = inlined_call_operand.vmem [shape: f32[16,128], index: 2, kind: input, shape index: {}]   ;;  %s6396_s3 = inlined_call_operand.vmem [shape: f32[16,64], index: 3, kind: input, shape index: {}]   ;;  %s6397_s4 = inlined_call_operand.vmem [shape: f32[128,64], index: 4, kind: input, shape index: {}]   ;;  %s6398_s5 = inlined_call_operand.vmem [shape: f32[64,64], index: 5, kind: input, shape index: {}]   ;;  %s6399_s6 = inlined_call_operand.vmem [shape: f32[64,16], index: 6, kind: input, shape index: {}]   ;;  %s6400_s7 = inlined_call_operand.vmem [shape: f32[1,16], index: 7, kind: input, shape index: {}]   ;;  %s6401_s8 = inlined_call_operand.vmem [shape: s32[16,1], index: 8, kind: input, shape index: {}]   ;;  %s6402_s9 = inlined_call_operand.vmem [shape: bf16[6,64,192], index: 9, kind: input, shape index: {}]   ;;  %s6403_s10 = inlined_call_operand.vmem [shape: bf16[6,64,64], index: 10, kind: input, shape index: {}]   ;;  %s6404_s11 = inlined_call_operand.vmem [shape: bf16[6,64,64], index: 11, kind: input, shape index: {}]   ;;  %s6405_s12 = inlined_call_operand.vmem [shape: bf16[6,64,128], index: 12, kind: input, shape index: {}]   ;;  %s6406_s13 = inlined_call_operand.vmem [shape: bf16[6,64,64], index: 13, kind: input, shape index: {}]   ;;  %s6407_s14 = inlined_call_operand.vmem [shape: bf16[6,64,2048], index: 14, kind: input, shape index: {}]   ;;  %s6408_s15 = inlined_call_operand.vmem [shape: bf16[6,2048,64], index: 15, kind: input, shape index: {}]   ;;  %s6409_s16 = inlined_call_operand.vmem [shape: f32[6,16,64], index: 16, kind: input, shape index: {}]   ;;  %s6410_s17 = inlined_call_operand.vmem [shape: f32[6,1,2048], index: 17, kind: input, shape index: {}]   ;;  %s6411_s18 = inlined_call_operand.hbm [shape: f32[1,1], index: 18, kind: output, shape index: {}]  }
   0x1   :  { %6417 = sst [smem:[#allocation7_spill]] %s6393_s0 }
   0x2   :  { %6418 = sst [smem:[#allocation8_spill]] %s6394_s1 }
   0x3   :  { %6419 = sst [smem:[#allocation9_spill]] %s6395_s2 }
   0x4   :  { %6420 = sst [smem:[#allocation10_spill]] %s6400_s7 }
   0x5   :  { %6421 = sst [smem:[#allocation11_spill]] %s6401_s8 }
   0x6   :  { %6422 = sst [smem:[#allocation12_spill]] %s6402_s9 }
   0x7   :  { %6423 = sst [smem:[#allocation13_spill]] %s6403_s10 }
   0x8   :  { %6424 = sst [smem:[#allocation14_spill]] %s6404_s11 }
   0x9   :  { %6425 = sst [smem:[#allocation15_spill]] %s6405_s12 }
   0xa   :  { %6426 = sst [smem:[#allocation16_spill]] %s6411_s18 }
   0xb   :  { %23 = vsyncpa [#allocation4], 0  ;;  %s5481_s27 = smov 0  }
   0xc LB: > { %6427 = sst [smem:[#allocation6_spill]] %s5377_s27  ;;  %s5487_s28 = sadd.s32 4294967295, %s5377_s27   ;;  %s5377_s27 = sphi %s5481_s27, %s29_s27  }
   0xd   : > { %p4423_p0 = scmp.ge.s32.totalorder %s5377_s27, 1  ;;  %p587_p1 = scmp.lt.s32.totalorder %s5377_s27, 7 }
   0xf   : > { %p588_p2 = pnand %p4423_p0, %p587_p1 }
  0x10   : > { %p675_p3 = scmp.lt.s32.totalorder (!%p588_p2), %s5487_s28, 5  ;;  %s6428_s9 = sld [smem:[#allocation12_spill]] (!%p588_p2) }
  0x11   : > { %591 = sbr.rel (%p588_p2) target bundleno = 4636 (0x121c), region = 92  ;;  %s6429_s10 = sld [smem:[#allocation13_spill]] (!%p588_p2) }
  0x12   : > { %s6430_s11 = sld [smem:[#allocation14_spill]] (!%p588_p2)  ;;  %s6431_s12 = sld [smem:[#allocation15_spill]] (!%p588_p2) }
  0x13   : > { %p4441_p4 = scmp.ne.s32.totalorder (!%p588_p2), %s5487_s28, 0 }
  0x18   : > { %s676_s29 = scalar_select %p675_p3, %s5487_s28, 5 }
  0x19   : > { %s6432_s21 = sld [smem:[#allocation7_spill]] (!%p4441_p4)  ;;  %vm726_vm0 = vcmask (!%p4441_p4), 523264  }
  0x1a   : > { %s4685_s30 = sshll.u32 %s676_s29, 6  ;;  %s4686_s0 = sshll.u32 %s676_s29, 5 }
  0x1b   : > { %s5496_s20 = scalar_lea.vmem %s6428_s9, %s4685_s30  ;;  %s5501_s2 = scalar_lea.vmem %s6429_s10, %s4686_s0 }
  0x1c   : > { %s5506_s25 = scalar_lea.vmem %s6430_s11, %s4686_s0  ;;  %s5511_s18 = scalar_lea.vmem %s6431_s12, %s4686_s0 }
  0x1d   : > { %s5516_s30 = scalar_lea.vmem %s6406_s13, %s4686_s0  ;;  %s4690_s19 = sshll.u32 %s676_s29, 9 }
  0x1e   : > { %s5521_s22 = scalar_lea.vmem %s6407_s14, %s4690_s19  ;;  %s4691_s9 = sshll.u32 %s676_s29, 10 }
  0x1f   : > { %s5526_s10 = scalar_lea.vmem %s6408_s15, %s4691_s9  ;;  %s4692_s27 = sshll.u32 %s676_s29, 4  ;;  %v724_v0 = vld [vmem:[%s6432_s21] sm:$0xff] (!%p4441_p4)  ;;  %v725_v1 = vld [vmem:[%s6432_s21 + $0x8] sm:$0xff] (!%p4441_p4) }
  0x20   : > { %s5531_s12 = scalar_lea.vmem %s6409_s16, %s4692_s27  ;;  %s5536_s0 = scalar_lea.vmem %s6410_s17, %s4692_s27  ;;  %727 = vst.msk [vmem:[#allocation2] sm:$0xff] (!%p4441_p4), %vm726_vm0, %v724_v0  ;;  %728 = vst.msk [vmem:[#allocation2 + $0x8] sm:$0xff] (!%p4441_p4), %vm726_vm0, %v725_v1 }
  0x21   : > { %723 = sbr.rel (%p4441_p4) target bundleno = 40 (0x28), region = 96 }
  0x28 PF: > { %v5143_v2 = vld [vmem:[%s5496_s20 + $0x4] ss:$8 sps:$4 sm:$0xff]   ;;  %v830_v3 = vlaneseq  ;;  %v5145_v4 = vld [vmem:[%s5496_s20] ss:$8 sps:$4 sm:$0xff]   ;;  %v5379_v5 = vmov 0   ;;  %s5380_s24 = smov 64  }
  0x29   : > { %819 = vmatprep.mubr.bf16.mxu0 %v5379_v5  ;;  %787 = vmatprep.subr.bf16.mxu0 %v5143_v2  ;;  %v5146_v6 = vld [vmem:[%s5496_s20 + $0x14] ss:$8 sps:$4 sm:$0xff]   ;;  %v5148_v8 = vld [vmem:[%s5496_s20 + $0x10] ss:$8 sps:$4 sm:$0xff]   ;;  %v5149_v9 = vld [vmem:[%s5496_s20 + $0x24] ss:$8 sps:$4 sm:$0xff]  }
  0x2a   : > { %v5550_v7 = vshrl.u32 %v830_v3, 7  ;;  %788 = vmatpush1.bf16.msra.mxu0 %v5145_v4  ;;  %v5558_v11 = vld [vmem:[%s5531_s12] sm:$0xff]  ;;  %v5563_v12 = vld [vmem:[%s6397_s4 + $0x8] sm:$0xff]  ;;  %v5152_v15 = vld [vmem:[%s5496_s20 + $0x34] ss:$8 sps:$4 sm:$0xff]   ;;  %vm783_vm1 = vcmask 523264  }
  0x2b   : > { %789 = vmatprep.subr.bf16.mxu0 %v5146_v6  ;;  %v5151_v13 = vld [vmem:[%s5496_s20 + $0x20] ss:$8 sps:$4 sm:$0xff]   ;;  %888 = vrot.lane.b32.xlu1 %v5563_v12, %s5380_s24  ;;  %v5574_v16 = vld [vmem:[%s6397_s4 + $0x10] sm:$0xff]  ;;  %v5593_v22 = vld [vmem:[%s6397_s4 + $0x18] sm:$0xff]  ;;  %v5381_v35 = vmov 0.0   ;;  %vm5382_vm2 = vmmov 0  }
  0x2c   : > { %v5555_v10 = vsub.s32 1, %v5550_v7  ;;  %v5154_v17 = vld [vmem:[%s5496_s20 + $0x30] ss:$8 sps:$4 sm:$0xff]   ;;  %v729_v18 = vld [vmem:[#allocation2] sm:$0xff]  ;;  %v730_v20 = vld [vmem:[#allocation2 + $0x8] sm:$0xff]  ;;  %4941 = vmatprep.subr.bf16.mxu1 %v5381_v35  ;;  %v5682_v50 = vsub.s32 0, %v5550_v7  ;;  %4957 = vmatprep.mubr.msk.bf16.mxu1 %vm5382_vm2, %v5381_v35 }
  0x2d   : > { %v5581_v19 = vld [vmem:[%s6397_s4] sm:$0xff]  ;;  %v734_v23 = vpack.c.bf16 %v730_v20, %v729_v18  ;;  %v5600_v24 = vld [vmem:[%s6397_s4 + $0x30] sm:$0xff]  ;;  %v5607_v25 = vld [vmem:[%s6397_s4 + $0x28] sm:$0xff]  ;;  %v5685_v51 = vsub.s32 2, %v5550_v7  ;;  %s6433_s23 = sld [smem:[#allocation9_spill]]  ;;  %s6434_s8 = sld [smem:[#allocation8_spill]] }
  0x2e   : > { %790 = vmatpush1.bf16.msra.mxu0 %v5148_v8  ;;  %v839_v14 = vrot.slane %v5558_v11, %v5555_v10  ;;  %v5588_v21 = vld [vmem:[%s6397_s4 + $0x20] sm:$0xff]  ;;  %v5622_v27 = vld [vmem:[%s6397_s4 + $0x38] sm:$0xff]  ;;  %v5629_v28 = vld [vmem:[%s6397_s4 + $0x50] sm:$0xff]  ;;  %v833_v53 = vrot.slane %v5558_v11, %v5682_v50  ;;  %p4675_p5 = scmp.ne.s32.totalorder %s5487_s28, 5 }
  0x2f   : > { %791 = vmatprep.subr.bf16.mxu0 %v5149_v9  ;;  %890 = vrot.lane.b32.xlu1 %v5574_v16, %s5380_s24  ;;  %v5615_v26 = vld [vmem:[%s6397_s4 + $0x40] sm:$0xff]  ;;  %v5636_v29 = vld [vmem:[%s6397_s4 + $0x48] sm:$0xff]  ;;  %v5650_v31 = vld [vmem:[%s6397_s4 + $0x58] sm:$0xff]  ;;  %v849_v54 = vrot.slane %v5558_v11, %v5685_v51  ;;  %s6435_s9 = sld [smem:[#allocation11_spill]] (!%p4675_p5)  ;;  %vm4209_vm3 = vcmask (!%p4675_p5), 130048   ;;  %vm4260_vm6 = vcmask (!%p4675_p5), 7168  }
  0x30   : > { %841 = vrot.lane.b32.xlu0 %v839_v14, %s5380_s24  ;;  %v5643_v30 = vld [vmem:[%s6397_s4 + $0x60] sm:$0xff]  ;;  %v5657_v32 = vld [vmem:[%s6397_s4 + $0x70] sm:$0xff]  ;;  %v5664_v33 = vld [vmem:[%s6397_s4 + $0x68] sm:$0xff]  ;;  %vm4276_vm7 = vcmask (!%p4675_p5), 0  }
  0x31   : > { %v5673_v34 = vld [vmem:[%s6397_s4 + $0x78] sm:$0xff] }
  0x32   : > { %792 = vmatpush1.bf16.msra.mxu0 %v5151_v13 }
  0x33   : > { %793 = vmatprep.subr.bf16.mxu0 %v5152_v15  ;;  %894 = vrot.lane.b32.xlu1 %v5588_v21, %s5380_s24 }
  0x34   : > { %886 = vrot.lane.b32.xlu0 %v5581_v19, %s5380_s24 }
  0x36   : > { %794 = vmatpush1.bf16.msra.mxu0 %v5154_v17 }
  0x37   : > { %898 = vrot.lane.b32.xlu1 %v5600_v24, %s5380_s24  ;;  %4961 = vmatprep.subr.bf16.mxu0 %v5381_v35 }
  0x38   : > { %892 = vrot.lane.b32.xlu0 %v5593_v22, %s5380_s24 }
  0x39   : > { %4450 = vmatmul.mubr.msk.bf16.vlgmr.msra.gmra.mrb[0].mxu0 %vm783_vm1, %v734_v23 }
  0x3a   : > { %4977 = vmatprep.mubr.msk.bf16.mxu0 %vm5382_vm2, %v5381_v35 }
  0x3b   : > { %902 = vrot.lane.b32.xlu1 %v5615_v26, %s5380_s24 }
  0x3c   : > { %896 = vrot.lane.b32.xlu0 %v5607_v25, %s5380_s24 }
  0x3f   : > { %906 = vrot.lane.b32.xlu1 %v5629_v28, %s5380_s24 }
  0x40   : > { %900 = vrot.lane.b32.xlu0 %v5622_v27, %s5380_s24 }
  0x43   : > { %910 = vrot.lane.b32.xlu1 %v5643_v30, %s5380_s24 }
  0x44   : > { %904 = vrot.lane.b32.xlu0 %v5636_v29, %s5380_s24 }
  0x47   : > { %914 = vrot.lane.b32.xlu1 %v5657_v32, %s5380_s24 }
  0x48   : > { %908 = vrot.lane.b32.xlu0 %v5650_v31, %s5380_s24 }
  0x4c   : > { %912 = vrot.lane.b32.xlu0 %v5664_v33, %s5380_s24 }
  0x50   : > { %916 = vrot.lane.b32.xlu0 %v5673_v34, %s5380_s24 }
  0x9d   : > { %v889_v37 = vpop.permute.xlu1 %888 }
  0xa1   : > { %v891_v39 = vpop.permute.xlu1 %890 }
  0xa2   : > { %v842_v36 = vpop.permute.xlu0 %841 }
  0xa5   : > { %v895_v41 = vpop.permute.xlu1 %894 }
  0xa6   : > { %v887_v38 = vpop.permute.xlu0 %886 }
  0xa9   : > { %v899_v43 = vpop.permute.xlu1 %898 }
  0xaa   : > { %v893_v40 = vpop.permute.xlu0 %892 }
  0xad   : > { %v903_v45 = vpop.permute.xlu1 %902 }
  0xae   : > { %v897_v42 = vpop.permute.xlu0 %896 }
  0xb1   : > { %v907_v47 = vpop.permute.xlu1 %906 }
  0xb2   : > { %v901_v44 = vpop.permute.xlu0 %900 }
  0xb5   : > { %v911_v49 = vpop.permute.xlu1 %910 }
  0xb6   : > { %v905_v46 = vpop.permute.xlu0 %904 }
  0xb9   : > { %v915_v56 = vpop.permute.xlu1 %914 }
  0xba   : > { %v909_v48 = vpop.permute.xlu0 %908 }
  0xbe   : > { %v913_v52 = vpop.permute.xlu0 %912 }
  0xc2   : > { %v917_v62 = vpop.permute.xlu0 %916 }
 0x10c   : > { %v821_v55 = vpop.f32.mrb[0].mxu0 }
 0x10d   : > { %v844_v57 = vadd.f32 %v842_v36, %v821_v55  ;;  %v823_v58 = vpop.f32.mrb[1].mxu0  ;;  %v5691_v59 = vadd.f32 %v833_v53, %v821_v55 }
 0x10e   : > { %v850_v60 = vadd.f32 %v849_v54, %v823_v58  ;;  %v825_v61 = vpop.f32.mrb[2].mxu0 }
 0x10f   : > { %v5693_v63 = vmul.f32 %v915_v56, %v844_v57  ;;  %v5695_v0 = vadd.f32 %v833_v53, %v825_v61  ;;  %v845_v1 = vadd.f32 %v842_v36, %v825_v61  ;;  %v827_v2 = vpop.f32.mrb[3].mxu0  ;;  %v936_v4 = vmul.f32 %v891_v39, %v844_v57 }
 0x110   : > { %v851_v6 = vadd.f32 %v849_v54, %v827_v2  ;;  %v934_v8 = vmul.f32 %v887_v38, %v844_v57  ;;  %v958_v9 = vmul.f32 %v5581_v19, %v850_v60  ;;  %v940_v11 = vmul.f32 %v899_v43, %v844_v57 }
 0x111   : > { %v982_v13 = vpack.c.bf16 %v5695_v0, %v5691_v59  ;;  %v949_v14 = vmul.f32 %v917_v62, %v845_v1  ;;  %v937_v15 = vmul.f32 %v893_v40, %v845_v1  ;;  %v935_v17 = vmul.f32 %v889_v37, %v845_v1 }
 0x112   : > { %v959_v18 = vmul.f32 %v5563_v12, %v851_v6  ;;  %v941_v20 = vmul.f32 %v901_v44, %v845_v1  ;;  %v938_v23 = vmul.f32 %v895_v41, %v844_v57  ;;  %v939_v53 = vmul.f32 %v897_v42, %v845_v1 }
 0x113   : > { %v957_v36 = vpack.c.bf16 %v949_v14, %v5693_v63  ;;  %v951_v55 = vpack.c.bf16 %v937_v15, %v936_v4  ;;  %v950_v39 = vpack.c.bf16 %v935_v17, %v934_v8  ;;  %v960_v38 = vmul.f32 %v5574_v16, %v850_v60 }
 0x114   : > { %v974_v54 = vpack.c.bf16 %v959_v18, %v958_v9  ;;  %v953_v56 = vpack.c.bf16 %v941_v20, %v940_v11  ;;  %v952_v43 = vpack.c.bf16 %v939_v53, %v938_v23  ;;  %v961_v58 = vmul.f32 %v5593_v22, %v851_v6 }
 0x115   : > { %993 = vrot.lane.b32.xlu0 %v951_v55, %s5380_s24  ;;  %991 = vrot.lane.b32.xlu1 %v950_v39, %s5380_s24  ;;  %v944_v37 = vmul.f32 %v907_v47, %v844_v57  ;;  %v945_v40 = vmul.f32 %v909_v48, %v845_v1  ;;  %v942_v44 = vmul.f32 %v903_v45, %v844_v57 }
 0x116   : > { %4962 = vmatpush3.bf16.msra.mxu0 %v974_v54  ;;  %v975_v41 = vpack.c.bf16 %v961_v58, %v960_v38  ;;  %v943_v42 = vmul.f32 %v905_v46, %v845_v1  ;;  %v962_v61 = vmul.f32 %v5588_v21, %v850_v60  ;;  %v963_v62 = vmul.f32 %v5607_v25, %v851_v6 }
 0x117   : > { %4963 = vmatprep.subr.bf16.mxu0 %v5381_v35  ;;  %v955_v63 = vpack.c.bf16 %v945_v40, %v944_v37  ;;  %v946_v2 = vmul.f32 %v911_v49, %v844_v57  ;;  %v947_v4 = vmul.f32 %v913_v52, %v845_v1  ;;  %v964_v8 = vmul.f32 %v5600_v24, %v850_v60 }
 0x118   : > { %v954_v9 = vpack.c.bf16 %v943_v42, %v942_v44  ;;  %v976_v11 = vpack.c.bf16 %v963_v62, %v962_v61  ;;  %v965_v47 = vmul.f32 %v5622_v27, %v851_v6  ;;  %v966_v45 = vmul.f32 %v5615_v26, %v850_v60 }
 0x119   : > { %997 = vrot.lane.b32.xlu0 %v953_v56, %s5380_s24  ;;  %995 = vrot.lane.b32.xlu1 %v952_v43, %s5380_s24  ;;  %v956_v46 = vpack.c.bf16 %v947_v4, %v946_v2  ;;  %v967_v48 = vmul.f32 %v5636_v29, %v851_v6  ;;  %v968_v14 = vmul.f32 %v5629_v28, %v850_v60 }
 0x11a   : > { %4964 = vmatpush3.bf16.msra.mxu0 %v975_v41  ;;  %v977_v49 = vpack.c.bf16 %v965_v47, %v964_v8  ;;  %v969_v52 = vmul.f32 %v5650_v31, %v851_v6  ;;  %v970_v57 = vmul.f32 %v5643_v30, %v850_v60  ;;  %v971_v1 = vmul.f32 %v5664_v33, %v851_v6 }
 0x11b   : > { %4965 = vmatprep.subr.bf16.mxu0 %v5381_v35  ;;  %v978_v15 = vpack.c.bf16 %v967_v48, %v966_v45  ;;  %v972_v17 = vmul.f32 %v5657_v32, %v850_v60  ;;  %v973_v18 = vmul.f32 %v5673_v34, %v851_v6 }
 0x11c   : > { %v979_v20 = vpack.c.bf16 %v969_v52, %v968_v14  ;;  %v980_v23 = vpack.c.bf16 %v971_v1, %v970_v57  ;;  %v1131_v1 = vpack.c.bf16 %v5563_v12, %v5581_v19  ;;  %v1134_v12 = vpack.c.bf16 %v5622_v27, %v5600_v24  ;;  %v5155_v24 = vld [vmem:[%s5501_s2] sm:$0xff]   ;;  %v5158_v27 = vld [vmem:[%s5501_s2 + $0x18] sm:$0xff]  }
 0x11d   : > { %1001 = vrot.lane.b32.xlu0 %v955_v63, %s5380_s24  ;;  %999 = vrot.lane.b32.xlu1 %v954_v9, %s5380_s24  ;;  %v981_v53 = vpack.c.bf16 %v973_v18, %v972_v17  ;;  %v852_v63 = vld [vmem:[%s6433_s23] sm:$0xff]  ;;  %v853_v9 = vld [vmem:[%s6433_s23 + $0x8] sm:$0xff]  ;;  %v1132_v17 = vpack.c.bf16 %v5593_v22, %v5574_v16  ;;  %v1133_v18 = vpack.c.bf16 %v5607_v25, %v5588_v21 }
 0x11e   : > { %4966 = vmatpush3.bf16.msra.mxu0 %v976_v11  ;;  %v1135_v16 = vpack.c.bf16 %v5636_v29, %v5615_v26  ;;  %v1136_v19 = vpack.c.bf16 %v5650_v31, %v5629_v28  ;;  %v1137_v21 = vpack.c.bf16 %v5664_v33, %v5643_v30  ;;  %v1138_v22 = vpack.c.bf16 %v5673_v34, %v5657_v32  ;;  %v5156_v25 = vld [vmem:[%s5501_s2 + $0x8] sm:$0xff]   ;;  %v5157_v26 = vld [vmem:[%s5501_s2 + $0x10] sm:$0xff]  }
 0x11f   : > { %4967 = vmatprep.subr.bf16.mxu0 %v5381_v35 }
 0x121   : > { %1005 = vrot.lane.b32.xlu0 %v957_v36, %s5380_s24  ;;  %1003 = vrot.lane.b32.xlu1 %v956_v46, %s5380_s24 }
 0x122   : > { %4968 = vmatpush3.bf16.msra.mxu0 %v977_v49 }
 0x123   : > { %4969 = vmatprep.subr.bf16.mxu0 %v5381_v35 }
 0x126   : > { %4970 = vmatpush3.bf16.msra.mxu0 %v978_v15 }
 0x127   : > { %4971 = vmatprep.subr.bf16.mxu0 %v5381_v35 }
 0x12a   : > { %4972 = vmatpush3.bf16.msra.mxu0 %v979_v20 }
 0x12b   : > { %4973 = vmatprep.subr.bf16.mxu0 %v5381_v35 }
 0x12e   : > { %4974 = vmatpush3.bf16.msra.mxu0 %v980_v23 }
 0x12f   : > { %4975 = vmatprep.subr.bf16.mxu0 %v5381_v35 }
 0x132   : > { %4976 = vmatpush3.bf16.msra.mxu0 %v981_v53 }
 0x133   : > { %4981 = vmatprep.subr.bf16.mxu0 %v5381_v35 }
 0x187   : > { %v992_v60 = vpop.permute.xlu1 %991  ;;  %v994_v36 = vpop.permute.xlu0 %993 }
 0x188   : > { %v1011_v6 = vsel %vm783_vm1, %v992_v60, 0  ;;  %v1014_v55 = vsel %vm783_vm1, %v994_v36, 0 }
 0x189   : > { %4942 = vmatpush3.bf16.xpose.msra.mxu1 %v1011_v6 }
 0x18a   : > { %4943 = vmatprep.subr.bf16.mxu1 %v5381_v35 }
 0x18b   : > { %v996_v39 = vpop.permute.xlu1 %995  ;;  %v998_v54 = vpop.permute.xlu0 %997 }
 0x18c   : > { %v1017_v38 = vsel %vm783_vm1, %v996_v39, 0  ;;  %v1020_v56 = vsel %vm783_vm1, %v998_v54, 0  ;;  %v5807_v39 = vld [vmem:[%s5531_s12] sm:$0xff] }
 0x18f   : > { %v1000_v43 = vpop.permute.xlu1 %999  ;;  %v1002_v37 = vpop.permute.xlu0 %1001 }
 0x190   : > { %v1023_v58 = vsel %vm783_vm1, %v1000_v43, 0  ;;  %v1026_v40 = vsel %vm783_vm1, %v1002_v37, 0 }
 0x191   : > { %4944 = vmatpush3.bf16.xpose.msra.mxu1 %v1014_v55  ;;  %v5804_v55 = vsub.s32 3, %v5550_v7 }
 0x192   : > { %4945 = vmatprep.subr.bf16.mxu1 %v5381_v35 }
 0x193   : > { %v1004_v44 = vpop.permute.xlu1 %1003  ;;  %v1006_v42 = vpop.permute.xlu0 %1005 }
 0x194   : > { %v1029_v41 = vsel %vm783_vm1, %v1004_v44, 0  ;;  %v1032_v61 = vsel %vm783_vm1, %v1006_v42, 0  ;;  %v5328_v44 = vld [vmem:[#allocation2] sm:$0xff] }
 0x199   : > { %4946 = vmatpush3.bf16.xpose.msra.mxu1 %v1017_v38  ;;  %v1196_v38 = vrot.slane %v5807_v39, %v5804_v55 }
 0x19a   : > { %4947 = vmatprep.subr.bf16.mxu1 %v5381_v35 }
 0x1a1   : > { %4948 = vmatpush3.bf16.xpose.msra.mxu1 %v1020_v56 }
 0x1a2   : > { %4949 = vmatprep.subr.bf16.mxu1 %v5381_v35 }
 0x1a9   : > { %4950 = vmatpush3.bf16.xpose.msra.mxu1 %v1023_v58 }
 0x1aa   : > { %4951 = vmatprep.subr.bf16.mxu1 %v5381_v35 }
 0x1b1   : > { %4952 = vmatpush3.bf16.xpose.msra.mxu1 %v1026_v40 }
 0x1b2   : > { %4953 = vmatprep.subr.bf16.mxu1 %v5381_v35 }
 0x1b9   : > { %4954 = vmatpush3.bf16.xpose.msra.mxu1 %v1029_v41 }
 0x1ba   : > { %4955 = vmatprep.subr.bf16.mxu1 %v5381_v35 }
 0x1c1   : > { %4956 = vmatpush3.bf16.xpose.msra.mxu1 %v1032_v61  ;;  %v5329_v61 = vld [vmem:[#allocation2 + $0x8] sm:$0xff] }
 0x1c2   : > { %5001 = vmatprep.subr.bf16.mxu1 %v5381_v35 }
 0x1c8   : > { %4958 = vmatmul.mubr.msk.bf16.vlgmr.msra.gmra.mrb[0].mxu1 %vm783_vm1, %v982_v13 }
 0x1c9   : > { %5009 = vmatprep.mubr.msk.bf16.mxu1 %vm5382_vm2, %v5381_v35  ;;  %5002 = vmatpush3.bf16.msra.mxu1 %v5155_v24  ;;  %v5872_v24 = vld [vmem:[%s6398_s5 + $0x20] sm:$0xff] }
 0x1ca   : > { %5003 = vmatprep.subr.bf16.mxu1 %v5381_v35 }
 0x1cd   : > { %5004 = vmatpush3.bf16.msra.mxu1 %v5156_v25 }
 0x1ce   : > { %5005 = vmatprep.subr.bf16.mxu1 %v5381_v35 }
 0x1d1   : > { %5006 = vmatpush3.bf16.msra.mxu1 %v5157_v26  ;;  %v5879_v26 = vld [vmem:[%s6398_s5 + $0x28] sm:$0xff] }
 0x1d2   : > { %5007 = vmatprep.subr.bf16.mxu1 %v5381_v35 }
 0x1d5   : > { %5008 = vmatpush3.bf16.msra.mxu1 %v5158_v27  ;;  %v5884_v27 = vld [vmem:[%s6398_s5 + $0x30] sm:$0xff] }
 0x1d6   : > { %5025 = vmatprep.subr.bf16.mxu1 %v5381_v35 }
 0x29b   : > { %v1068_v62 = vpop.f32.mrb[0].mxu1 }
 0x29c   : > { %v1075_v2 = vmul.f32 0.35355338, %v1068_v62  ;;  %v4959_v4 = vpop.f32.mrb[1].mxu1 }
 0x29d   : > { %v1071_v8 = vpop.f32.mrb[2].mxu1  ;;  %v5160_v4 = vld [vmem:[%s5511_s18 + $0x8] sm:$0xff]  }
 0x29e   : > { %v1076_v11 = vmul.f32 0.35355338, %v1071_v8  ;;  %v4960_v47 = vpop.f32.mrb[3].mxu1  ;;  %v1077_v59 = vadd.f32 %v1075_v2, %v852_v63  ;;  %v5159_v2 = vld [vmem:[%s5511_s18] sm:$0xff]   ;;  %v5161_v8 = vld [vmem:[%s5511_s18 + $0x10] sm:$0xff]  }
 0x2a0   : > { %1079 = vmax.xlane.f32.xlu1 %v1077_v59  ;;  %v1078_v0 = vadd.f32 %v1076_v11, %v853_v9  ;;  %v5162_v9 = vld [vmem:[%s5511_s18 + $0x18] sm:$0xff]   ;;  %v731_v11 = vld [vmem:[%s6434_s8] sm:$0xff] }
 0x2a1   : > { %v1387_v47 = vpack.c.bf16 %v731_v11, %v731_v11 }
 0x2a2   : > { %1081 = vmax.xlane.f32.xlu0 %v1078_v0 }
 0x32d   : > { %v1080_v13 = vpop.xlane.xlu1 %1079 }
 0x32e   : > { %v1083_v45 = vsub.f32 %v1077_v59, %v1080_v13 }
 0x32f   : > { %v1082_v46 = vpop.xlane.xlu0 %1081 }
 0x330   : > { %v1085_v48 = vmul.f32 1.442695, %v1083_v45  ;;  %v1084_v14 = vsub.f32 %v1078_v0, %v1082_v46 }
 0x332   : > { %v1087_v49 = vmul.f32 1.442695, %v1084_v14  ;;  %5299 = vpow2.f32 %v1085_v48 }
 0x334   : > { %5301 = vpow2.f32 %v1087_v49 }
 0x33c   : > { %v5300_v52 = vpop.eup %5299 }
 0x33e   : > { %v5302_v57 = vpop.eup %5301 }
 0x33f   : > { %v1089_v15 = vpack.c.bf16 %v5302_v57, %v5300_v52 }
 0x341   : > { %4978 = vmatmul.mubr.bf16.vlgmr.msra.gmra.mrb[4].mxu0 %v1089_v15 }
 0x342   : > { %4982 = vmatpush3.bf16.msra.mxu0 %v1131_v1  ;;  %4997 = vmatprep.mubr.msk.bf16.mxu0 %vm5382_vm2, %v5381_v35  ;;  %v5163_v1 = vld [vmem:[%s5506_s25] sm:$0xff]  }
 0x343   : > { %4983 = vmatprep.subr.bf16.mxu0 %v5381_v35 }
 0x346   : > { %4984 = vmatpush3.bf16.msra.mxu0 %v1132_v17  ;;  %v5165_v17 = vld [vmem:[%s5506_s25 + $0x10] sm:$0xff]  }
 0x347   : > { %4985 = vmatprep.subr.bf16.mxu0 %v5381_v35 }
 0x34a   : > { %4986 = vmatpush3.bf16.msra.mxu0 %v1133_v18  ;;  %v5845_v18 = vld [vmem:[%s6398_s5] sm:$0xff] }
 0x34b   : > { %4987 = vmatprep.subr.bf16.mxu0 %v5381_v35 }
 0x34e   : > { %4988 = vmatpush3.bf16.msra.mxu0 %v1134_v12  ;;  %v5848_v12 = vld [vmem:[%s5531_s12 + $0x8] sm:$0xff] }
 0x34f   : > { %4989 = vmatprep.subr.bf16.mxu0 %v5381_v35 }
 0x352   : > { %4990 = vmatpush3.bf16.msra.mxu0 %v1135_v16  ;;  %v5853_v16 = vld [vmem:[%s6398_s5 + $0x8] sm:$0xff] }
 0x353   : > { %4991 = vmatprep.subr.bf16.mxu0 %v5381_v35 }
 0x356   : > { %4992 = vmatpush3.bf16.msra.mxu0 %v1136_v19  ;;  %v1471_v19 = vrot.slane %v5848_v12, %v5682_v50 }
 0x357   : > { %4993 = vmatprep.subr.bf16.mxu0 %v5381_v35 }
 0x35a   : > { %4994 = vmatpush3.bf16.msra.mxu0 %v1137_v21  ;;  %v5862_v21 = vld [vmem:[%s6398_s5 + $0x10] sm:$0xff] }
 0x35b   : > { %4995 = vmatprep.subr.bf16.mxu0 %v5381_v35 }
 0x35e   : > { %4996 = vmatpush3.bf16.msra.mxu0 %v1138_v22  ;;  %v5867_v22 = vld [vmem:[%s6398_s5 + $0x18] sm:$0xff] }
 0x35f   : > { %5013 = vmatprep.subr.bf16.mxu0 %v5381_v35  ;;  %v1678_v25 = vpack.c.bf16 %v5867_v22, %v5862_v21 }
 0x361   : > { %4998 = vmatmul.mubr.bf16.vlgmr.msra.gmra.mrb[8].mxu0 %v1089_v15  ;;  %v5164_v15 = vld [vmem:[%s5506_s25 + $0x8] sm:$0xff]  }
 0x362   : > { %5021 = vmatprep.mubr.msk.bf16.mxu0 %vm5382_vm2, %v5381_v35  ;;  %5014 = vmatpush3.bf16.msra.mxu0 %v5163_v1 }
 0x363   : > { %5015 = vmatprep.subr.bf16.mxu0 %v5381_v35 }
 0x366   : > { %5016 = vmatpush3.bf16.msra.mxu0 %v5164_v15 }
 0x367   : > { %5017 = vmatprep.subr.bf16.mxu0 %v5381_v35 }
 0x36a   : > { %5018 = vmatpush3.bf16.msra.mxu0 %v5165_v17 }
 0x36b   : > { %5019 = vmatprep.subr.bf16.mxu0 %v5381_v35 }
 0x414   : > { %v1124_v28 = vpop.f32.mrb[4].mxu0 }
 0x415   : > { %v4979_v29 = vpop.f32.mrb[5].mxu0 }
 0x416   : > { %v1127_v30 = vpop.f32.mrb[6].mxu0  ;;  %v5166_v29 = vld [vmem:[%s5506_s25 + $0x18] sm:$0xff]  }
 0x417   : > { %v4980_v31 = vpop.f32.mrb[7].mxu0  ;;  %5020 = vmatpush3.bf16.msra.mxu0 %v5166_v29 }
 0x418   : > { %5037 = vmatprep.subr.bf16.mxu0 %v5381_v35 }
 0x434   : > { %v1173_v32 = vpop.f32.mrb[8].mxu0 }
 0x435   : > { %5303 = vrcp.f32 %v1173_v32  ;;  %v4999_v33 = vpop.f32.mrb[9].mxu0  ;;  %v5914_v32 = vsub.s32 7, %v5550_v7 }
 0x436   : > { %v1176_v34 = vpop.f32.mrb[10].mxu0 }
 0x437   : > { %5305 = vrcp.f32 %v1176_v34  ;;  %v5000_v20 = vpop.f32.mrb[11].mxu0  ;;  %v1466_v33 = vrot.slane %v5807_v39, %v5914_v32 }
 0x43f   : > { %v5304_v23 = vpop.eup %5303 }
 0x440   : > { %v1182_v53 = vmul.f32 %v5304_v23, %v1124_v28  ;;  %v5889_v28 = vld [vmem:[%s6398_s5 + $0x38] sm:$0xff] }
 0x441   : > { %v5306_v60 = vpop.eup %5305  ;;  %v1680_v31 = vpack.c.bf16 %v5889_v28, %v5884_v27 }
 0x442   : > { %v1183_v6 = vmul.f32 %v5306_v60, %v1127_v30  ;;  %v1679_v30 = vpack.c.bf16 %v5879_v26, %v5872_v24 }
 0x444   : > { %v1184_v36 = vpack.c.bf16 %v1183_v6, %v1182_v53 }
 0x446   : > { %5010 = vmatmul.mubr.msk.bf16.vlgmr.msra.gmra.mrb[4].mxu1 %vm783_vm1, %v1184_v36 }
 0x447   : > { %5033 = vmatprep.mubr.msk.bf16.mxu1 %vm5382_vm2, %v5381_v35  ;;  %5026 = vmatpush3.bf16.msra.mxu1 %v5159_v2  ;;  %v5925_v2 = vsub.s32 4, %v5550_v7 }
 0x448   : > { %5027 = vmatprep.subr.bf16.mxu1 %v5381_v35 }
 0x44b   : > { %5028 = vmatpush3.bf16.msra.mxu1 %v5160_v4  ;;  %v5928_v4 = vsub.s32 5, %v5550_v7 }
 0x44c   : > { %5029 = vmatprep.subr.bf16.mxu1 %v5381_v35 }
 0x44f   : > { %5030 = vmatpush3.bf16.msra.mxu1 %v5161_v8 }
 0x450   : > { %5031 = vmatprep.subr.bf16.mxu1 %v5381_v35 }
 0x453   : > { %5032 = vmatpush3.bf16.msra.mxu1 %v5162_v9  ;;  %v1297_v9 = vrot.slane %v5807_v39, %v5925_v2 }
 0x454   : > { %5049 = vmatprep.subr.bf16.mxu1 %v5381_v35 }
 0x456   : > { %5034 = vmatmul.mubr.msk.bf16.vlgmr.msra.gmra.mrb[8].mxu1 %vm783_vm1, %v1387_v47 }
 0x457   : > { %5057 = vmatprep.mubr.msk.bf16.mxu1 %vm5382_vm2, %v5381_v35 }
 0x519   : > { %v1258_v54 = vpop.f32.mrb[4].mxu1 }
 0x51a   : > { %v1259_v56 = vadd.f32 %v1258_v54, %v1196_v38  ;;  %v5011_v43 = vpop.f32.mrb[5].mxu1 }
 0x51b   : > { %v1261_v58 = vpop.f32.mrb[6].mxu1 }
 0x51c   : > { %v1262_v37 = vadd.f32 %v1261_v58, %v1196_v38  ;;  %v5012_v40 = vpop.f32.mrb[7].mxu1  ;;  %v1265_v41 = vadd.f32 %v5328_v44, %v1259_v56 }
 0x51e   : > { %v1267_v42 = vsel %vm783_vm1, %v1265_v41, 0.0  ;;  %v1266_v62 = vadd.f32 %v5329_v61, %v1262_v37 }
 0x51f   : > { %1268 = vadd.xlane.f32.xlu0 %v1267_v42 }
 0x520   : > { %v1270_v63 = vsel %vm783_vm1, %v1266_v62, 0.0 }
 0x521   : > { %1271 = vadd.xlane.f32.xlu1 %v1270_v63 }
 0x529   : > { %v1457_v34 = vpop.f32.mrb[8].mxu1 }
 0x52a   : > { %v1467_v20 = vadd.f32 %v1466_v33, %v1457_v34  ;;  %v5035_v23 = vpop.f32.mrb[9].mxu1 }
 0x52b   : > { %v1460_v53 = vpop.f32.mrb[10].mxu1 }
 0x52c   : > { %v1489_v60 = vmul.f32 %v5862_v21, %v1467_v20  ;;  %v1490_v6 = vmul.f32 %v5867_v22, %v1467_v20  ;;  %v5036_v36 = vpop.f32.mrb[11].mxu1  ;;  %v1491_v38 = vmul.f32 %v5872_v24, %v1467_v20  ;;  %v1492_v54 = vmul.f32 %v5879_v26, %v1467_v20 }
 0x52d   : > { %v1493_v56 = vmul.f32 %v5884_v27, %v1467_v20  ;;  %v1494_v43 = vmul.f32 %v5889_v28, %v1467_v20 }
 0x52e   : > { %v1496_v58 = vpack.c.bf16 %v1490_v6, %v1489_v60  ;;  %v1497_v37 = vpack.c.bf16 %v1492_v54, %v1491_v38 }
 0x52f   : > { %v1498_v40 = vpack.c.bf16 %v1494_v43, %v1493_v56 }
 0x5ac   : > { %v1269_v59 = vpop.xlane.xlu0 %1268 }
 0x5ad   : > { %v1274_v0 = vmul.f32 0.015625, %v1269_v59 }
 0x5ae   : > { %v1272_v13 = vpop.xlane.xlu1 %1271 }
 0x5af   : > { %v5827_v45 = vsub.f32 %v1265_v41, %v1274_v0  ;;  %v1275_v46 = vmul.f32 0.015625, %v1272_v13  ;;  %v1487_v0 = vmul.f32 %v5845_v18, %v1467_v20  ;;  %v1488_v13 = vmul.f32 %v5853_v16, %v1467_v20 }
 0x5b1   : > { %v5829_v48 = vsub.f32 %v1266_v62, %v1275_v46  ;;  %v1278_v14 = vmul.f32 %v5827_v45, %v5827_v45  ;;  %v1495_v29 = vpack.c.bf16 %v1488_v13, %v1487_v0 }
 0x5b3   : > { %v1280_v49 = vsel %vm783_vm1, %v1278_v14, 0.0  ;;  %v1279_v52 = vmul.f32 %v5829_v48, %v5829_v48  ;;  %v1548_v36 = vsel %vm783_vm1, %v1495_v29, 0 }
 0x5b4   : > { %1281 = vadd.xlane.f32.xlu0 %v1280_v49  ;;  %v1303_v49 = vrot.slane %v5807_v39, %v5928_v4 }
 0x5b5   : > { %v1283_v57 = vsel %vm783_vm1, %v1279_v52, 0.0 }
 0x5b6   : > { %1284 = vadd.xlane.f32.xlu1 %v1283_v57 }
 0x5c7   : > { %1507 = vrot.lane.b32.xlu1 %v5845_v18, %s5380_s24 }
 0x5ca   : > { %1473 = vrot.lane.b32.xlu0 %v1471_v19, %s5380_s24 }
 0x5cb   : > { %1509 = vrot.lane.b32.xlu1 %v5853_v16, %s5380_s24 }
 0x5ce   : > { %1511 = vrot.lane.b32.xlu0 %v5862_v21, %s5380_s24  ;;  %v5169_v21 = vld [vmem:[%s5516_s30 + $0x10] sm:$0xff]  }
 0x5cf   : > { %1513 = vrot.lane.b32.xlu1 %v5867_v22, %s5380_s24  ;;  %v5170_v22 = vld [vmem:[%s5516_s30 + $0x18] sm:$0xff]  }
 0x5d2   : > { %1515 = vrot.lane.b32.xlu0 %v5872_v24, %s5380_s24 }
 0x5d3   : > { %1517 = vrot.lane.b32.xlu1 %v5879_v26, %s5380_s24 }
 0x5d6   : > { %1519 = vrot.lane.b32.xlu0 %v5884_v27, %s5380_s24 }
 0x5d7   : > { %1521 = vrot.lane.b32.xlu1 %v5889_v28, %s5380_s24 }
 0x641   : > { %v1282_v44 = vpop.xlane.xlu0 %1281 }
 0x642   : > { %v1286_v41 = vmul.f32 0.015625, %v1282_v44 }
 0x643   : > { %v1285_v42 = vpop.xlane.xlu1 %1284 }
 0x644   : > { %v1288_v61 = vadd.f32 1e-05, %v1286_v41  ;;  %v1287_v62 = vmul.f32 0.015625, %v1285_v42  ;;  %v1551_v41 = vsel %vm783_vm1, %v1496_v58, 0  ;;  %v1554_v42 = vsel %vm783_vm1, %v1497_v37, 0 }
 0x645   : > { %v1474_v47 = vpop.permute.xlu0 %1473  ;;  %v5968_v37 = vsub.s32 6, %v5550_v7  ;;  %v1477_v7 = vld [vmem:[%s6396_s3] sm:$0xff] }
 0x646   : > { %5307 = vrsqrt.f32 %v1288_v61  ;;  %v1289_v63 = vadd.f32 1e-05, %v1287_v62  ;;  %v5935_v46 = vadd.f32 %v1474_v47, %v1457_v34  ;;  %v1557_v61 = vsel %vm783_vm1, %v1498_v40, 0 }
 0x647   : > { %v1508_v8 = vpop.permute.xlu1 %1507 }
 0x648   : > { %5309 = vrsqrt.f32 %v1289_v63  ;;  %v1531_v15 = vmul.f32 %v1508_v8, %v5935_v46 }
 0x649   : > { %v1512_v19 = vpop.permute.xlu0 %1511 }
 0x64a   : > { %v1533_v20 = vmul.f32 %v1512_v19, %v5935_v46 }
 0x64b   : > { %v1510_v52 = vpop.permute.xlu1 %1509 }
 0x64c   : > { %v1532_v17 = vmul.f32 %v1510_v52, %v5935_v46 }
 0x64e   : > { %v1539_v33 = vpack.c.bf16 %v1532_v17, %v1531_v15 }
 0x64f   : > { %v1514_v34 = vpop.permute.xlu1 %1513 }
 0x650   : > { %v5308_v11 = vpop.eup %5307  ;;  %v1534_v60 = vmul.f32 %v1514_v34, %v5935_v46  ;;  %1621 = vrot.lane.b32.xlu0 %v1539_v33, %s5380_s24 }
 0x651   : > { %v1292_v59 = vmul.f32 %v5308_v11, %v5827_v45 }
 0x652   : > { %v5310_v14 = vpop.eup %5309  ;;  %v1540_v38 = vpack.c.bf16 %v1534_v60, %v1533_v20 }
 0x653   : > { %v1298_v57 = vmul.f32 %v1297_v9, %v1292_v59  ;;  %v1293_v1 = vmul.f32 %v5310_v14, %v5829_v48  ;;  %v1516_v48 = vpop.permute.xlu0 %1515  ;;  %v1518_v56 = vpop.permute.xlu1 %1517 }
 0x654   : > { %v1535_v54 = vmul.f32 %v1516_v48, %v5935_v46  ;;  %v1536_v43 = vmul.f32 %v1518_v56, %v5935_v46  ;;  %1623 = vrot.lane.b32.xlu1 %v1540_v38, %s5380_s24 }
 0x655   : > { %v1299_v45 = vmul.f32 %v1297_v9, %v1293_v1  ;;  %v5943_v23 = vadd.f32 %v1303_v49, %v1298_v57  ;;  %v1318_v9 = vrot.slane %v5807_v39, %v5968_v37  ;;  %v1478_v1 = vld [vmem:[%s6396_s3 + $0x8] sm:$0xff] }
 0x656   : > { %v1541_v44 = vpack.c.bf16 %v1536_v43, %v1535_v54 }
 0x657   : > { %v5945_v53 = vadd.f32 %v1303_v49, %v1299_v45  ;;  %v1520_v62 = vpop.permute.xlu0 %1519  ;;  %v1522_v63 = vpop.permute.xlu1 %1521 }
 0x658   : > { %v1537_v20 = vmul.f32 %v1520_v62, %v5935_v46  ;;  %v1538_v34 = vmul.f32 %v1522_v63, %v5935_v46 }
 0x659   : > { %v1306_v6 = vpack.c.bf16 %v5945_v53, %v5943_v23 }
 0x65a   : > { %v1542_v60 = vpack.c.bf16 %v1538_v34, %v1537_v20  ;;  %v1848_v20 = vld [vmem:[%s5521_s22] sm:$0xff] }
 0x65b   : > { %5022 = vmatmul.mubr.msk.bf16.vlgmr.msra.gmra.mrb[12].mxu0 %vm783_vm1, %v1306_v6  ;;  %v1856_v34 = vld [vmem:[%s5521_s22 + $0x40] sm:$0xff] }
 0x65c   : > { %5038 = vmatpush3.bf16.xpose.msra.mxu0 %v1548_v36  ;;  %5045 = vmatprep.mubr.msk.bf16.mxu0 %vm5382_vm2, %v5381_v35 }
 0x65d   : > { %5039 = vmatprep.subr.bf16.mxu0 %v5381_v35 }
 0x664   : > { %5040 = vmatpush3.bf16.xpose.msra.mxu0 %v1551_v41 }
 0x665   : > { %5041 = vmatprep.subr.bf16.mxu0 %v5381_v35 }
 0x66c   : > { %5042 = vmatpush3.bf16.xpose.msra.mxu0 %v1554_v42 }
 0x66d   : > { %5043 = vmatprep.subr.bf16.mxu0 %v5381_v35 }
 0x674   : > { %5044 = vmatpush3.bf16.xpose.msra.mxu0 %v1557_v61 }
 0x675   : > { %5073 = vmatprep.subr.bf16.mxu0 %v5381_v35 }
 0x6c2   : > { %v1622_v8 = vpop.permute.xlu0 %1621 }
 0x6c3   : > { %5050 = vmatpush3.bf16.msra.mxu1 %v1622_v8 }
 0x6c4   : > { %5051 = vmatprep.subr.bf16.mxu1 %v5381_v35 }
 0x6c6   : > { %v1624_v58 = vpop.permute.xlu1 %1623 }
 0x6c7   : > { %5052 = vmatpush3.bf16.msra.mxu1 %v1624_v58 }
 0x6c8   : > { %5053 = vmatprep.subr.bf16.mxu1 %v5381_v35 }
 0x72e   : > { %v1380_v40 = vpop.f32.mrb[12].mxu0 }
 0x72f   : > { %v5023_v11 = vpop.f32.mrb[13].mxu0  ;;  %v1381_v59 = vadd.f32 %v1380_v40, %v1318_v9 }
 0x730   : > { %v1383_v47 = vpop.f32.mrb[14].mxu0 }
 0x731   : > { %v1384_v0 = vadd.f32 %v1383_v47, %v1318_v9  ;;  %v5024_v13 = vpop.f32.mrb[15].mxu0 }
 0x733   : > { %v1543_v14 = vpack.c.bf16 %v1384_v0, %v1381_v59 }
 0x735   : > { %5046 = vmatmul.mubr.msk.bf16.vlgmr.msra.gmra.mrb[16].mxu0 %vm783_vm1, %v1543_v14 }
 0x736   : > { %5081 = vmatprep.mubr.msk.bf16.mxu0 %vm5382_vm2, %v5381_v35 }
 0x808   : > { %v1593_v49 = vpop.f32.mrb[16].mxu0 }
 0x809   : > { %v1600_v52 = vmul.f32 0.35355338, %v1593_v49  ;;  %v5047_v57 = vpop.f32.mrb[17].mxu0 }
 0x80a   : > { %v1596_v39 = vpop.f32.mrb[18].mxu0 }
 0x80b   : > { %v1601_v15 = vmul.f32 0.35355338, %v1596_v39  ;;  %v5048_v17 = vpop.f32.mrb[19].mxu0  ;;  %v1602_v19 = vadd.f32 %v1600_v52, %v1477_v7 }
 0x80d   : > { %v1604_v45 = vsel %vm783_vm1, %v1602_v19, -inf  ;;  %v1603_v29 = vadd.f32 %v1601_v15, %v1478_v1 }
 0x80e   : > { %1605 = vmax.xlane.f32.xlu0 %v1604_v45 }
 0x80f   : > { %v1607_v33 = vsel %vm783_vm1, %v1603_v29, -inf }
 0x810   : > { %1608 = vmax.xlane.f32.xlu1 %v1607_v33 }
 0x821   : > { %1627 = vrot.lane.b32.xlu1 %v1542_v60, %s5380_s24  ;;  %v1849_v60 = vld [vmem:[%s5521_s22 + $0x8] sm:$0xff] }
 0x824   : > { %1625 = vrot.lane.b32.xlu0 %v1541_v44, %s5380_s24  ;;  %v1677_v44 = vpack.c.bf16 %v5853_v16, %v5845_v18  ;;  %v5167_v18 = vld [vmem:[%s5516_s30] sm:$0xff]   ;;  %v5168_v16 = vld [vmem:[%s5516_s30 + $0x8] sm:$0xff]  }
 0x825   : > { %5074 = vmatpush3.bf16.msra.mxu0 %v5167_v18 }
 0x826   : > { %5075 = vmatprep.subr.bf16.mxu0 %v5381_v35 }
 0x829   : > { %5076 = vmatpush3.bf16.msra.mxu0 %v5168_v16  ;;  %v1880_v16 = vld [vmem:[%s5521_s22 + $0x100] sm:$0xff] }
 0x82a   : > { %5077 = vmatprep.subr.bf16.mxu0 %v5381_v35 }
 0x82d   : > { %5078 = vmatpush3.bf16.msra.mxu0 %v5169_v21  ;;  %v1888_v21 = vld [vmem:[%s5521_s22 + $0x140] sm:$0xff] }
 0x82e   : > { %5079 = vmatprep.subr.bf16.mxu0 %v5381_v35 }
 0x831   : > { %5080 = vmatpush3.bf16.msra.mxu0 %v5170_v22  ;;  %v1881_v22 = vld [vmem:[%s5521_s22 + $0x108] sm:$0xff] }
 0x89b   : > { %v1606_v48 = vpop.xlane.xlu0 %1605 }
 0x89c   : > { %v1610_v6 = vsub.f32 %v1602_v19, %v1606_v48  ;;  %v4476_v48 = vcombine.high %v1848_v20, %v1856_v34 }
 0x89d   : > { %v1609_v36 = vpop.xlane.xlu1 %1608 }
 0x89e   : > { %v1612_v38 = vmul.f32 1.442695, %v1610_v6  ;;  %v1611_v54 = vsub.f32 %v1603_v29, %v1609_v36  ;;  %v1857_v6 = vld [vmem:[%s5521_s22 + $0x48] sm:$0xff]  ;;  %v4475_v36 = vcombine.low %v1848_v20, %v1856_v34 }
 0x89f   : > { %v1626_v56 = vpop.permute.xlu0 %1625 }
 0x8a0   : > { %v1614_v43 = vmul.f32 1.442695, %v1611_v54  ;;  %5054 = vmatpush3.bf16.msra.mxu1 %v1626_v56  ;;  %5311 = vpow2.f32 %v1612_v38  ;;  %v4477_v38 = vcombine.low %v1849_v60, %v1857_v6  ;;  %v4478_v54 = vcombine.high %v1849_v60, %v1857_v6  ;;  %v1864_v56 = vld [vmem:[%s5521_s22 + $0x80] sm:$0xff]  ;;  %v1874_v6 = vld [vmem:[%s5521_s22 + $0xd0] sm:$0xff] }
 0x8a1   : > { %5055 = vmatprep.subr.bf16.mxu1 %v5381_v35  ;;  %v1628_v41 = vpop.permute.xlu1 %1627 }
 0x8a2   : > { %5313 = vpow2.f32 %v1614_v43  ;;  %2362 = vmatprep.subr.bf16.mxu0 %v4478_v54  ;;  %v1872_v43 = vld [vmem:[%s5521_s22 + $0xc0] sm:$0xff] }
 0x8a4   : > { %5056 = vmatpush3.bf16.msra.mxu1 %v1628_v41  ;;  %v1865_v41 = vld [vmem:[%s5521_s22 + $0x88] sm:$0xff] }
 0x8a5   : > { %5061 = vmatprep.subr.bf16.mxu1 %v5381_v35 }
 0x8aa   : > { %v5312_v46 = vpop.eup %5311 }
 0x8ac   : > { %v5314_v42 = vpop.eup %5313 }
 0x8ad   : > { %v1616_v61 = vpack.c.bf16 %v5314_v42, %v5312_v46  ;;  %v4492_v46 = vcombine.high %v1864_v56, %v1872_v43  ;;  %v1873_v42 = vld [vmem:[%s5521_s22 + $0xc8] sm:$0xff] }
 0x8ae   : > { %v4494_v18 = vcombine.high %v1865_v41, %v1873_v42 }
 0x8af   : > { %5058 = vmatmul.mubr.msk.bf16.vlgmr.msra.gmra.mrb[12].mxu1 %vm783_vm1, %v1616_v61 }
 0x8b0   : > { %5062 = vmatpush3.bf16.msra.mxu1 %v1677_v44  ;;  %5069 = vmatprep.mubr.msk.bf16.mxu1 %vm5382_vm2, %v5381_v35  ;;  %v4491_v44 = vcombine.low %v1864_v56, %v1872_v43 }
 0x8b1   : > { %5063 = vmatprep.subr.bf16.mxu1 %v5381_v35 }
 0x8b4   : > { %5064 = vmatpush3.bf16.msra.mxu1 %v1678_v25 }
 0x8b5   : > { %5065 = vmatprep.subr.bf16.mxu1 %v5381_v35 }
 0x8b8   : > { %5066 = vmatpush3.bf16.msra.mxu1 %v1679_v30 }
 0x8b9   : > { %5067 = vmatprep.subr.bf16.mxu1 %v5381_v35  ;;  %v1738_v35 = vrot.slane %v5848_v12, %v5555_v10 }
 0x8bc   : > { %5068 = vmatpush3.bf16.msra.mxu1 %v1680_v31 }
 0x8bd   : > { %2319 = vmatprep.subr.bf16.mxu1 %v4476_v48  ;;  %v1866_v48 = vld [vmem:[%s5521_s22 + $0x90] sm:$0xff] }
 0x8be   : > { %v4496_v43 = vcombine.high %v1866_v48, %v1874_v6 }
 0x8bf   : > { %5070 = vmatmul.mubr.msk.bf16.vlgmr.msra.gmra.mrb[16].mxu1 %vm783_vm1, %v1616_v61  ;;  %v4493_v61 = vcombine.low %v1865_v41, %v1873_v42  ;;  %v1882_v41 = vld [vmem:[%s5521_s22 + $0x110] sm:$0xff]  ;;  %v1891_v42 = vld [vmem:[%s5521_s22 + $0x158] sm:$0xff] }
 0x8c0   : > { %2351 = vmatprep.mubr.bf16.mxu1 %v5379_v5  ;;  %2320 = vmatpush1.bf16.msra.mxu1 %v4475_v36  ;;  %v1867_v36 = vld [vmem:[%s5521_s22 + $0x98] sm:$0xff] }
 0x8c1   : > { %2321 = vmatprep.subr.bf16.mxu1 %v4492_v46  ;;  %v1883_v46 = vld [vmem:[%s5521_s22 + $0x118] sm:$0xff] }
 0x8c4   : > { %2322 = vmatpush1.bf16.msra.mxu1 %v4491_v44  ;;  %v4495_v44 = vcombine.low %v1866_v48, %v1874_v6 }
 0x982   : > { %v1670_v24 = vpop.f32.mrb[12].mxu1 }
 0x983   : > { %v5059_v25 = vpop.f32.mrb[13].mxu1 }
 0x984   : > { %v1673_v26 = vpop.f32.mrb[14].mxu1  ;;  %v4508_v25 = vcombine.high %v1880_v16, %v1888_v21 }
 0x985   : > { %v5060_v27 = vpop.f32.mrb[15].mxu1 }
 0x986   : > { %v1896_v27 = vld [vmem:[%s5521_s22 + $0x180] sm:$0xff]  ;;  %2323 = vmatprep.subr.bf16.mxu1 %v4508_v25  ;;  %v1907_v25 = vld [vmem:[%s5521_s22 + $0x1d8] sm:$0xff] }
 0x992   : > { %v1715_v28 = vpop.f32.mrb[16].mxu1 }
 0x993   : > { %5315 = vrcp.f32 %v1715_v28  ;;  %v5071_v30 = vpop.f32.mrb[17].mxu1  ;;  %v1904_v28 = vld [vmem:[%s5521_s22 + $0x1c0] sm:$0xff] }
 0x994   : > { %v1718_v31 = vpop.f32.mrb[18].mxu1 }
 0x995   : > { %5317 = vrcp.f32 %v1718_v31  ;;  %v5072_v62 = vpop.f32.mrb[19].mxu1 }
 0x996   : > { %v4524_v62 = vcombine.high %v1896_v27, %v1904_v28 }
 0x99d   : > { %v5316_v63 = vpop.eup %5315 }
 0x99e   : > { %v1724_v8 = vmul.f32 %v5316_v63, %v1670_v24  ;;  %v4507_v24 = vcombine.low %v1880_v16, %v1888_v21  ;;  %v1897_v63 = vld [vmem:[%s5521_s22 + $0x188] sm:$0xff]  ;;  %v4514_v16 = vcombine.high %v1883_v46, %v1891_v42  ;;  %v1898_v21 = vld [vmem:[%s5521_s22 + $0x190] sm:$0xff] }
 0x99f   : > { %v5318_v58 = vpop.eup %5317 }
 0x9a0   : > { %v1725_v9 = vmul.f32 %v5318_v58, %v1673_v26  ;;  %v1889_v26 = vld [vmem:[%s5521_s22 + $0x148] sm:$0xff]  ;;  %v1850_v58 = vld [vmem:[%s5521_s22 + $0x10] sm:$0xff]  ;;  %2324 = vmatpush1.bf16.msra.mxu1 %v4507_v24  ;;  %v1899_v24 = vld [vmem:[%s5521_s22 + $0x198] sm:$0xff] }
 0x9a1   : > { %v4509_v30 = vcombine.low %v1881_v22, %v1889_v26  ;;  %v4510_v31 = vcombine.high %v1881_v22, %v1889_v26  ;;  %2325 = vmatprep.subr.bf16.mxu1 %v4524_v62  ;;  %v1906_v22 = vld [vmem:[%s5521_s22 + $0x1d0] sm:$0xff]  ;;  %v1860_v62 = vld [vmem:[%s5521_s22 + $0x60] sm:$0xff] }
 0x9a2   : > { %v1726_v40 = vpack.c.bf16 %v1725_v9, %v1724_v8  ;;  %v1905_v8 = vld [vmem:[%s5521_s22 + $0x1c8] sm:$0xff] }
 0x9a3   : > { %v4526_v9 = vcombine.high %v1897_v63, %v1905_v8 }
 0x9a4   : > { %5082 = vmatmul.mubr.msk.bf16.vlgmr.msra.gmra.mrb[20].mxu0 %vm783_vm1, %v1726_v40  ;;  %v1858_v40 = vld [vmem:[%s5521_s22 + $0x50] sm:$0xff] }
 0x9a5   : > { %2394 = vmatprep.mubr.bf16.mxu0 %v5379_v5  ;;  %2363 = vmatpush1.bf16.msra.mxu0 %v4477_v38  ;;  %v1875_v38 = vld [vmem:[%s5521_s22 + $0xd8] sm:$0xff] }
 0x9a6   : > { %2364 = vmatprep.subr.bf16.mxu0 %v4494_v18 }
 0x9a9   : > { %2365 = vmatpush1.bf16.msra.mxu0 %v4493_v61  ;;  %v4497_v61 = vcombine.low %v1867_v36, %v1875_v38 }
 0x9aa   : > { %2366 = vmatprep.subr.bf16.mxu0 %v4510_v31  ;;  %v1852_v31 = vld [vmem:[%s5521_s22 + $0x20] sm:$0xff] }
 0x9ad   : > { %2367 = vmatpush1.bf16.msra.mxu0 %v4509_v30  ;;  %v4530_v30 = vcombine.high %v1899_v24, %v1907_v25 }
 0x9ae   : > { %2368 = vmatprep.subr.bf16.mxu0 %v4526_v9  ;;  %v4529_v9 = vcombine.low %v1899_v24, %v1907_v25 }
 0xa77   : > { %v1800_v11 = vpop.f32.mrb[20].mxu0 }
 0xa78   : > { %v1801_v47 = vadd.f32 %v1800_v11, %v1738_v35  ;;  %v5083_v59 = vpop.f32.mrb[21].mxu0  ;;  %v1859_v11 = vld [vmem:[%s5521_s22 + $0x58] sm:$0xff] }
 0xa79   : > { %v1803_v0 = vpop.f32.mrb[22].mxu0  ;;  %v4479_v59 = vcombine.low %v1850_v58, %v1858_v40 }
 0xa7a   : > { %v1804_v13 = vadd.f32 %v1803_v0, %v1738_v35  ;;  %v5084_v14 = vpop.f32.mrb[23].mxu0  ;;  %v1807_v49 = vadd.f32 %v1801_v47, %v5943_v23  ;;  %v1851_v35 = vld [vmem:[%s5521_s22 + $0x18] sm:$0xff]  ;;  %v4523_v47 = vcombine.low %v1896_v27, %v1904_v28  ;;  %v4513_v27 = vcombine.low %v1883_v46, %v1891_v42 }
 0xa7b   : > { %v4481_v0 = vcombine.low %v1851_v35, %v1859_v11  ;;  %v4480_v14 = vcombine.high %v1850_v58, %v1858_v40  ;;  %v4528_v28 = vcombine.high %v1898_v21, %v1906_v22  ;;  %v4527_v58 = vcombine.low %v1898_v21, %v1906_v22  ;;  %v1879_v21 = vld [vmem:[%s5521_s22 + $0xf8] sm:$0xff] }
 0xa7c   : > { %v1809_v7 = vsel %vm783_vm1, %v1807_v49, 0.0  ;;  %v1808_v52 = vadd.f32 %v1804_v13, %v5945_v53  ;;  %v4525_v13 = vcombine.low %v1897_v63, %v1905_v8  ;;  %2326 = vmatpush1.bf16.msra.mxu1 %v4523_v47  ;;  %v1853_v63 = vld [vmem:[%s5521_s22 + $0x28] sm:$0xff]  ;;  %v4484_v40 = vcombine.high %v1852_v31, %v1860_v62  ;;  %v1876_v47 = vld [vmem:[%s5521_s22 + $0xe0] sm:$0xff] }
 0xa7d   : > { %1810 = vadd.xlane.f32.xlu0 %v1809_v7  ;;  %2405 = vmatprep.subr.bf16.mxu1 %v4480_v14  ;;  %v1861_v8 = vld [vmem:[%s5521_s22 + $0x68] sm:$0xff] }
 0xa7e   : > { %v1812_v57 = vsel %vm783_vm1, %v1808_v52, 0.0  ;;  %2369 = vmatpush1.bf16.msra.mxu0 %v4525_v13  ;;  %v4483_v13 = vcombine.low %v1852_v31, %v1860_v62  ;;  %v4485_v14 = vcombine.low %v1853_v63, %v1861_v8  ;;  %v1895_v31 = vld [vmem:[%s5521_s22 + $0x178] sm:$0xff] }
 0xa7f   : > { %1813 = vadd.xlane.f32.xlu1 %v1812_v57 }
 0xb0a   : > { %v1811_v39 = vpop.xlane.xlu0 %1810 }
 0xb0b   : > { %v1815_v1 = vmul.f32 0.015625, %v1811_v39 }
 0xb0c   : > { %v1814_v15 = vpop.xlane.xlu1 %1813 }
 0xb0d   : > { %v6023_v17 = vsub.f32 %v1807_v49, %v1815_v1  ;;  %v1816_v19 = vmul.f32 0.015625, %v1814_v15  ;;  %v4482_v49 = vcombine.high %v1851_v35, %v1859_v11  ;;  %v4486_v35 = vcombine.high %v1853_v63, %v1861_v8  ;;  %v1868_v11 = vld [vmem:[%s5521_s22 + $0xa0] sm:$0xff] }
 0xb0f   : > { %v6025_v45 = vsub.f32 %v1808_v52, %v1816_v19  ;;  %v1819_v23 = vmul.f32 %v6023_v17, %v6023_v17  ;;  %2448 = vmatprep.subr.bf16.mxu0 %v4482_v49  ;;  %v4500_v49 = vcombine.high %v1868_v11, %v1876_v47 }
 0xb11   : > { %v1821_v53 = vsel %vm783_vm1, %v1819_v23, 0.0  ;;  %v1820_v29 = vmul.f32 %v6025_v45, %v6025_v45  ;;  %v1838_v23 = vrot.slane %v5848_v12, %v5685_v51 }
 0xb12   : > { %1822 = vadd.xlane.f32.xlu0 %v1821_v53 }
 0xb13   : > { %v1824_v33 = vsel %vm783_vm1, %v1820_v29, 0.0 }
 0xb16   : > { %1825 = vadd.xlane.f32.xlu0 %v1824_v33  ;;  %v1844_v33 = vrot.slane %v5848_v12, %v5804_v55  ;;  %v4498_v12 = vcombine.high %v1867_v36, %v1875_v38  ;;  %v1854_v38 = vld [vmem:[%s5521_s22 + $0x30] sm:$0xff] }
 0xb9f   : > { %v1823_v7 = vpop.xlane.xlu0 %1822 }
 0xba0   : > { %v1827_v52 = vmul.f32 0.015625, %v1823_v7 }
 0xba2   : > { %v1829_v57 = vadd.f32 1e-05, %v1827_v52  ;;  %v1884_v52 = vld [vmem:[%s5521_s22 + $0x120] sm:$0xff] }
 0xba3   : > { %v1826_v39 = vpop.xlane.xlu0 %1825 }
 0xba4   : > { %5319 = vrsqrt.f32 %v1829_v57  ;;  %v1828_v1 = vmul.f32 0.015625, %v1826_v39  ;;  %v1892_v57 = vld [vmem:[%s5521_s22 + $0x160] sm:$0xff]  ;;  %v1885_v39 = vld [vmem:[%s5521_s22 + $0x128] sm:$0xff] }
 0xba6   : > { %v1830_v15 = vadd.f32 1e-05, %v1828_v1  ;;  %v1893_v1 = vld [vmem:[%s5521_s22 + $0x168] sm:$0xff] }
 0xba7   : > { %v4517_v48 = vcombine.low %v1885_v39, %v1893_v1 }
 0xba8   : > { %5321 = vrsqrt.f32 %v1830_v15  ;;  %v4499_v15 = vcombine.low %v1868_v11, %v1876_v47  ;;  %v1911_v11 = vld [vmem:[%s5521_s22 + $0x1f8] sm:$0xff] }
 0xbae   : > { %v5320_v19 = vpop.eup %5319 }
 0xbaf   : > { %v1833_v53 = vmul.f32 %v5320_v19, %v6023_v17 }
 0xbb1   : > { %v1839_v20 = vmul.f32 %v1838_v23, %v1833_v53  ;;  %v4518_v53 = vcombine.high %v1885_v39, %v1893_v1  ;;  %v5175_v39 = vld [vmem:[%s5526_s10 + $0x48] sm:$0xff]  }
 0xbb2   : > { %v5322_v29 = vpop.eup %5321  ;;  %v5176_v1 = vld [vmem:[%s5526_s10 + $0xc8] sm:$0xff]  }
 0xbb3   : > { %v1834_v34 = vmul.f32 %v5322_v29, %v6025_v45  ;;  %v6063_v54 = vadd.f32 %v1844_v33, %v1839_v20  ;;  %v1890_v45 = vld [vmem:[%s5521_s22 + $0x150] sm:$0xff]  ;;  %v1900_v29 = vld [vmem:[%s5521_s22 + $0x1a0] sm:$0xff]  ;;  %v1901_v20 = vld [vmem:[%s5521_s22 + $0x1a8] sm:$0xff] }
 0xbb4   : > { %v4512_v18 = vcombine.high %v1882_v41, %v1890_v45  ;;  %v4511_v26 = vcombine.low %v1882_v41, %v1890_v45  ;;  %v1863_v41 = vld [vmem:[%s5521_s22 + $0x78] sm:$0xff] }
 0xbb5   : > { %v1840_v60 = vmul.f32 %v1838_v23, %v1834_v34  ;;  %v4516_v23 = vcombine.high %v1884_v52, %v1892_v57  ;;  %v1909_v34 = vld [vmem:[%s5521_s22 + $0x1e8] sm:$0xff] }
 0xbb6   : > { %v4534_v36 = vcombine.high %v1901_v20, %v1909_v34  ;;  %v4533_v46 = vcombine.low %v1901_v20, %v1909_v34  ;;  %v5184_v20 = vld [vmem:[%s5526_s10 + $0xd8] sm:$0xff]  }
 0xbb7   : > { %v6065_v56 = vadd.f32 %v1844_v33, %v1840_v60  ;;  %v1908_v33 = vld [vmem:[%s5521_s22 + $0x1e0] sm:$0xff]  ;;  %v4515_v60 = vcombine.low %v1884_v52, %v1892_v57  ;;  %v5185_v34 = vld [vmem:[%s5526_s10 + $0x18] sm:$0xff]  }
 0xbb8   : > { %v4532_v6 = vcombine.high %v1900_v29, %v1908_v33  ;;  %v4531_v45 = vcombine.low %v1900_v29, %v1908_v33  ;;  %v5173_v52 = vld [vmem:[%s5526_s10] sm:$0xff]   ;;  %v5181_v29 = vld [vmem:[%s5526_s10 + $0x10] sm:$0xff]  }
 0xbb9   : > { %v6069_v17 = vpack.c.bf16 %v6065_v56, %v6063_v54  ;;  %v5174_v57 = vld [vmem:[%s5526_s10 + $0x80] sm:$0xff]   ;;  %v5182_v33 = vld [vmem:[%s5526_s10 + $0x90] sm:$0xff]  }
 0xbbb   : > { %4539 = vmatmul.mubr.msk.bf16.vlgmr.msra.gmra.mrb[20].mxu1 %vm783_vm1, %v6069_v17  ;;  %4540 = vmatmul.mubr.msk.bf16.vlgmr.msra.gmra.mrb[24].mxu0 %vm783_vm1, %v6069_v17 }
 0xbbc   : > { %2406 = vmatpush1.bf16.msra.mxu1 %v4479_v59  ;;  %2449 = vmatpush1.bf16.msra.mxu0 %v4481_v0  ;;  %v1869_v59 = vld [vmem:[%s5521_s22 + $0xa8] sm:$0xff] }
 0xbbd   : > { %2407 = vmatprep.subr.bf16.mxu1 %v4496_v43  ;;  %2450 = vmatprep.subr.bf16.mxu0 %v4498_v12  ;;  %v1877_v0 = vld [vmem:[%s5521_s22 + $0xe8] sm:$0xff]  ;;  %v1862_v43 = vld [vmem:[%s5521_s22 + $0x70] sm:$0xff]  ;;  %v1855_v12 = vld [vmem:[%s5521_s22 + $0x38] sm:$0xff] }
 0xbbe   : > { %2437 = vmatprep.mubr.bf16.mxu1 %v5379_v5  ;;  %2480 = vmatprep.mubr.bf16.mxu0 %v5379_v5  ;;  %v4502_v7 = vcombine.high %v1869_v59, %v1877_v0  ;;  %v4501_v19 = vcombine.low %v1869_v59, %v1877_v0  ;;  %v4488_v42 = vcombine.high %v1854_v38, %v1862_v43 }
 0xbbf   : > { %v4487_v22 = vcombine.low %v1854_v38, %v1862_v43  ;;  %v4489_v24 = vcombine.low %v1855_v12, %v1863_v41  ;;  %v5190_v38 = vld [vmem:[%s5526_s10 + $0xa0] sm:$0xff]   ;;  %v5191_v43 = vld [vmem:[%s5526_s10 + $0x68] sm:$0xff]  }
 0xbc0   : > { %2408 = vmatpush1.bf16.msra.mxu1 %v4495_v44  ;;  %2451 = vmatpush1.bf16.msra.mxu0 %v4497_v61  ;;  %v4490_v44 = vcombine.high %v1855_v12, %v1863_v41  ;;  %v1870_v61 = vld [vmem:[%s5521_s22 + $0xb0] sm:$0xff]  ;;  %v5192_v12 = vld [vmem:[%s5526_s10 + $0xe8] sm:$0xff]  }
 0xbc1   : > { %2409 = vmatprep.subr.bf16.mxu1 %v4512_v18  ;;  %2452 = vmatprep.subr.bf16.mxu0 %v4514_v16  ;;  %v1878_v18 = vld [vmem:[%s5521_s22 + $0xf0] sm:$0xff]  ;;  %v1871_v16 = vld [vmem:[%s5521_s22 + $0xb8] sm:$0xff]  ;;  %v5193_v41 = vld [vmem:[%s5526_s10 + $0x28] sm:$0xff]  }
 0xbc2   : > { %v4504_v25 = vcombine.high %v1870_v61, %v1878_v18  ;;  %v4503_v62 = vcombine.low %v1870_v61, %v1878_v18  ;;  %v4505_v63 = vcombine.low %v1871_v16, %v1879_v21  ;;  %v5198_v61 = vld [vmem:[%s5526_s10 + $0xb0] sm:$0xff]   ;;  %v5199_v18 = vld [vmem:[%s5526_s10 + $0x78] sm:$0xff]  }
 0xbc4   : > { %2410 = vmatpush1.bf16.msra.mxu1 %v4511_v26  ;;  %2453 = vmatpush1.bf16.msra.mxu0 %v4513_v27  ;;  %v4506_v26 = vcombine.high %v1871_v16, %v1879_v21  ;;  %v1886_v27 = vld [vmem:[%s5521_s22 + $0x130] sm:$0xff]  ;;  %v5200_v16 = vld [vmem:[%s5526_s10 + $0xf8] sm:$0xff]  }
 0xbc5   : > { %2411 = vmatprep.subr.bf16.mxu1 %v4528_v28  ;;  %2454 = vmatprep.subr.bf16.mxu0 %v4530_v30  ;;  %v1894_v28 = vld [vmem:[%s5521_s22 + $0x170] sm:$0xff]  ;;  %v1887_v30 = vld [vmem:[%s5521_s22 + $0x138] sm:$0xff] }
 0xbc6   : > { %v4520_v8 = vcombine.high %v1886_v27, %v1894_v28  ;;  %v4519_v47 = vcombine.low %v1886_v27, %v1894_v28  ;;  %v4521_v59 = vcombine.low %v1887_v30, %v1895_v31  ;;  %v5201_v21 = vld [vmem:[%s5526_s10 + $0x38] sm:$0xff]  }
 0xbc8   : > { %2412 = vmatpush1.bf16.msra.mxu1 %v4527_v58  ;;  %2455 = vmatpush1.bf16.msra.mxu0 %v4529_v9  ;;  %v4522_v58 = vcombine.high %v1887_v30, %v1895_v31  ;;  %v1902_v9 = vld [vmem:[%s5521_s22 + $0x1b0] sm:$0xff] }
 0xbc9   : > { %2491 = vmatprep.subr.bf16.mxu1 %v4484_v40  ;;  %2534 = vmatprep.subr.bf16.mxu0 %v4486_v35  ;;  %v1910_v40 = vld [vmem:[%s5521_s22 + $0x1f0] sm:$0xff]  ;;  %v1903_v35 = vld [vmem:[%s5521_s22 + $0x1b8] sm:$0xff] }
 0xbca   : > { %v4536_v0 = vcombine.high %v1902_v9, %v1910_v40 }
 0xbcb   : > { %4541 = vmatmul.mubr.msk.bf16.vlgmr.msra.gmra.mrb[24].mxu1 %vm783_vm1, %v6069_v17  ;;  %4542 = vmatmul.mubr.msk.bf16.vlgmr.msra.gmra.mrb[28].mxu0 %vm783_vm1, %v6069_v17 }
 0xbcc   : > { %2492 = vmatpush1.bf16.msra.mxu1 %v4483_v13  ;;  %2535 = vmatpush1.bf16.msra.mxu0 %v4485_v14  ;;  %v4538_v13 = vcombine.high %v1903_v35, %v1911_v11  ;;  %v4535_v14 = vcombine.low %v1902_v9, %v1910_v40 }
 0xbcd   : > { %2493 = vmatprep.subr.bf16.mxu1 %v4500_v49  ;;  %2536 = vmatprep.subr.bf16.mxu0 %v4502_v7  ;;  %v4537_v49 = vcombine.low %v1903_v35, %v1911_v11  ;;  %v5172_v7 = vld [vmem:[%s5526_s10 + $0xc0] sm:$0xff]  }
 0xbce   : > { %2523 = vmatprep.mubr.bf16.mxu1 %v5379_v5  ;;  %2566 = vmatprep.mubr.bf16.mxu0 %v5379_v5 }
 0xbd0   : > { %2494 = vmatpush1.bf16.msra.mxu1 %v4499_v15  ;;  %2537 = vmatpush1.bf16.msra.mxu0 %v4501_v19  ;;  %v5177_v15 = vld [vmem:[%s5526_s10 + $0x8] sm:$0xff]  }
 0xbd1   : > { %2495 = vmatprep.subr.bf16.mxu1 %v4516_v23  ;;  %2538 = vmatprep.subr.bf16.mxu0 %v4518_v53  ;;  %v5178_v19 = vld [vmem:[%s5526_s10 + $0x88] sm:$0xff]   ;;  %v5179_v23 = vld [vmem:[%s5526_s10 + $0x50] sm:$0xff]  }
 0xbd2   : > { %v5180_v53 = vld [vmem:[%s5526_s10 + $0xd0] sm:$0xff]  }
 0xbd4   : > { %2496 = vmatpush1.bf16.msra.mxu1 %v4515_v60  ;;  %2539 = vmatpush1.bf16.msra.mxu0 %v4517_v48  ;;  %v5186_v60 = vld [vmem:[%s5526_s10 + $0x98] sm:$0xff]   ;;  %v5187_v48 = vld [vmem:[%s5526_s10 + $0x60] sm:$0xff]  }
 0xbd5   : > { %2497 = vmatprep.subr.bf16.mxu1 %v4532_v6  ;;  %2540 = vmatprep.subr.bf16.mxu0 %v4534_v36  ;;  %v5188_v6 = vld [vmem:[%s5526_s10 + $0xe0] sm:$0xff]  }
 0xbd6   : > { %v5189_v36 = vld [vmem:[%s5526_s10 + $0x20] sm:$0xff]  }
 0xbd8   : > { %2498 = vmatpush1.bf16.msra.mxu1 %v4531_v45  ;;  %2541 = vmatpush1.bf16.msra.mxu0 %v4533_v46  ;;  %v5194_v45 = vld [vmem:[%s5526_s10 + $0xa8] sm:$0xff]   ;;  %v5195_v46 = vld [vmem:[%s5526_s10 + $0x70] sm:$0xff]  }
 0xbd9   : > { %2577 = vmatprep.subr.bf16.mxu1 %v4488_v42  ;;  %2620 = vmatprep.subr.bf16.mxu0 %v4490_v44  ;;  %v5196_v42 = vld [vmem:[%s5526_s10 + $0xf0] sm:$0xff]  }
 0xbda   : > { %v5197_v44 = vld [vmem:[%s5526_s10 + $0x30] sm:$0xff]  }
 0xbdb   : > { %4543 = vmatmul.mubr.msk.bf16.vlgmr.msra.gmra.mrb[28].mxu1 %vm783_vm1, %v6069_v17  ;;  %4544 = vmatmul.mubr.msk.bf16.vlgmr.msra.gmra.mrb[32].mxu0 %vm783_vm1, %v6069_v17 }
 0xbdc   : > { %2578 = vmatpush1.bf16.msra.mxu1 %v4487_v22  ;;  %2621 = vmatpush1.bf16.msra.mxu0 %v4489_v24  ;;  %v5202_v22 = vld [vmem:[%s5526_s10 + $0xb8] sm:$0xff]   ;;  %v5203_v24 = vld [vmem:[%s5526_s10 + $0x140] sm:$0xff]  }
 0xbdd   : > { %2579 = vmatprep.subr.bf16.mxu1 %v4504_v25  ;;  %2622 = vmatprep.subr.bf16.mxu0 %v4506_v26  ;;  %v5204_v25 = vld [vmem:[%s5526_s10 + $0x1c0] sm:$0xff]  }
 0xbde   : > { %2609 = vmatprep.mubr.bf16.mxu1 %v5379_v5  ;;  %2652 = vmatprep.mubr.bf16.mxu0 %v5379_v5  ;;  %v5171_v5 = vld [vmem:[%s5526_s10 + $0x40] sm:$0xff]  }
 0xbdf   : > { %v1912_v26 = vld [vmem:[%s5536_s0] sm:$0xff] }
 0xbe0   : > { %2580 = vmatpush1.bf16.msra.mxu1 %v4503_v62  ;;  %2623 = vmatpush1.bf16.msra.mxu0 %v4505_v63  ;;  %v1919_v27 = vrot.slane %v1912_v26, %v5682_v50  ;;  %v1927_v28 = vrot.slane %v1912_v26, %v5685_v51  ;;  %v1923_v30 = vrot.slane %v1912_v26, %v5555_v10 }
 0xbe1   : > { %2581 = vmatprep.subr.bf16.mxu1 %v4520_v8  ;;  %2624 = vmatprep.subr.bf16.mxu0 %v4522_v58  ;;  %v1931_v31 = vrot.slane %v1912_v26, %v5804_v55 }
 0xbe4   : > { %2582 = vmatpush1.bf16.msra.mxu1 %v4519_v47  ;;  %2625 = vmatpush1.bf16.msra.mxu0 %v4521_v59 }
 0xbe5   : > { %2583 = vmatprep.subr.bf16.mxu1 %v4536_v0  ;;  %2626 = vmatprep.subr.bf16.mxu0 %v4538_v13 }
 0xbe8   : > { %2584 = vmatpush1.bf16.msra.mxu1 %v4535_v14  ;;  %2627 = vmatpush1.bf16.msra.mxu0 %v4537_v49 }
 0xbe9   : > { %4755 = vmatprep.subr.bf16.mxu1 %v5171_v5  ;;  %4777 = vmatprep.subr.bf16.mxu0 %v5172_v7 }
 0xbeb   : > { %4545 = vmatmul.mubr.msk.bf16.vlgmr.msra.gmra.mrb[32].mxu1 %vm783_vm1, %v6069_v17  ;;  %4546 = vmatmul.mubr.msk.bf16.vlgmr.msra.gmra.mrb[36].mxu0 %vm783_vm1, %v6069_v17  ;;  %v5183_v17 = vld [vmem:[%s5526_s10 + $0x58] sm:$0xff]  }
 0xbec   : > { %4756 = vmatpush3.bf16.msra.mxu1 %v5173_v52  ;;  %4778 = vmatpush3.bf16.msra.mxu0 %v5174_v57 }
 0xbed   : > { %4757 = vmatprep.subr.bf16.mxu1 %v5175_v39  ;;  %4779 = vmatprep.subr.bf16.mxu0 %v5176_v1 }
 0xbf0   : > { %4758 = vmatpush3.bf16.msra.mxu1 %v5177_v15  ;;  %4780 = vmatpush3.bf16.msra.mxu0 %v5178_v19 }
 0xbf1   : > { %4759 = vmatprep.subr.bf16.mxu1 %v5179_v23  ;;  %4781 = vmatprep.subr.bf16.mxu0 %v5180_v53 }
 0xbf4   : > { %4760 = vmatpush3.bf16.msra.mxu1 %v5181_v29  ;;  %4782 = vmatpush3.bf16.msra.mxu0 %v5182_v33 }
 0xbf5   : > { %4761 = vmatprep.subr.bf16.mxu1 %v5183_v17  ;;  %4783 = vmatprep.subr.bf16.mxu0 %v5184_v20 }
 0xbf8   : > { %4762 = vmatpush3.bf16.msra.mxu1 %v5185_v34  ;;  %4784 = vmatpush3.bf16.msra.mxu0 %v5186_v60  ;;  %v5205_v34 = vld [vmem:[%s5526_s10 + $0x100] sm:$0xff]  }
 0xbf9   : > { %4763 = vmatprep.subr.bf16.mxu1 %v5187_v48  ;;  %4785 = vmatprep.subr.bf16.mxu0 %v5188_v6  ;;  %v5206_v60 = vld [vmem:[%s5526_s10 + $0x180] sm:$0xff]   ;;  %v5207_v48 = vld [vmem:[%s5526_s10 + $0x148] sm:$0xff]  }
 0xbfa   : > { %v5208_v6 = vld [vmem:[%s5526_s10 + $0x1c8] sm:$0xff]  }
 0xbfc   : > { %4764 = vmatpush3.bf16.msra.mxu1 %v5189_v36  ;;  %4786 = vmatpush3.bf16.msra.mxu0 %v5190_v38  ;;  %v5209_v36 = vld [vmem:[%s5526_s10 + $0x108] sm:$0xff]  }
 0xbfd   : > { %4765 = vmatprep.subr.bf16.mxu1 %v5191_v43  ;;  %4787 = vmatprep.subr.bf16.mxu0 %v5192_v12  ;;  %v5210_v38 = vld [vmem:[%s5526_s10 + $0x188] sm:$0xff]   ;;  %v1935_v43 = vrot.slane %v1912_v26, %v5925_v2  ;;  %v1943_v12 = vrot.slane %v1912_v26, %v5968_v37 }
 0xc00   : > { %4766 = vmatpush3.bf16.msra.mxu1 %v5193_v41  ;;  %4788 = vmatpush3.bf16.msra.mxu0 %v5194_v45  ;;  %v5211_v41 = vld [vmem:[%s5526_s10 + $0x150] sm:$0xff]  }
 0xc01   : > { %4767 = vmatprep.subr.bf16.mxu1 %v5195_v46  ;;  %4789 = vmatprep.subr.bf16.mxu0 %v5196_v42  ;;  %v5212_v45 = vld [vmem:[%s5526_s10 + $0x1d0] sm:$0xff]   ;;  %v1939_v46 = vrot.slane %v1912_v26, %v5928_v4  ;;  %v1947_v42 = vrot.slane %v1912_v26, %v5914_v32 }
 0xc04   : > { %4768 = vmatpush3.bf16.msra.mxu1 %v5197_v44  ;;  %4790 = vmatpush3.bf16.msra.mxu0 %v5198_v61 }
 0xc05   : > { %4769 = vmatprep.subr.bf16.mxu1 %v5199_v18  ;;  %4791 = vmatprep.subr.bf16.mxu0 %v5200_v16  ;;  %v5213_v18 = vld [vmem:[%s5526_s10 + $0x110] sm:$0xff]  }
 0xc06   : > { %v5214_v16 = vld [vmem:[%s5526_s10 + $0x190] sm:$0xff]  }
 0xc08   : > { %4770 = vmatpush3.bf16.msra.mxu1 %v5201_v21  ;;  %4792 = vmatpush3.bf16.msra.mxu0 %v5202_v22 }
 0xc09   : > { %4799 = vmatprep.subr.bf16.mxu1 %v5203_v24  ;;  %4821 = vmatprep.subr.bf16.mxu0 %v5204_v25 }
 0xc8e   : > { %v2353_v62 = vpop.f32.mrb[20].mxu1  ;;  %v2396_v63 = vpop.f32.mrb[24].mxu0 }
 0xc8f   : > { %v2354_v8 = vadd.f32 %v2353_v62, %v1919_v27  ;;  %v2397_v58 = vadd.f32 %v2396_v63, %v1927_v28  ;;  %v2355_v9 = vpop.f32.mrb[21].mxu1  ;;  %v2398_v40 = vpop.f32.mrb[25].mxu0 }
 0xc90   : > { %v2356_v35 = vadd.f32 %v2355_v9, %v1923_v30  ;;  %v2399_v11 = vadd.f32 %v2398_v40, %v1931_v31  ;;  %v2357_v47 = vpop.f32.mrb[22].mxu1  ;;  %v2400_v59 = vpop.f32.mrb[26].mxu0 }
 0xc91   : > { %v2358_v0 = vadd.f32 %v2357_v47, %v1919_v27  ;;  %v2401_v13 = vadd.f32 %v2400_v59, %v1927_v28  ;;  %v2359_v14 = vpop.f32.mrb[23].mxu1  ;;  %v2402_v49 = vpop.f32.mrb[27].mxu0  ;;  %v2663_v52 = vmax.f32 %v2354_v8, 0.0  ;;  %v2665_v57 = vmax.f32 %v2397_v58, 0.0  ;;  %v5215_v27 = vld [vmem:[%s5526_s10 + $0x158] sm:$0xff]  }
 0xc92   : > { %v2360_v5 = vadd.f32 %v2359_v14, %v1923_v30  ;;  %v2403_v7 = vadd.f32 %v2402_v49, %v1931_v31  ;;  %v2664_v15 = vmax.f32 %v2356_v35, 0.0  ;;  %v2666_v19 = vmax.f32 %v2399_v11, 0.0  ;;  %v5216_v28 = vld [vmem:[%s5526_s10 + $0x1d8] sm:$0xff]   ;;  %v5219_v49 = vld [vmem:[%s5526_s10 + $0x160] sm:$0xff]  }
 0xc93   : > { %v2679_v39 = vmax.f32 %v2358_v0, 0.0  ;;  %v2681_v1 = vmax.f32 %v2401_v13, 0.0  ;;  %v5217_v11 = vld [vmem:[%s5526_s10 + $0x118] sm:$0xff]  }
 0xc94   : > { %v2680_v23 = vmax.f32 %v2360_v5, 0.0  ;;  %v2682_v53 = vmax.f32 %v2403_v7, 0.0  ;;  %v5218_v47 = vld [vmem:[%s5526_s10 + $0x198] sm:$0xff]   ;;  %v5220_v5 = vld [vmem:[%s5526_s10 + $0x1e0] sm:$0xff]  }
 0xc95   : > { %v2695_v29 = vpack.c.bf16 %v2679_v39, %v2663_v52  ;;  %v2697_v33 = vpack.c.bf16 %v2681_v1, %v2665_v57 }
 0xc96   : > { %v2696_v17 = vpack.c.bf16 %v2680_v23, %v2664_v15  ;;  %v2698_v20 = vpack.c.bf16 %v2682_v53, %v2666_v19  ;;  %v5221_v53 = vld [vmem:[%s5526_s10 + $0x120] sm:$0xff]  }
 0xc98   : > { %3771 = vmatprep.mubr.bf16.mxu1 %v2696_v17  ;;  %3812 = vmatprep.mubr.bf16.mxu0 %v2698_v20  ;;  %v5224_v17 = vld [vmem:[%s5526_s10 + $0x1e8] sm:$0xff]  }
 0xc99   : > { %3772 = vmatmul.mubr.bf16.vlgmr.msra.gmra.mrb[36].mxu1 %v2695_v29  ;;  %3813 = vmatmul.mubr.bf16.vlgmr.msra.gmra.mrb[40].mxu0 %v2697_v33  ;;  %v5222_v29 = vld [vmem:[%s5526_s10 + $0x1a0] sm:$0xff]   ;;  %v5223_v33 = vld [vmem:[%s5526_s10 + $0x168] sm:$0xff]  }
 0xc9a   : > { %4800 = vmatpush3.bf16.msra.mxu1 %v5205_v34  ;;  %4822 = vmatpush3.bf16.msra.mxu0 %v5206_v60  ;;  %v6201_v20 = vld [vmem:[%s5536_s0 + $0x8] sm:$0xff]  ;;  %s6436_s0 = sld [smem:[#allocation10_spill]] (!%p4675_p5) }
 0xc9b   : > { %4801 = vmatprep.subr.bf16.mxu1 %v5207_v48  ;;  %4823 = vmatprep.subr.bf16.mxu0 %v5208_v6  ;;  %v5225_v34 = vld [vmem:[%s5526_s10 + $0x128] sm:$0xff]   ;;  %v1951_v48 = vrot.slane %v6201_v20, %v5682_v50  ;;  %v1959_v6 = vrot.slane %v6201_v20, %v5685_v51 }
 0xc9c   : > { %v5226_v60 = vld [vmem:[%s5526_s10 + $0x1a8] sm:$0xff]  }
 0xc9e   : > { %v2439_v44 = vpop.f32.mrb[24].mxu1  ;;  %v2482_v61 = vpop.f32.mrb[28].mxu0  ;;  %4802 = vmatpush3.bf16.msra.mxu1 %v5209_v36  ;;  %4824 = vmatpush3.bf16.msra.mxu0 %v5210_v38  ;;  %v5227_v36 = vld [vmem:[%s5526_s10 + $0x170] sm:$0xff]  }
 0xc9f   : > { %v2440_v21 = vadd.f32 %v2439_v44, %v1935_v43  ;;  %v2483_v22 = vadd.f32 %v2482_v61, %v1943_v12  ;;  %v2441_v24 = vpop.f32.mrb[25].mxu1  ;;  %v2484_v25 = vpop.f32.mrb[29].mxu0  ;;  %4803 = vmatprep.subr.bf16.mxu1 %v5211_v41  ;;  %4825 = vmatprep.subr.bf16.mxu0 %v5212_v45  ;;  %v5228_v38 = vld [vmem:[%s5526_s10 + $0x1f0] sm:$0xff]  }
 0xca0   : > { %v2442_v30 = vadd.f32 %v2441_v24, %v1939_v46  ;;  %v2485_v31 = vadd.f32 %v2484_v25, %v1947_v42  ;;  %v2443_v62 = vpop.f32.mrb[26].mxu1  ;;  %v2486_v26 = vpop.f32.mrb[30].mxu0 }
 0xca1   : > { %v2444_v63 = vadd.f32 %v2443_v62, %v1935_v43  ;;  %v2487_v8 = vadd.f32 %v2486_v26, %v1943_v12  ;;  %v2445_v58 = vpop.f32.mrb[27].mxu1  ;;  %v2488_v9 = vpop.f32.mrb[31].mxu0  ;;  %v2667_v59 = vmax.f32 %v2440_v21, 0.0  ;;  %v2669_v0 = vmax.f32 %v2483_v22, 0.0  ;;  %v5233_v62 = vld [vmem:[%s5526_s10 + $0x138] sm:$0xff]  }
 0xca2   : > { %v2446_v40 = vadd.f32 %v2445_v58, %v1939_v46  ;;  %v2489_v35 = vadd.f32 %v2488_v9, %v1947_v42  ;;  %4804 = vmatpush3.bf16.msra.mxu1 %v5213_v18  ;;  %4826 = vmatpush3.bf16.msra.mxu0 %v5214_v16  ;;  %v2668_v7 = vmax.f32 %v2442_v30, 0.0  ;;  %v2670_v52 = vmax.f32 %v2485_v31, 0.0  ;;  %v5229_v46 = vld [vmem:[%s5526_s10 + $0x130] sm:$0xff]   ;;  %v5231_v18 = vld [vmem:[%s5526_s10 + $0x178] sm:$0xff]  }
 0xca3   : > { %v2683_v13 = vmax.f32 %v2444_v63, 0.0  ;;  %v2685_v14 = vmax.f32 %v2487_v8, 0.0  ;;  %4805 = vmatprep.subr.bf16.mxu1 %v5215_v27  ;;  %4827 = vmatprep.subr.bf16.mxu0 %v5216_v28  ;;  %v1955_v43 = vrot.slane %v6201_v20, %v5555_v10  ;;  %v1963_v12 = vrot.slane %v6201_v20, %v5804_v55  ;;  %v5230_v42 = vld [vmem:[%s5526_s10 + $0x1b0] sm:$0xff]   ;;  %v5232_v16 = vld [vmem:[%s5526_s10 + $0x1f8] sm:$0xff]  }
 0xca4   : > { %v2684_v57 = vmax.f32 %v2446_v40, 0.0  ;;  %v2686_v39 = vmax.f32 %v2489_v35, 0.0  ;;  %v5234_v26 = vld [vmem:[%s5526_s10 + $0x1b8] sm:$0xff]   ;;  %v5235_v40 = vld [vmem:[%s5526_s10 + $0x240] sm:$0xff]  }
 0xca5   : > { %v6192_v1 = vpack.c.bf16 %v2683_v13, %v2667_v59  ;;  %v6194_v15 = vpack.c.bf16 %v2685_v14, %v2669_v0  ;;  %v5236_v35 = vld [vmem:[%s5526_s10 + $0x2c0] sm:$0xff]  }
 0xca6   : > { %v2700_v19 = vpack.c.bf16 %v2684_v57, %v2668_v7  ;;  %v2702_v23 = vpack.c.bf16 %v2686_v39, %v2670_v52  ;;  %4806 = vmatpush3.bf16.msra.mxu1 %v5217_v11  ;;  %4828 = vmatpush3.bf16.msra.mxu0 %v5218_v47  ;;  %v5237_v7 = vld [vmem:[%s5526_s10 + $0x200] sm:$0xff]   ;;  %v5239_v57 = vld [vmem:[%s5526_s10 + $0x248] sm:$0xff]  }
 0xca7   : > { %4807 = vmatprep.subr.bf16.mxu1 %v5219_v49  ;;  %4829 = vmatprep.subr.bf16.mxu0 %v5220_v5  ;;  %v5238_v52 = vld [vmem:[%s5526_s10 + $0x280] sm:$0xff]   ;;  %v5240_v39 = vld [vmem:[%s5526_s10 + $0x2c8] sm:$0xff]  }
 0xca8   : > { %3853 = vmatprep.mubr.bf16.mxu1 %v2700_v19  ;;  %3894 = vmatprep.mubr.bf16.mxu0 %v2702_v23  ;;  %v5241_v19 = vld [vmem:[%s5526_s10 + $0x208] sm:$0xff]   ;;  %v1967_v23 = vrot.slane %v6201_v20, %v5925_v2 }
 0xcaa   : > { %4808 = vmatpush3.bf16.msra.mxu1 %v5221_v53  ;;  %4830 = vmatpush3.bf16.msra.mxu0 %v5222_v29  ;;  %v1975_v53 = vrot.slane %v6201_v20, %v5968_v37  ;;  %v5242_v29 = vld [vmem:[%s5526_s10 + $0x288] sm:$0xff]  }
 0xcab   : > { %4809 = vmatprep.subr.bf16.mxu1 %v5223_v33  ;;  %4831 = vmatprep.subr.bf16.mxu0 %v5224_v17  ;;  %v5243_v33 = vld [vmem:[%s5526_s10 + $0x250] sm:$0xff]  }
 0xcac   : > { %v5244_v17 = vld [vmem:[%s5526_s10 + $0x2d0] sm:$0xff]  }
 0xcae   : > { %v2525_v41 = vpop.f32.mrb[28].mxu1  ;;  %v2568_v45 = vpop.f32.mrb[32].mxu0  ;;  %4810 = vmatpush3.bf16.msra.mxu1 %v5225_v34  ;;  %4832 = vmatpush3.bf16.msra.mxu0 %v5226_v60 }
 0xcaf   : > { %v2526_v50 = vadd.f32 %v2525_v41, %v1951_v48  ;;  %v2569_v44 = vadd.f32 %v2568_v45, %v1959_v6  ;;  %v2527_v61 = vpop.f32.mrb[29].mxu1  ;;  %v2570_v51 = vpop.f32.mrb[33].mxu0  ;;  %4811 = vmatprep.subr.bf16.mxu1 %v5227_v36  ;;  %4833 = vmatprep.subr.bf16.mxu0 %v5228_v38  ;;  %v5247_v41 = vld [vmem:[%s5526_s10 + $0x258] sm:$0xff]  }
 0xcb0   : > { %v2528_v10 = vadd.f32 %v2527_v61, %v1955_v43  ;;  %v2571_v21 = vadd.f32 %v2570_v51, %v1963_v12  ;;  %v2529_v22 = vpop.f32.mrb[30].mxu1  ;;  %v2572_v55 = vpop.f32.mrb[34].mxu0 }
 0xcb1   : > { %v2530_v24 = vadd.f32 %v2529_v22, %v1951_v48  ;;  %v2573_v25 = vadd.f32 %v2572_v55, %v1959_v6  ;;  %v2531_v27 = vpop.f32.mrb[31].mxu1  ;;  %v2574_v28 = vpop.f32.mrb[35].mxu0  ;;  %v2671_v63 = vmax.f32 %v2526_v50, 0.0  ;;  %v2673_v8 = vmax.f32 %v2569_v44, 0.0  ;;  %v5245_v48 = vld [vmem:[%s5526_s10 + $0x210] sm:$0xff]  }
 0xcb2   : > { %v2532_v30 = vadd.f32 %v2531_v27, %v1955_v43  ;;  %v2575_v31 = vadd.f32 %v2574_v28, %v1963_v12  ;;  %4812 = vmatpush3.bf16.msra.mxu1 %v5229_v46  ;;  %4834 = vmatpush3.bf16.msra.mxu0 %v5230_v42  ;;  %v2672_v11 = vmax.f32 %v2528_v10, 0.0  ;;  %v2674_v47 = vmax.f32 %v2571_v21, 0.0  ;;  %v5246_v12 = vld [vmem:[%s5526_s10 + $0x290] sm:$0xff]   ;;  %v5249_v10 = vld [vmem:[%s5526_s10 + $0x218] sm:$0xff]   ;;  %v5251_v27 = vld [vmem:[%s5526_s10 + $0x260] sm:$0xff]  }
 0xcb3   : > { %v2687_v58 = vmax.f32 %v2530_v24, 0.0  ;;  %v2689_v9 = vmax.f32 %v2573_v25, 0.0  ;;  %4813 = vmatprep.subr.bf16.mxu1 %v5231_v18  ;;  %4835 = vmatprep.subr.bf16.mxu0 %v5232_v16  ;;  %v5250_v25 = vld [vmem:[%s5526_s10 + $0x298] sm:$0xff]  }
 0xcb4   : > { %v2688_v59 = vmax.f32 %v2532_v30, 0.0  ;;  %v2690_v0 = vmax.f32 %v2575_v31, 0.0 }
 0xcb5   : > { %v6223_v13 = vpack.c.bf16 %v2687_v58, %v2671_v63  ;;  %v6225_v14 = vpack.c.bf16 %v2689_v9, %v2673_v8 }
 0xcb6   : > { %v2704_v49 = vpack.c.bf16 %v2688_v59, %v2672_v11  ;;  %v2706_v5 = vpack.c.bf16 %v2690_v0, %v2674_v47  ;;  %4814 = vmatpush3.bf16.msra.mxu1 %v5233_v62  ;;  %4836 = vmatpush3.bf16.msra.mxu0 %v5234_v26  ;;  %v5252_v26 = vld [vmem:[%s5526_s10 + $0x2e0] sm:$0xff]   ;;  %v5255_v11 = vld [vmem:[%s5526_s10 + $0x268] sm:$0xff]  }
 0xcb7   : > { %4843 = vmatprep.subr.bf16.mxu1 %v5235_v40  ;;  %4865 = vmatprep.subr.bf16.mxu0 %v5236_v35  ;;  %v5253_v40 = vld [vmem:[%s5526_s10 + $0x220] sm:$0xff]   ;;  %v5256_v47 = vld [vmem:[%s5526_s10 + $0x2e8] sm:$0xff]  }
 0xcb8   : > { %v5254_v35 = vld [vmem:[%s5526_s10 + $0x2a0] sm:$0xff]   ;;  %v5257_v59 = vld [vmem:[%s5526_s10 + $0x228] sm:$0xff]  }
 0xcb9   : > { %3854 = vmatmul.mubr.bf16.vlgmr.msra.gmra.mrb[40].mxu1 %v6192_v1  ;;  %3895 = vmatmul.mubr.bf16.vlgmr.msra.gmra.mrb[44].mxu0 %v6194_v15  ;;  %v1971_v1 = vrot.slane %v6201_v20, %v5928_v4  ;;  %v1979_v15 = vrot.slane %v6201_v20, %v5914_v32  ;;  %v5248_v32 = vld [vmem:[%s5526_s10 + $0x2d8] sm:$0xff]   ;;  %v5258_v0 = vld [vmem:[%s5526_s10 + $0x2a8] sm:$0xff]  }
 0xcba   : > { %4844 = vmatpush3.bf16.msra.mxu1 %v5237_v7  ;;  %3935 = vmatprep.mubr.bf16.mxu1 %v2704_v49  ;;  %v5259_v49 = vld [vmem:[%s5526_s10 + $0x270] sm:$0xff]  }
 0xcbb   : > { %4866 = vmatpush3.bf16.msra.mxu0 %v5238_v52  ;;  %3976 = vmatprep.mubr.bf16.mxu0 %v2706_v5  ;;  %v5260_v5 = vld [vmem:[%s5526_s10 + $0x2f0] sm:$0xff]  }
 0xcbc   : > { %4845 = vmatprep.subr.bf16.mxu1 %v5239_v57  ;;  %4867 = vmatprep.subr.bf16.mxu0 %v5240_v39  ;;  %v5261_v7 = vld [vmem:[%s5526_s10 + $0x230] sm:$0xff]   ;;  %v5263_v57 = vld [vmem:[%s5526_s10 + $0x278] sm:$0xff]  }
 0xcbd   : > { %v5262_v52 = vld [vmem:[%s5526_s10 + $0x2b0] sm:$0xff]   ;;  %v5264_v39 = vld [vmem:[%s5526_s10 + $0x2f8] sm:$0xff]  }
 0xcbe   : > { %v2611_v34 = vpop.f32.mrb[32].mxu1  ;;  %v2654_v60 = vpop.f32.mrb[36].mxu0  ;;  %4846 = vmatpush3.bf16.msra.mxu1 %v5241_v19  ;;  %v5265_v19 = vld [vmem:[%s5526_s10 + $0x238] sm:$0xff]  }
 0xcbf   : > { %v2612_v6 = vadd.f32 %v2611_v34, %v1967_v23  ;;  %v2655_v36 = vadd.f32 %v2654_v60, %v1975_v53  ;;  %4868 = vmatpush3.bf16.msra.mxu0 %v5242_v29  ;;  %v2613_v38 = vpop.f32.mrb[33].mxu1  ;;  %v2656_v43 = vpop.f32.mrb[37].mxu0  ;;  %4847 = vmatprep.subr.bf16.mxu1 %v5243_v33  ;;  %v5268_v29 = vld [vmem:[%s5526_s10 + $0x3c0] sm:$0xff]   ;;  %v5273_v34 = vld [vmem:[%s5526_s10 + $0x308] sm:$0xff]  }
 0xcc0   : > { %v2614_v45 = vadd.f32 %v2613_v38, %v1971_v1  ;;  %v2657_v46 = vadd.f32 %v2656_v43, %v1979_v15  ;;  %v2615_v42 = vpop.f32.mrb[34].mxu1  ;;  %v2658_v50 = vpop.f32.mrb[38].mxu0  ;;  %4869 = vmatprep.subr.bf16.mxu0 %v5244_v17  ;;  %v5269_v33 = vld [vmem:[%s5526_s10 + $0x300] sm:$0xff]   ;;  %v5272_v17 = vld [vmem:[%s5526_s10 + $0x3c8] sm:$0xff]   ;;  %v5280_v38 = vld [vmem:[%s5526_s10 + $0x3d8] sm:$0xff]  }
 0xcc1   : > { %v2616_v20 = vadd.f32 %v2615_v42, %v1967_v23  ;;  %v2659_v44 = vadd.f32 %v2658_v50, %v1975_v53  ;;  %v2617_v61 = vpop.f32.mrb[35].mxu1  ;;  %v2660_v51 = vpop.f32.mrb[39].mxu0  ;;  %v2675_v21 = vmax.f32 %v2612_v6, 0.0  ;;  %v2677_v22 = vmax.f32 %v2655_v36, 0.0  ;;  %v5266_v23 = vld [vmem:[%s5526_s10 + $0x2b8] sm:$0xff]   ;;  %v5267_v53 = vld [vmem:[%s5526_s10 + $0x340] sm:$0xff]  }
 0xcc2   : > { %v2618_v18 = vadd.f32 %v2617_v61, %v1971_v1  ;;  %v2661_v16 = vadd.f32 %v2660_v51, %v1979_v15  ;;  %4848 = vmatpush3.bf16.msra.mxu1 %v5245_v48  ;;  %v2676_v28 = vmax.f32 %v2614_v45, 0.0  ;;  %v2678_v30 = vmax.f32 %v2657_v46, 0.0  ;;  %v5270_v1 = vld [vmem:[%s5526_s10 + $0x380] sm:$0xff]   ;;  %v5271_v15 = vld [vmem:[%s5526_s10 + $0x348] sm:$0xff]   ;;  %v5275_v48 = vld [vmem:[%s5526_s10 + $0x350] sm:$0xff]  }
 0xcc3   : > { %v2691_v55 = vmax.f32 %v2616_v20, 0.0  ;;  %v2693_v24 = vmax.f32 %v2659_v44, 0.0  ;;  %4870 = vmatpush3.bf16.msra.mxu0 %v5246_v12  ;;  %4849 = vmatprep.subr.bf16.mxu1 %v5247_v41  ;;  %v5274_v60 = vld [vmem:[%s5526_s10 + $0x388] sm:$0xff]   ;;  %v5276_v6 = vld [vmem:[%s5526_s10 + $0x3d0] sm:$0xff]   ;;  %v5279_v36 = vld [vmem:[%s5526_s10 + $0x358] sm:$0xff]  }
 0xcc4   : > { %v2692_v31 = vmax.f32 %v2618_v18, 0.0  ;;  %v2694_v62 = vmax.f32 %v2661_v16, 0.0  ;;  %4871 = vmatprep.subr.bf16.mxu0 %v5248_v32  ;;  %v5281_v43 = vld [vmem:[%s5526_s10 + $0x318] sm:$0xff]   ;;  %v5283_v41 = vld [vmem:[%s5526_s10 + $0x360] sm:$0xff]   ;;  %v5287_v50 = vld [vmem:[%s5526_s10 + $0x368] sm:$0xff]  }
 0xcc5   : > { %v6253_v63 = vpack.c.bf16 %v2691_v55, %v2675_v21  ;;  %v6255_v8 = vpack.c.bf16 %v2693_v24, %v2677_v22  ;;  %v5282_v12 = vld [vmem:[%s5526_s10 + $0x398] sm:$0xff]   ;;  %v5284_v45 = vld [vmem:[%s5526_s10 + $0x3e0] sm:$0xff]   ;;  %v5288_v32 = vld [vmem:[%s5526_s10 + $0x3e8] sm:$0xff]  }
 0xcc6   : > { %v2708_v58 = vpack.c.bf16 %v2692_v31, %v2676_v28  ;;  %v2710_v9 = vpack.c.bf16 %v2694_v62, %v2678_v30  ;;  %4850 = vmatpush3.bf16.msra.mxu1 %v5249_v10  ;;  %v5285_v46 = vld [vmem:[%s5526_s10 + $0x320] sm:$0xff]   ;;  %v5289_v20 = vld [vmem:[%s5526_s10 + $0x328] sm:$0xff]   ;;  %v5291_v61 = vld [vmem:[%s5526_s10 + $0x370] sm:$0xff]  }
 0xcc7   : > { %4872 = vmatpush3.bf16.msra.mxu0 %v5250_v25  ;;  %4851 = vmatprep.subr.bf16.mxu1 %v5251_v27  ;;  %v5286_v42 = vld [vmem:[%s5526_s10 + $0x3a0] sm:$0xff]   ;;  %v5290_v44 = vld [vmem:[%s5526_s10 + $0x3a8] sm:$0xff]   ;;  %v5292_v51 = vld [vmem:[%s5526_s10 + $0x3f0] sm:$0xff]  }
 0xcc8   : > { %4873 = vmatprep.subr.bf16.mxu0 %v5252_v26  ;;  %v5293_v18 = vld [vmem:[%s5526_s10 + $0x330] sm:$0xff]   ;;  %v5295_v10 = vld [vmem:[%s5526_s10 + $0x378] sm:$0xff]   ;;  %v6308_v27 = vld [vmem:[%s5531_s12 + $0x8] sm:$0xff] }
 0xcc9   : > { %v5294_v16 = vld [vmem:[%s5526_s10 + $0x3b0] sm:$0xff]   ;;  %v5296_v21 = vld [vmem:[%s5526_s10 + $0x3f8] sm:$0xff]   ;;  %v2970_v28 = vrot.slane %v6308_v27, %v5925_v2 }
 0xcca   : > { %4852 = vmatpush3.bf16.msra.mxu1 %v5253_v40  ;;  %v5297_v22 = vld [vmem:[%s5526_s10 + $0x338] sm:$0xff]  }
 0xccb   : > { %4874 = vmatpush3.bf16.msra.mxu0 %v5254_v35  ;;  %4853 = vmatprep.subr.bf16.mxu1 %v5255_v11  ;;  %v5298_v55 = vld [vmem:[%s5526_s10 + $0x3b8] sm:$0xff]  }
 0xccc   : > { %4875 = vmatprep.subr.bf16.mxu0 %v5256_v47 }
 0xcce   : > { %4854 = vmatpush3.bf16.msra.mxu1 %v5257_v59 }
 0xccf   : > { %4876 = vmatpush3.bf16.msra.mxu0 %v5258_v0  ;;  %4855 = vmatprep.subr.bf16.mxu1 %v5259_v49 }
 0xcd0   : > { %4877 = vmatprep.subr.bf16.mxu0 %v5260_v5 }
 0xcd2   : > { %4856 = vmatpush3.bf16.msra.mxu1 %v5261_v7 }
 0xcd3   : > { %4878 = vmatpush3.bf16.msra.mxu0 %v5262_v52  ;;  %4857 = vmatprep.subr.bf16.mxu1 %v5263_v57 }
 0xcd4   : > { %4879 = vmatprep.subr.bf16.mxu0 %v5264_v39 }
 0xcd6   : > { %4858 = vmatpush3.bf16.msra.mxu1 %v5265_v19 }
 0xcd7   : > { %4880 = vmatpush3.bf16.msra.mxu0 %v5266_v23  ;;  %4887 = vmatprep.subr.bf16.mxu1 %v5267_v53 }
 0xcd8   : > { %4909 = vmatprep.subr.bf16.mxu0 %v5268_v29 }
 0xcd9   : > { %3936 = vmatmul.mubr.bf16.vlgmr.msra.gmra.mrb[44].mxu1 %v6223_v13  ;;  %v5277_v13 = vld [vmem:[%s5526_s10 + $0x310] sm:$0xff]  }
 0xcda   : > { %3977 = vmatmul.mubr.bf16.vlgmr.msra.gmra.mrb[48].mxu0 %v6225_v14  ;;  %4888 = vmatpush3.bf16.msra.mxu1 %v5269_v33  ;;  %v5278_v14 = vld [vmem:[%s5526_s10 + $0x390] sm:$0xff]  }
 0xcdb   : > { %4017 = vmatprep.mubr.bf16.mxu1 %v2708_v58  ;;  %4910 = vmatpush3.bf16.msra.mxu0 %v5270_v1 }
 0xcdc   : > { %4058 = vmatprep.mubr.bf16.mxu0 %v2710_v9  ;;  %4889 = vmatprep.subr.bf16.mxu1 %v5271_v15 }
 0xcdd   : > { %4911 = vmatprep.subr.bf16.mxu0 %v5272_v17 }
 0xcde   : > { %4890 = vmatpush3.bf16.msra.mxu1 %v5273_v34 }
 0xcdf   : > { %4912 = vmatpush3.bf16.msra.mxu0 %v5274_v60  ;;  %4891 = vmatprep.subr.bf16.mxu1 %v5275_v48 }
 0xce0   : > { %4913 = vmatprep.subr.bf16.mxu0 %v5276_v6 }
 0xce2   : > { %4892 = vmatpush3.bf16.msra.mxu1 %v5277_v13 }
 0xce3   : > { %4914 = vmatpush3.bf16.msra.mxu0 %v5278_v14  ;;  %4893 = vmatprep.subr.bf16.mxu1 %v5279_v36 }
 0xce4   : > { %4915 = vmatprep.subr.bf16.mxu0 %v5280_v38 }
 0xce6   : > { %4894 = vmatpush3.bf16.msra.mxu1 %v5281_v43 }
 0xce7   : > { %4916 = vmatpush3.bf16.msra.mxu0 %v5282_v12  ;;  %4895 = vmatprep.subr.bf16.mxu1 %v5283_v41 }
 0xce8   : > { %4917 = vmatprep.subr.bf16.mxu0 %v5284_v45 }
 0xcea   : > { %4896 = vmatpush3.bf16.msra.mxu1 %v5285_v46 }
 0xceb   : > { %4918 = vmatpush3.bf16.msra.mxu0 %v5286_v42  ;;  %4897 = vmatprep.subr.bf16.mxu1 %v5287_v50 }
 0xcec   : > { %4919 = vmatprep.subr.bf16.mxu0 %v5288_v32 }
 0xcee   : > { %4898 = vmatpush3.bf16.msra.mxu1 %v5289_v20 }
 0xcef   : > { %4920 = vmatpush3.bf16.msra.mxu0 %v5290_v44  ;;  %4899 = vmatprep.subr.bf16.mxu1 %v5291_v61 }
 0xcf0   : > { %4921 = vmatprep.subr.bf16.mxu0 %v5292_v51 }
 0xcf2   : > { %4900 = vmatpush3.bf16.msra.mxu1 %v5293_v18 }
 0xcf3   : > { %4922 = vmatpush3.bf16.msra.mxu0 %v5294_v16  ;;  %4901 = vmatprep.subr.bf16.mxu1 %v5295_v10 }
 0xcf4   : > { %4923 = vmatprep.subr.bf16.mxu0 %v5296_v21 }
 0xcf6   : > { %4902 = vmatpush3.bf16.msra.mxu1 %v5297_v22 }
 0xcf7   : > { %4924 = vmatpush3.bf16.msra.mxu0 %v5298_v55 }
 0xcf9   : > { %4018 = vmatmul.mubr.bf16.vlgmr.msra.gmra.mrb[48].mxu1 %v6253_v63 }
 0xcfa   : > { %4059 = vmatmul.mubr.bf16.vlgmr.msra.gmra.mrb[52].mxu0 %v6255_v8 }
 0xd6c   : > { %v4771_v24 = vpop.f32.mrb[36].mxu1  ;;  %v4793_v25 = vpop.f32.mrb[40].mxu0 }
 0xd6d   : > { %v4772_v30 = vpop.f32.mrb[37].mxu1  ;;  %v4794_v31 = vpop.f32.mrb[41].mxu0 }
 0xd6e   : > { %v4773_v62 = vadd.f32 %v4772_v30, %v4771_v24  ;;  %v4795_v26 = vadd.f32 %v4794_v31, %v4793_v25  ;;  %v4774_v58 = vpop.f32.mrb[38].mxu1  ;;  %v4796_v9 = vpop.f32.mrb[42].mxu0 }
 0xd6f   : > { %v4775_v40 = vpop.f32.mrb[39].mxu1  ;;  %v4797_v35 = vpop.f32.mrb[43].mxu0 }
 0xd70   : > { %v3774_v11 = vadd.f32 %v4773_v62, %v2970_v28  ;;  %v4776_v47 = vadd.f32 %v4775_v40, %v4774_v58  ;;  %v4798_v63 = vadd.f32 %v4797_v35, %v4796_v9 }
 0xd72   : > { %v3815_v59 = vadd.f32 %v4795_v26, %v3774_v11  ;;  %v3777_v8 = vadd.f32 %v4776_v47, %v2970_v28 }
 0xd74   : > { %v3818_v0 = vadd.f32 %v4798_v63, %v3777_v8 }
 0xd8c   : > { %v4815_v49 = vpop.f32.mrb[40].mxu1  ;;  %v4837_v5 = vpop.f32.mrb[44].mxu0 }
 0xd8d   : > { %v4816_v7 = vpop.f32.mrb[41].mxu1  ;;  %v4838_v52 = vpop.f32.mrb[45].mxu0 }
 0xd8e   : > { %v4817_v57 = vadd.f32 %v4816_v7, %v4815_v49  ;;  %v4839_v2 = vadd.f32 %v4838_v52, %v4837_v5  ;;  %v4818_v39 = vpop.f32.mrb[42].mxu1  ;;  %v4840_v19 = vpop.f32.mrb[46].mxu0 }
 0xd8f   : > { %v4819_v23 = vpop.f32.mrb[43].mxu1  ;;  %v4841_v53 = vpop.f32.mrb[47].mxu0 }
 0xd90   : > { %v3856_v29 = vadd.f32 %v4817_v57, %v3815_v59  ;;  %v4820_v33 = vadd.f32 %v4819_v23, %v4818_v39  ;;  %v4842_v1 = vadd.f32 %v4841_v53, %v4840_v19  ;;  %v4098_v23 = vrot.slane %v6308_v27, %v5928_v4  ;;  %v4113_v4 = vld [vmem:[%s6399_s6] sm:$0xff] (!%p4675_p5) }
 0xd92   : > { %v3897_v15 = vadd.f32 %v4839_v2, %v3856_v29  ;;  %v3859_v17 = vadd.f32 %v4820_v33, %v3818_v0  ;;  %v4104_v29 = vrot.slane %v6308_v27, %v5968_v37  ;;  %v4114_v37 = vld [vmem:[%s6399_s6 + $0x8] sm:$0xff] (!%p4675_p5)  ;;  %v4115_v27 = vld [vmem:[%s6399_s6 + $0x10] sm:$0xff] (!%p4675_p5) }
 0xd94   : > { %v3900_v34 = vadd.f32 %v4842_v1, %v3859_v17 }
 0xdac   : > { %v4859_v60 = vpop.f32.mrb[44].mxu1 }
 0xdad   : > { %v4881_v48 = vpop.f32.mrb[48].mxu0  ;;  %v4860_v6 = vpop.f32.mrb[45].mxu1 }
 0xdae   : > { %v4861_v13 = vadd.f32 %v4860_v6, %v4859_v60  ;;  %v4882_v14 = vpop.f32.mrb[49].mxu0  ;;  %v4862_v36 = vpop.f32.mrb[46].mxu1  ;;  %v5104_v6 = vpack.c.bf16 (!%p4675_p5), %v4114_v37, %v4113_v4 }
 0xdaf   : > { %v4883_v38 = vadd.f32 %v4882_v14, %v4881_v48  ;;  %v4884_v43 = vpop.f32.mrb[50].mxu0  ;;  %v4863_v12 = vpop.f32.mrb[47].mxu1  ;;  %v5383_v14 = vmov (!%p4675_p5), 0  }
 0xdb0   : > { %v3938_v41 = vadd.f32 %v4861_v13, %v3897_v15  ;;  %v4864_v45 = vadd.f32 %v4863_v12, %v4862_v36  ;;  %v4885_v46 = vpop.f32.mrb[51].mxu0  ;;  %v4116_v13 = vld [vmem:[%s6399_s6 + $0x18] sm:$0xff] (!%p4675_p5)  ;;  %5331 = vset.pattern.permute.xlu1 (!%p4675_p5), %v5383_v14  ;;  %5332 = vset.pattern.permute.xlu0 (!%p4675_p5), %v5383_v14  ;;  %v4236_v12 = vld [vmem:[%s6435_s9] sm:$0xff] (!%p4675_p5) }
 0xdb1   : > { %v4886_v42 = vadd.f32 %v4885_v46, %v4884_v43  ;;  %v5108_v36 = vpack.c.bf16 (!%p4675_p5), %v4116_v13, %v4115_v27  ;;  %v4118_v43 = vld [vmem:[%s6399_s6 + $0x28] sm:$0xff] (!%p4675_p5)  ;;  %5105 = vmatprep.subr.bf16.mxu0 (!%p4675_p5), %v5104_v6  ;;  %v4119_v46 = vld [vmem:[%s6399_s6 + $0x30] sm:$0xff] (!%p4675_p5) }
 0xdb2   : > { %v3979_v50 = vadd.f32 %v4883_v38, %v3938_v41  ;;  %v3941_v32 = vadd.f32 %v4864_v45, %v3900_v34  ;;  %v4117_v38 = vld [vmem:[%s6399_s6 + $0x20] sm:$0xff] (!%p4675_p5)  ;;  %5107 = vmatpush3.bf16.msra.mxu0 (!%p4675_p5), %v5104_v6  ;;  %v4237_v41 = vld [vmem:[%s6435_s9 + $0x8] sm:$0xff] (!%p4675_p5) }
 0xdb3   : > { %5109 = vmatprep.subr.bf16.mxu0 (!%p4675_p5), %v5108_v36  ;;  %v5112_v45 = vpack.c.bf16 (!%p4675_p5), %v4118_v43, %v4117_v38 }
 0xdb4   : > { %v3982_v20 = vadd.f32 %v4886_v42, %v3941_v32  ;;  %v4120_v42 = vld [vmem:[%s6399_s6 + $0x38] sm:$0xff] (!%p4675_p5)  ;;  %v4676_v32 = vld [vmem:[%s6436_s0] ss:$0 sm:$0xff] (!%p4675_p5) }
 0xdb6   : > { %5111 = vmatpush3.bf16.msra.mxu0 (!%p4675_p5), %v5108_v36 }
 0xdb7   : > { %5113 = vmatprep.subr.bf16.mxu0 (!%p4675_p5), %v5112_v45 }
 0xdba   : > { %5115 = vmatpush3.bf16.msra.mxu0 (!%p4675_p5), %v5112_v45 }
 0xdcc   : > { %v4903_v44 = vpop.f32.mrb[48].mxu1 }
 0xdcd   : > { %v4925_v61 = vpop.f32.mrb[52].mxu0  ;;  %v4904_v51 = vpop.f32.mrb[49].mxu1 }
 0xdce   : > { %v4905_v18 = vadd.f32 %v4904_v51, %v4903_v44  ;;  %v4926_v16 = vpop.f32.mrb[53].mxu0  ;;  %v4906_v10 = vpop.f32.mrb[50].mxu1 }
 0xdcf   : > { %v4927_v21 = vadd.f32 %v4926_v16, %v4925_v61  ;;  %v4928_v22 = vpop.f32.mrb[54].mxu0  ;;  %v4907_v55 = vpop.f32.mrb[51].mxu1 }
 0xdd0   : > { %v4020_v24 = vadd.f32 %v4905_v18, %v3979_v50  ;;  %v4908_v25 = vadd.f32 %v4907_v55, %v4906_v10  ;;  %v4929_v28 = vpop.f32.mrb[55].mxu0  ;;  %v5116_v50 = vpack.c.bf16 (!%p4675_p5), %v4120_v42, %v4119_v46 }
 0xdd1   : > { %v4930_v30 = vadd.f32 %v4929_v28, %v4928_v22  ;;  %v4235_v28 = vand.u32 (!%p4675_p5), 127, %v830_v3 }
 0xdd2   : > { %v4061_v31 = vadd.f32 %v4927_v21, %v4020_v24  ;;  %v4023_v62 = vadd.f32 %v4908_v25, %v3982_v20  ;;  %5117 = vmatprep.subr.bf16.mxu0 (!%p4675_p5), %v5116_v50 }
 0xdd3   : > { %5119 = vmatpush3.bf16.msra.mxu0 (!%p4675_p5), %v5116_v50 }
 0xdd4   : > { %v4064_v26 = vadd.f32 %v4930_v30, %v4023_v62  ;;  %v4067_v58 = vadd.f32 %v4061_v31, %v6063_v54  ;;  %v5384_v62 = vmov (!%p4675_p5), 0.0  }
 0xdd6   : > { %v4069_v9 = vsel %vm783_vm1, %v4067_v58, 0.0  ;;  %v4068_v40 = vadd.f32 %v4064_v26, %v6065_v56 }
 0xdd7   : > { %4070 = vadd.xlane.f32.xlu1 %v4069_v9 }
 0xdd8   : > { %v4072_v35 = vsel %vm783_vm1, %v4068_v40, 0.0 }
 0xdd9   : > { %4073 = vadd.xlane.f32.xlu0 %v4072_v35 }
 0xe64   : > { %v4071_v11 = vpop.xlane.xlu1 %4070 }
 0xe65   : > { %v4075_v47 = vmul.f32 0.015625, %v4071_v11 }
 0xe66   : > { %v4074_v63 = vpop.xlane.xlu0 %4073 }
 0xe67   : > { %v4077_v59 = vsub.f32 %v4067_v58, %v4075_v47  ;;  %v4076_v8 = vmul.f32 0.015625, %v4074_v63 }
 0xe69   : > { %v4078_v0 = vsub.f32 %v4068_v40, %v4076_v8  ;;  %v4079_v49 = vmul.f32 %v4077_v59, %v4077_v59 }
 0xe6b   : > { %v4081_v5 = vsel %vm783_vm1, %v4079_v49, 0.0  ;;  %v4080_v7 = vmul.f32 %v4078_v0, %v4078_v0 }
 0xe6c   : > { %4082 = vadd.xlane.f32.xlu1 %v4081_v5 }
 0xe6d   : > { %v4084_v54 = vsel %vm783_vm1, %v4080_v7, 0.0 }
 0xe6e   : > { %4085 = vadd.xlane.f32.xlu0 %v4084_v54 }
 0xe7d   : > { %4239 = vperm.xlu1 (!%p4675_p5), %5331, %v4236_v12  }
 0xe81   : > { %4242 = vperm.xlu1 (!%p4675_p5), %5331, %v4237_v41  }
 0xef9   : > { %v4083_v52 = vpop.xlane.xlu1 %4082 }
 0xefa   : > { %v4087_v56 = vmul.f32 0.015625, %v4083_v52 }
 0xefb   : > { %v4086_v57 = vpop.xlane.xlu0 %4085 }
 0xefc   : > { %v4089_v2 = vadd.f32 1e-05, %v4087_v56  ;;  %v4088_v39 = vmul.f32 0.015625, %v4086_v57 }
 0xefd   : > { %v4240_v24 = vpop.permute.xlu1 (!%p4675_p5), %4239 }
 0xefe   : > { %5323 = vrsqrt.f32 %v4089_v2  ;;  %v4090_v19 = vadd.f32 1e-05, %v4088_v39  ;;  %vm4244_vm4 = vcmp.eq.s32.totalorder (!%p4675_p5), %v4235_v28, %v4240_v24 }
 0xeff   : > { %v4679_v26 = vsel (!%p4675_p5), %vm4244_vm4, 1.0, %v5384_v62 }
 0xf00   : > { %5325 = vrsqrt.f32 %v4090_v19 }
 0xf01   : > { %v4243_v31 = vpop.permute.xlu1 (!%p4675_p5), %4242 }
 0xf02   : > { %vm4245_vm5 = vcmp.eq.s32.totalorder (!%p4675_p5), %v4235_v28, %v4243_v31 }
 0xf03   : > { %v4680_v35 = vsel (!%p4675_p5), %vm4245_vm5, 1.0, %v5384_v62 }
 0xf08   : > { %v5324_v53 = vpop.eup %5323 }
 0xf09   : > { %v4093_v33 = vmul.f32 %v5324_v53, %v4077_v59 }
 0xf0a   : > { %v5326_v1 = vpop.eup %5325 }
 0xf0b   : > { %v4099_v15 = vmul.f32 %v4098_v23, %v4093_v33  ;;  %v4094_v17 = vmul.f32 %v5326_v1, %v4078_v0  ;;  %4112 = sbr.rel (%p4675_p5) target bundleno = 4605 (0x11fd), region = 100 }
 0xf0d   : > { %v4105_v34 = vadd.f32 %v4104_v29, %v4099_v15  ;;  %v4100_v60 = vmul.f32 %v4098_v23, %v4094_v17 }
 0xf0f   : > { %4107 = vst.msk [vmem:[#allocation2] sm:$0xff] %vm783_vm1, %v4105_v34  ;;  %v4106_v48 = vadd.f32 %v4104_v29, %v4100_v60  ;;  %5101 = vmatprep.mubr.msk.f32.mxu0 (!%p4675_p5), %vm783_vm1, %v4105_v34 }
 0xf11   : > { %4108 = vst.msk [vmem:[#allocation2 + $0x8] sm:$0xff] %vm783_vm1, %v4106_v48  ;;  %5102 = vmatmul.mubr.msk.f32.vlgmr.msra.gmra.mrb[0].mxu0 (!%p4675_p5), %vm783_vm1, %v4106_v48 }
 0xfe4   : > { %v5103_v20 = vpop.f32.mrb[0].mxu0 }
 0xfe5   : > { %v4200_v44 = vpop.f32.mrb[1].mxu0  ;;  %v4206_v51 = vadd.f32 %v5103_v20, %v4676_v32 }
 0xfe6   : > { %v4201_v61 = vadd.f32 %v4676_v32, %v4200_v44 }
 0xfe7   : > { %v4213_v16 = vsel %vm4209_vm3, %v4206_v51, -inf  ;;  %v4251_v59 = vmul.f32 %v4680_v35, %v4206_v51 }
 0xfe8   : > { %v4210_v18 = vsel %vm4209_vm3, %v4201_v61, -inf  ;;  %v4250_v40 = vmul.f32 %v4679_v26, %v4201_v61 }
 0xfe9   : > { %4211 = vmax.xlane.f32.xlu0 %v4210_v18  ;;  %v4255_v3 = vsel %vm4209_vm3, %v4251_v59, 0.0 }
 0xfea   : > { %v4252_v47 = vsel %vm4209_vm3, %v4250_v40, 0.0 }
 0xfed   : > { %4214 = vmax.xlane.f32.xlu0 %v4213_v16 }
0x1076   : > { %v4212_v10 = vpop.xlane.xlu0 %4211 }
0x1077   : > { %v4216_v21 = vsub.f32 %v4201_v61, %v4212_v10 }
0x1079   : > { %v4218_v22 = vmul.f32 1.442695, %v4216_v21 }
0x107a   : > { %v4215_v55 = vpop.xlane.xlu0 %4214 }
0x107b   : > { %5333 = vpow2.f32 %v4218_v22  ;;  %v4217_v25 = vsub.f32 %v4206_v51, %v4215_v55 }
0x107d   : > { %v4220_v30 = vmul.f32 1.442695, %v4217_v25 }
0x107f   : > { %5335 = vpow2.f32 %v4220_v30 }
0x1085   : > { %v5334_v58 = vpop.eup %5333 }
0x1086   : > { %v4222_v9 = vsel %vm4209_vm3, %v5334_v58, 0.0 }
0x1087   : > { %4223 = vadd.xlane.f32.xlu0 %v4222_v9 }
0x1089   : > { %v5336_v11 = vpop.eup %5335 }
0x108a   : > { %v4225_v63 = vsel %vm4209_vm3, %v5336_v11, 0.0 }
0x108b   : > { %4253 = vadd.xlane.f32.xlu0 %v4252_v47  ;;  %4226 = vadd.xlane.f32.xlu1 %v4225_v63 }
0x108f   : > { %4256 = vadd.xlane.f32.xlu0 %v4255_v3 }
0x1114   : > { %v4224_v8 = vpop.xlane.xlu0 %4223 }
0x1115   : > { %5337 = vlog2.f32 %v4224_v8 }
0x1118   : > { %v4227_v0 = vpop.xlane.xlu1 %4226  ;;  %v4254_v7 = vpop.xlane.xlu0 %4253 }
0x1119   : > { %5339 = vlog2.f32 %v4227_v0 }
0x111c   : > { %v4257_v39 = vpop.xlane.xlu0 %4256 }
0x111f   : > { %v5338_v49 = vpop.eup %5337 }
0x1120   : > { %v4229_v5 = vmul.f32 0.6931472, %v5338_v49 }
0x1122   : > { %v4232_v54 = vadd.f32 %v4229_v5, %v4212_v10 }
0x1123   : > { %v5340_v52 = vpop.eup %5339 }
0x1124   : > { %v4231_v56 = vmul.f32 0.6931472, %v5340_v52  ;;  %v4258_v57 = vsub.f32 %v4232_v54, %v4254_v7 }
0x1126   : > { %v4233_v2 = vadd.f32 %v4231_v56, %v4215_v55  ;;  %v4261_v23 = vsel %vm4260_vm6, %v4258_v57, 0.0 }
0x1128   : > { %v4259_v19 = vsub.f32 %v4233_v2, %v4257_v39 }
0x112a   : > { %v4262_v53 = vsel %vm4260_vm6, %v4259_v19, 0.0 }
0x112b   : > { %v4263_v29 = vadd.f32 %v4262_v53, %v4261_v23 }
0x112d   : > { %4264 = vadd.xlane.f32.xlu0 %v4263_v29 }
0x11ba   : > { %v4265_v33 = vpop.xlane.xlu0 %4264 }
0x11bb   : > { %v4266_v1 = vrot.slane %v4265_v33, 4 }
0x11bd   : > { %v4267_v15 = vadd.f32 %v4266_v1, %v4265_v33 }
0x11bf   : > { %v4268_v17 = vrot.slane %v4267_v15, 2 }
0x11c1   : > { %v4269_v34 = vadd.f32 %v4268_v17, %v4267_v15 }
0x11c3   : > { %v4270_v60 = vrot.slane %v4269_v34, 1 }
0x11c5   : > { %v4271_v48 = vadd.f32 %v4270_v60, %v4269_v34 }
0x11c7   : > { %5120 = vpush %v4271_v48 }
0x11f8   : > { %s5121_s24 = spop %5120 }
0x11f9   : > { %v4273_v4 = vstv %s5121_s24 }
0x11fa   : > { %v4275_v37 = vmul.f32 0.0625, %v4273_v4 }
0x11fc   : > { %4277 = vst.msk [vmem:[#allocation3] sm:$0x1] %vm4276_vm7, %v4275_v37 }
0x11fd PF: > { %p5126_p6 = scmp.eq.s32.totalorder %s5487_s28, 5  ;;  %s5385_s27 = smov [#allocation3]  }
0x11fe   : > { %s4285_s26 = sshll.u32 %s5385_s27, 4  ;;  %s4286_s26 = int_to_ptr.vmem [resolvable:$true] %s4285_s26 }
0x11ff   : > { %s5341_s2 = scalar_lea.vmem %s4286_s26, 16  ;;  %s5347_s7 = scalar_lea.vmem %s4286_s26, 32 }
0x1200   : > { %p5342_p7 = scmp.ne.s32.totalorder %s4286_s26, %s5341_s2  ;;  %p5348_p10 = scmp.lt.s32.totalorder %s4286_s26, %s4286_s26 }
0x1201   : > { %p5349_p11 = scmp.lt.s32.totalorder %s5347_s7, %s5341_s2 }
0x1202   : > { %p5343_p8 = pnand %p5342_p7, %p5126_p6 }
0x1203   : > { %p5350_p12 = por %p5349_p11, %p5348_p10 }
0x1204   : > { %p5344_p9 = pneg %p5343_p8 }
0x1206   : > { %p5351_p13 = pnand %p5350_p12, %p5344_p9 }
0x1208   : > { %5354 = shalt.err (!%p5351_p13)
}
0x1209   : > { %s6437_s19 = sld [smem:[#allocation16_spill]] }
0x120f   : > { %s5355_s1 = scalar_lea.hbm %s6437_s19, 16 }
0x1210   : > { %p5356_p0 = scmp.ne.s32.totalorder %s6437_s19, %s5355_s1  ;;  %p5361_p3 = scmp.lt.u32.totalorder %s5355_s1, %s6437_s19 }
0x1212   : > { %p5357_p1 = pnand %p5356_p0, %p5126_p6 }
0x1214   : > { %p5358_p2 = pneg %p5357_p1 }
0x1216   : > { %p5363_p4 = pnand %p5361_p3, %p5358_p2 }
0x1218   : > { %5366 = shalt.err (!%p5363_p4)
}
0x1219   : > { %5123 = dma.vmem_to_hbm [thread:$0]  (%p5126_p6), %s4286_s26, 16, %s6437_s19, [#allocation4]  }
0x121a   : > { %5372 = dma.done.wait (%p5126_p6), [#allocation4], 16  }
0x121b   : > { %5374 = vsyncadd (%p5126_p6), [#allocation4], 4294967280 }
0x121c PF: > { %s6438_s30 = sld [smem:[#allocation6_spill]] }
0x1222   : > { %s29_s27 = sadd.s32 1, %s6438_s30  }
0x1223   : > { %p26_p5 = scmp.ge.s32.totalorder %s29_s27, 8  }
0x1225   :  { %28 = sbr.rel (!%p26_p5) target bundleno = 12 (0xc), region = 151 }
0x122c   :  { %4298 = vsyncpa [#allocation4], 1 }
0x122d   :  { %4300 = vsyncpa [#allocation4 + $0x1], 1 }

</bundles_post_ra>
